<compile_context>
chip_gen: v6e
topology: v6e:2x2x1
jax: 0.10.0
libtpu: 0.0.40
codegen_flags: <defaults>
</compile_context>

<pallas_src>
import functools

import jax
import jax.numpy as jnp
from jax import lax
from jax.experimental import pallas as pl
from jax.experimental.pallas import tpu as pltpu


def _round_up(x, m):
    return ((x + m - 1) // m) * m


def _vmem_limit_bytes():
    """Device-aware scoped VMEM limit (leave headroom below physical)."""
    cap = 128 * 1024 * 1024
    try:
        cap = int(pltpu.get_tpu_info().vmem_capacity_bytes)
    except Exception:
        pass
    # ~96 MiB on v5e/v6e (128 MiB physical), ~48 MiB on v7x (64 MiB physical).
    return int(min(cap * 3 // 4, 96 * 1024 * 1024))


# ---------------------------------------------------------------------------
# Kernel 1: 3-NN inverse-distance interpolation
#   (square_distance + sort()[:, :, :3] + index_points + weighted sum)
# ---------------------------------------------------------------------------
def _interp_kernel(xyz1_ref, xyz2_ref, pts2_ref, out_ref, *,
                   n_neighbors, idx_bits, packed):
    x1 = xyz1_ref[0]          # (TN, C)  f32 query coordinates (channels-last)
    x2 = xyz2_ref[0]          # (C, S)   f32 sampled coordinates (channels-first)
    p2 = pts2_ref[0]          # (D2, S)  f32 features to interpolate
    S = x2.shape[1]

    # Squared distances with the cross term on the (otherwise idle) MXU.
    # Same algebraic form as the reference square_distance: |a|^2+|b|^2-2ab.
    a2 = jnp.sum(x1 * x1, axis=-1, keepdims=True)                  # (TN, 1)
    b2 = jnp.sum(x2 * x2, axis=0, keepdims=True)                   # (1, S)
    cross = jnp.dot(x1, x2, preferred_element_type=jnp.float32)    # (TN, S) MXU
    d = jnp.maximum(a2 + b2 - 2.0 * cross, 0.0)                    # (TN, S)

    iota = lax.broadcasted_iota(jnp.int32, d.shape, 1)
    w = jnp.zeros(d.shape, jnp.float32)

    if packed:
        # Pack (distance, index) into one monotone int32 key: d >= 0 so its bit
        # pattern is order preserving; the low `idx_bits` mantissa bits carry
        # the column index (tie-break = smallest index, like the stable sort).
        # One XLU reduction per neighbour instead of two.
        hi = jnp.int32(-(1 << idx_bits))
        key = jnp.bitwise_or(jnp.bitwise_and(pltpu.bitcast(d, jnp.int32), hi),
                             iota)
        for _ in range(n_neighbors):
            kmin = jnp.min(key, axis=-1, keepdims=True)            # (TN, 1)
            onehot = key == kmin                                   # one per row
            dsel = pltpu.bitcast(jnp.bitwise_and(kmin, hi), jnp.float32)
            dsel = jnp.maximum(dsel, 1e-10)                        # dists<1e-10 -> 1e-10
            w = w + onehot.astype(jnp.float32) * pl.reciprocal(dsel, approx=True)
            key = jnp.where(onehot, jnp.int32(2 ** 31 - 1), key)
    else:
        # Fallback for very large S (index would eat too many mantissa bits):
        # two exact reductions per neighbour.
        for _ in range(n_neighbors):
            dmin = jnp.min(d, axis=-1, keepdims=True)
            first = jnp.min(jnp.where(d == dmin, iota, S), axis=-1, keepdims=True)
            onehot = iota == first
            w = w + onehot.astype(jnp.float32) * pl.reciprocal(
                jnp.maximum(dmin, 1e-10), approx=True)
            d = jnp.where(onehot, jnp.inf, d)

    # Normalize weights, then gather + blend as one f32 MXU matmul that emits
    # the result directly channels-first (D2, TN) -> lane-dense store.
    wsum = jnp.sum(w, axis=-1, keepdims=True)
    wn = w * pl.reciprocal(wsum, approx=True)                      # (TN, S)
    interp = lax.dot_general(p2, wn, (((1,), (1,)), ((), ())),
                             preferred_element_type=jnp.float32)   # (D2, TN)
    out_ref[0] = interp.astype(out_ref.dtype)


def _interp_tile_n(N, S, C, D2, vmem_limit):
    # residents (double-buffered by the pipeline): xyz2 f32 + points2 f32
    resident = 2 * 4 * S * (C + D2)
    budget = max(vmem_limit // 2 - resident, 2 * 1024 * 1024)
    # per query point: ~6 live (S,) f32 temporaries + double-buffered in/out
    per_q = 4 * (6 * S + 2 * C) + 2 * 2 * D2
    tn = (budget // max(per_q, 1)) // 128 * 128
    tn = max(128, min(tn, 4096))
    return N if tn >= N else tn


def interpolate_points(xyz1_t, xyz2_cf, points2_cf):
    """xyz1_t [B,N,C] f32, xyz2_cf [B,C,S] f32, points2_cf [B,D2,S] f32
       -> interpolated features [B, D2, N] bf16 (channels-first)."""
    B, N, C = xyz1_t.shape
    S = xyz2_cf.shape[2]
    D2 = points2_cf.shape[1]
    vmem_limit = _vmem_limit_bytes()
    tn = _interp_tile_n(N, S, C, D2, vmem_limit)
    n_tiles = pl.cdiv(N, tn)
    idx_bits = max(1, (S - 1).bit_length())
    kernel = functools.partial(_interp_kernel,
                               n_neighbors=min(3, S),
                               idx_bits=idx_bits,
                               packed=(idx_bits <= 12))
    return pl.pallas_call(
        kernel,
        out_shape=jax.ShapeDtypeStruct((B, D2, N), jnp.bfloat16),
        grid=(B, n_tiles),
        in_specs=[
            pl.BlockSpec((1, tn, C), lambda b, n: (b, n, 0)),
            pl.BlockSpec((1, C, S), lambda b, n: (b, 0, 0)),     # resident over n
            pl.BlockSpec((1, D2, S), lambda b, n: (b, 0, 0)),    # resident over n
        ],
        out_specs=pl.BlockSpec((1, D2, tn), lambda b, n: (b, 0, n)),
        compiler_params=pltpu.CompilerParams(
            dimension_semantics=("parallel", "parallel"),
            vmem_limit_bytes=vmem_limit),
    )(xyz1_t, xyz2_cf, points2_cf)


# ---------------------------------------------------------------------------
# Kernel 2: fused MLP layer (channels-first)
#   [optional: relu(BN(prev))]  ->  z = conv_r(x)*conv_g(x) + conv_b(x*x)
#   plus per-tile partial (sum, sum^2) for the global train-mode BN statistics.
# ---------------------------------------------------------------------------
def _mlp_layer_kernel(*refs, apply_norm, cout, n_parts, n_total, tile_n):
    it = iter(refs)
    x_refs = [next(it) for _ in range(n_parts)]
    scale_ref = shift_ref = None
    if apply_norm:
        scale_ref = next(it)
        shift_ref = next(it)
    wrg_refs = [next(it) for _ in range(n_parts)]
    wb_refs = [next(it) for _ in range(n_parts)]
    brg_ref = next(it)
    bb_ref = next(it)
    z_ref = next(it)
    stats_ref = next(it)

    acc_rg = None
    acc_b = None
    for xr, wrg, wb in zip(x_refs, wrg_refs, wb_refs):
        x = xr[0].astype(jnp.float32)                    # (Cp, TN)
        if apply_norm:
            # fused BatchNorm(+affine)+ReLU of the previous layer's pre-activation
            x = jnp.maximum(x * scale_ref[...] + shift_ref[...], 0.0)
        xb = x.astype(jnp.bfloat16)
        xsqb = (x * x).astype(jnp.bfloat16)
        r = jnp.dot(wrg[...], xb, preferred_element_type=jnp.float32)   # (2Cout, TN)
        q = jnp.dot(wb[...], xsqb, preferred_element_type=jnp.float32)  # (Cout, TN)
        acc_rg = r if acc_rg is None else acc_rg + r
        acc_b = q if acc_b is None else acc_b + q

    zrg = acc_rg + brg_ref[...]                          # (2Cout, TN)
    zb = acc_b + bb_ref[...]                             # (Cout, TN)
    z = zrg[:cout, :] * zrg[cout:, :] + zb               # (Cout, TN) f32
    z_ref[0] = z.astype(z_ref.dtype)                     # bf16 activation to HBM

    # Partial per-channel statistics (masked if the last N tile is partial so
    # padded columns never pollute the global BatchNorm stats).
    zm = z
    if n_total % tile_n != 0:
        cols = (pl.program_id(1) * tile_n
                + lax.broadcasted_iota(jnp.int32, z.shape, 1))
        zm = jnp.where(cols < n_total, z, 0.0)
    ones_row = jnp.ones((1, z.shape[1]), jnp.float32)
    dn = (((1,), (1,)), ((), ()))
    s1 = lax.dot_general(ones_row, zm, dn, preferred_element_type=jnp.float32)
    s2 = lax.dot_general(ones_row, zm * zm, dn, preferred_element_type=jnp.float32)
    stats_ref[0, 0] = jnp.concatenate([s1, s2], axis=0)  # (2, Cout)


def _bn_relu_kernel(z_ref, scale_ref, shift_ref, out_ref):
    z = z_ref[0].astype(jnp.float32)
    out_ref[0] = jnp.maximum(z * scale_ref[...] + shift_ref[...], 0.0)


def _pick_tile_n(N, cin, cout, vmem_limit, min_steps=1):
    # residents: bf16 weights + f32 biases/scales (double-buffered) - tiny
    resident = 2 * (2 * cin * 3 * cout + 4 * (3 * cout + 2 * cin))
    budget = max(vmem_limit // 2 - resident, 2 * 1024 * 1024)
    # live f32/bf16 bytes per output column (lane)
    per_col = 4 * (2 * cin + 5 * cout) + 2 * (2 * cin + 2 * cout)
    tn = (budget // max(per_col, 1)) // 128 * 128
    tn = max(128, min(tn, 8192))
    if min_steps > 1 and N > 128:
        # ensure >=2 grid steps so both v7x TensorCores get work
        tn = min(tn, _round_up(pl.cdiv(N, min_steps), 128))
    return N if tn >= N else tn


def _mlp_layer_call(parts, scale, shift, p, *, apply_norm, vmem_limit):
    B, _, N = parts[0].shape
    cps = [int(x.shape[1]) for x in parts]
    cin = sum(cps)
    cout = int(p["bb"].shape[0])
    min_steps = 2 if B == 1 else 1
    tn = _pick_tile_n(N, cin, cout, vmem_limit, min_steps)
    ntiles = pl.cdiv(N, tn)
    n_parts = len(parts)

    kernel = functools.partial(_mlp_layer_kernel, apply_norm=apply_norm,
                               cout=cout, n_parts=n_parts, n_total=N, tile_n=tn)

    def _const(arr):
        return pl.BlockSpec(arr.shape, lambda *_: (0,) * arr.ndim)

    in_specs, args = [], []
    for x, cp in zip(parts, cps):
        in_specs.append(pl.BlockSpec((1, cp, tn), lambda b, i: (b, 0, i)))
        args.append(x)
    if apply_norm:
        in_specs += [_const(scale), _const(shift)]
        args += [scale, shift]
    # weights split by input part (avoids materialising concat([points1, interp]))
    w_args = []
    off = 0
    for cp in cps:
        w_args.append(p["wrg_t"][:, off:off + cp])
        off += cp
    off = 0
    for cp in cps:
        w_args.append(p["wb_t"][:, off:off + cp])
        off += cp
    w_args += [p["brg"], p["bb"]]
    in_specs += [_const(w) for w in w_args]
    args += w_args

    z, psum = pl.pallas_call(
        kernel,
        grid=(B, ntiles),
        in_specs=in_specs,
        out_specs=[pl.BlockSpec((1, cout, tn), lambda b, i: (b, 0, i)),
                   pl.BlockSpec((1, 1, 2, cout), lambda b, i: (b, i, 0, 0))],
        out_shape=[jax.ShapeDtypeStruct((B, cout, N), jnp.bfloat16),
                   jax.ShapeDtypeStruct((B, ntiles, 2, cout), jnp.float32)],
        compiler_params=pltpu.CompilerParams(
            dimension_semantics=("parallel", "parallel"),
            vmem_limit_bytes=vmem_limit),
    )(*args)
    return z, psum


def _bn_relu_call(z, scale, shift, *, vmem_limit):
    B, cl, N = z.shape
    tn = _pick_tile_n(N, cl, cl, vmem_limit, 2 if B == 1 else 1)
    ntiles = pl.cdiv(N, tn)
    return pl.pallas_call(
        _bn_relu_kernel,
        grid=(B, ntiles),
        in_specs=[pl.BlockSpec((1, cl, tn), lambda b, i: (b, 0, i)),
                  pl.BlockSpec((cl, 1), lambda b, i: (0, 0)),
                  pl.BlockSpec((cl, 1), lambda b, i: (0, 0))],
        out_specs=pl.BlockSpec((1, cl, tn), lambda b, i: (b, 0, i)),
        out_shape=jax.ShapeDtypeStruct((B, cl, N), jnp.float32),
        compiler_params=pltpu.CompilerParams(
            dimension_semantics=("parallel", "parallel"),
            vmem_limit_bytes=vmem_limit),
    )(z, scale, shift)


def mlp_stack(parts, params, eps=1e-5):
    """parts: list of channels-first (B, Cp, N) feature slabs; returns (B, C_last, N)."""
    if not params:
        return jnp.concatenate([x.astype(jnp.float32) for x in parts], axis=1)
    vmem_limit = _vmem_limit_bytes()
    B, _, N = parts[0].shape
    m = B * N
    scale = shift = None
    xs = parts
    z = None
    for li, p in enumerate(params):
        z, psum = _mlp_layer_call(xs, scale, shift, p,
                                  apply_norm=(li > 0), vmem_limit=vmem_limit)
        s = jnp.sum(psum, axis=(0, 1))                    # (2, Cout) tiny XLA reduce
        mean = s[0] / jnp.float32(m)
        var = jnp.maximum(s[1] / jnp.float32(m) - mean * mean, 0.0)
        inv = p["gamma"] * lax.rsqrt(var + eps)
        scale = inv[:, None]                              # (Cout, 1)
        shift = (p["beta"] - mean * inv)[:, None]
        xs = [z]
    return _bn_relu_call(z, scale, shift, vmem_limit=vmem_limit)  # final BN + ReLU


# ---------------------------------------------------------------------------
# Parameter init (mirrors QPointNetFeaturePropagation.__init__)
# conv_r|conv_g weights pre-fused as (2*Cout, Cin); matmul weights kept in bf16.
# ---------------------------------------------------------------------------
def init_params(key, in_channel, mlp):
    params = []
    last = in_channel
    for out in mlp:
        key, k1, k2 = jax.random.split(key, 3)
        bound = 1.0 / (last ** 0.5)                        # PyTorch Conv1d default
        wr = jax.random.uniform(k1, (out, last), jnp.float32, -bound, bound)
        br = jax.random.uniform(k2, (out,), jnp.float32, -bound, bound)
        wg = jnp.zeros((out, last), jnp.float32)           # convs_g.weight.fill_(0)
        bg = jnp.ones((out,), jnp.float32)                 # convs_g.bias.fill_(1)
        wb = jnp.zeros((out, last), jnp.float32)           # convs_b.weight.fill_(0)
        bb = jnp.zeros((out,), jnp.float32)                # convs_b.bias.fill_(0)
        params.append(dict(
            wrg_t=jnp.concatenate([wr, wg], axis=0).astype(jnp.bfloat16),  # (2Cout,Cin)
            brg=jnp.concatenate([br, bg])[:, None],                        # (2Cout, 1)
            wb_t=wb.astype(jnp.bfloat16),                                  # (Cout, Cin)
            bb=bb[:, None],                                                # (Cout, 1)
            gamma=jnp.ones((out,), jnp.float32),            # BN affine defaults
            beta=jnp.zeros((out,), jnp.float32),
        ))
        last = out
    return params


# ---------------------------------------------------------------------------
# Full forward (PyTorch I/O convention: xyz [B,C,N]/[B,C,S], points [B,D,*])
# ---------------------------------------------------------------------------
def qpointnet_feature_propagation(xyz1, xyz2, points1, points2, params, eps=1e-5):
    B, C, N = xyz1.shape
    S = xyz2.shape[2]
    D2 = points2.shape[1]

    if S == 1:
        interp = jnp.broadcast_to(points2, (B, D2, N)).astype(jnp.bfloat16)
    else:
        # coords only (3 channels) -> tiny transpose; pad channel dim to 8 with
        # zeros (does not change distances) so the MXU contraction is aligned.
        xyz1_t = jnp.transpose(xyz1, (0, 2, 1))                       # (B, N, C)
        xyz2_cf = xyz2
        if C < 8:
            xyz1_t = jnp.pad(xyz1_t, ((0, 0), (0, 0), (0, 8 - C)))
            xyz2_cf = jnp.pad(xyz2_cf, ((0, 0), (0, 8 - C), (0, 0)))
        interp = interpolate_points(xyz1_t, xyz2_cf, points2)         # (B, D2, N) bf16

    parts = [points1, interp] if points1 is not None else [interp]
    return mlp_stack(parts, params, eps=eps)                          # (B, C_last, N)


if __name__ == "__main__":
    key = jax.random.PRNGKey(0)
    B, N, S, C, D1, D2 = 2, 64, 16, 3, 16, 32
    mlp = [64, 32]
    in_channel = D1 + D2

    k1, k2, k3, k4, kp = jax.random.split(key, 5)
    xyz1 = jax.random.normal(k1, (B, C, N), jnp.float32)
    xyz2 = jax.random.normal(k2, (B, C, S), jnp.float32)
    points1 = jax.random.normal(k3, (B, D1, N), jnp.float32)
    points2 = jax.random.normal(k4, (B, D2, S), jnp.float32)
    params = init_params(kp, in_channel, mlp)

    out = jax.jit(qpointnet_feature_propagation)(xyz1, xyz2, points1, points2, params)
    out = jax.block_until_ready(out)

    assert out.shape == (B, mlp[-1], N), out.shape
    assert bool(jnp.all(jnp.isfinite(out)))
    print("KERNEL_OK")
</pallas_src>

<mosaic_0001>
module attributes {stable_mosaic.version = 11 : i64} {
  func.func @_interp_kernel(%arg0: i32, %arg1: i32, %arg2: memref<1x64x8xf32, #tpu.memory_space<vmem>>, %arg3: memref<1x8x16xf32, #tpu.memory_space<vmem>>, %arg4: memref<1x32x16xf32, #tpu.memory_space<vmem>>, %arg5: memref<1x32x64xbf16, #tpu.memory_space<vmem>>) attributes {dimension_semantics = [#tpu.dimension_semantics<parallel>, #tpu.dimension_semantics<parallel>], iteration_bounds = array<i64: 2, 1>, scalar_prefetch = 0 : i64, scratch_operands = 0 : i64, tpu.core_type = #tpu.core_type<tc>, window_params = [{transform_indices = @transform_0, window_bounds = array<i64: 1, 64, 8>}, {transform_indices = @transform_1, window_bounds = array<i64: 1, 8, 16>}, {transform_indices = @transform_2, window_bounds = array<i64: 1, 32, 16>}, {transform_indices = @transform_3, window_bounds = array<i64: 1, 32, 64>}]} {
    %c0 = arith.constant 0 : index
    %c0_0 = arith.constant 0 : index
    %c0_1 = arith.constant 0 : index
    %0 = vector.load %arg2[%c0, %c0_0, %c0_1] : memref<1x64x8xf32, #tpu.memory_space<vmem>>, vector<1x64x8xf32>
    %1 = vector.shape_cast %0 : vector<1x64x8xf32> to vector<64x8xf32>
    %c0_2 = arith.constant 0 : index
    %c0_3 = arith.constant 0 : index
    %c0_4 = arith.constant 0 : index
    %2 = vector.load %arg3[%c0_2, %c0_3, %c0_4] : memref<1x8x16xf32, #tpu.memory_space<vmem>>, vector<1x8x16xf32>
    %3 = vector.shape_cast %2 : vector<1x8x16xf32> to vector<8x16xf32>
    %c0_5 = arith.constant 0 : index
    %c0_6 = arith.constant 0 : index
    %c0_7 = arith.constant 0 : index
    %4 = vector.load %arg4[%c0_5, %c0_6, %c0_7] : memref<1x32x16xf32, #tpu.memory_space<vmem>>, vector<1x32x16xf32>
    %5 = vector.shape_cast %4 : vector<1x32x16xf32> to vector<32x16xf32>
    %6 = arith.mulf %1, %1 : vector<64x8xf32>
    %cst = arith.constant dense<0.000000e+00> : vector<64xf32>
    %7 = vector.multi_reduction <add>, %6, %cst [1] : vector<64x8xf32> to vector<64xf32>
    %8 = vector.shape_cast %7 : vector<64xf32> to vector<64x1xf32>
    %9 = arith.mulf %3, %3 : vector<8x16xf32>
    %cst_8 = arith.constant dense<0.000000e+00> : vector<16xf32>
    %10 = vector.multi_reduction <add>, %9, %cst_8 [0] : vector<8x16xf32> to vector<16xf32>
    %11 = vector.shape_cast %10 : vector<16xf32> to vector<1x16xf32>
    %cst_9 = arith.constant dense<0.000000e+00> : vector<64x16xf32>
    %12 = tpu.matmul %1, %3, %cst_9 {dimension_numbers = #tpu.dot_dimension_numbers<[1], [0], [0], [1], [0, 0, 1, 1], [], []>} : vector<64x8xf32>, vector<8x16xf32>, vector<64x16xf32> -> vector<64x16xf32>
    %13 = vector.broadcast %8 : vector<64x1xf32> to vector<64x16xf32>
    %14 = vector.broadcast %11 : vector<1x16xf32> to vector<64x16xf32>
    %15 = arith.addf %13, %14 : vector<64x16xf32>
    %cst_10 = arith.constant 2.000000e+00 : f32
    %16 = vector.broadcast %cst_10 : f32 to vector<64x16xf32>
    %17 = arith.mulf %16, %12 : vector<64x16xf32>
    %18 = arith.subf %15, %17 : vector<64x16xf32>
    %cst_11 = arith.constant 0.000000e+00 : f32
    %19 = vector.broadcast %cst_11 : f32 to vector<64x16xf32>
    %20 = arith.maximumf %18, %19 : vector<64x16xf32>
    %21 = tpu.iota {dimensions = array<i32: 1>} : vector<64x16xi32>
    %cst_12 = arith.constant 0.000000e+00 : f32
    %22 = vector.broadcast %cst_12 : f32 to vector<64x16xf32>
    %23 = tpu.bitcast %20 : vector<64x16xf32> -> vector<64x16xi32>
    %c-16_i32 = arith.constant -16 : i32
    %24 = vector.broadcast %c-16_i32 : i32 to vector<64x16xi32>
    %25 = arith.andi %23, %24 : vector<64x16xi32>
    %26 = arith.ori %25, %21 : vector<64x16xi32>
    %cst_13 = arith.constant dense<2147483647> : vector<64xi32>
    %27 = vector.multi_reduction <minsi>, %26, %cst_13 [1] : vector<64x16xi32> to vector<64xi32>
    %28 = vector.shape_cast %27 : vector<64xi32> to vector<64x1xi32>
    %29 = vector.broadcast %28 : vector<64x1xi32> to vector<64x16xi32>
    %30 = arith.cmpi eq, %26, %29 : vector<64x16xi32>
    %c-16_i32_14 = arith.constant -16 : i32
    %31 = vector.broadcast %c-16_i32_14 : i32 to vector<64x1xi32>
    %32 = arith.andi %28, %31 : vector<64x1xi32>
    %33 = tpu.bitcast %32 : vector<64x1xi32> -> vector<64x1xf32>
    %cst_15 = arith.constant 1.000000e-10 : f32
    %34 = vector.broadcast %cst_15 : f32 to vector<64x1xf32>
    %35 = arith.maximumf %33, %34 : vector<64x1xf32>
    %36 = arith.extui %30 : vector<64x16xi1> to vector<64x16xi32>
    %37 = arith.sitofp %36 : vector<64x16xi32> to vector<64x16xf32>
    %38 = tpu.reciprocal %35 {approx = true} : vector<64x1xf32> -> vector<64x1xf32>
    %39 = vector.broadcast %38 : vector<64x1xf32> to vector<64x16xf32>
    %40 = arith.mulf %37, %39 : vector<64x16xf32>
    %41 = arith.addf %22, %40 : vector<64x16xf32>
    %c2147483647_i32 = arith.constant 2147483647 : i32
    %42 = vector.broadcast %c2147483647_i32 : i32 to vector<64x16xi32>
    %43 = arith.select %30, %42, %26 : vector<64x16xi1>, vector<64x16xi32>
    %cst_16 = arith.constant dense<2147483647> : vector<64xi32>
    %44 = vector.multi_reduction <minsi>, %43, %cst_16 [1] : vector<64x16xi32> to vector<64xi32>
    %45 = vector.shape_cast %44 : vector<64xi32> to vector<64x1xi32>
    %46 = vector.broadcast %45 : vector<64x1xi32> to vector<64x16xi32>
    %47 = arith.cmpi eq, %43, %46 : vector<64x16xi32>
    %c-16_i32_17 = arith.constant -16 : i32
    %48 = vector.broadcast %c-16_i32_17 : i32 to vector<64x1xi32>
    %49 = arith.andi %45, %48 : vector<64x1xi32>
    %50 = tpu.bitcast %49 : vector<64x1xi32> -> vector<64x1xf32>
    %cst_18 = arith.constant 1.000000e-10 : f32
    %51 = vector.broadcast %cst_18 : f32 to vector<64x1xf32>
    %52 = arith.maximumf %50, %51 : vector<64x1xf32>
    %53 = arith.extui %47 : vector<64x16xi1> to vector<64x16xi32>
    %54 = arith.sitofp %53 : vector<64x16xi32> to vector<64x16xf32>
    %55 = tpu.reciprocal %52 {approx = true} : vector<64x1xf32> -> vector<64x1xf32>
    %56 = vector.broadcast %55 : vector<64x1xf32> to vector<64x16xf32>
    %57 = arith.mulf %54, %56 : vector<64x16xf32>
    %58 = arith.addf %41, %57 : vector<64x16xf32>
    %c2147483647_i32_19 = arith.constant 2147483647 : i32
    %59 = vector.broadcast %c2147483647_i32_19 : i32 to vector<64x16xi32>
    %60 = arith.select %47, %59, %43 : vector<64x16xi1>, vector<64x16xi32>
    %cst_20 = arith.constant dense<2147483647> : vector<64xi32>
    %61 = vector.multi_reduction <minsi>, %60, %cst_20 [1] : vector<64x16xi32> to vector<64xi32>
    %62 = vector.shape_cast %61 : vector<64xi32> to vector<64x1xi32>
    %63 = vector.broadcast %62 : vector<64x1xi32> to vector<64x16xi32>
    %64 = arith.cmpi eq, %60, %63 : vector<64x16xi32>
    %c-16_i32_21 = arith.constant -16 : i32
    %65 = vector.broadcast %c-16_i32_21 : i32 to vector<64x1xi32>
    %66 = arith.andi %62, %65 : vector<64x1xi32>
    %67 = tpu.bitcast %66 : vector<64x1xi32> -> vector<64x1xf32>
    %cst_22 = arith.constant 1.000000e-10 : f32
    %68 = vector.broadcast %cst_22 : f32 to vector<64x1xf32>
    %69 = arith.maximumf %67, %68 : vector<64x1xf32>
    %70 = arith.extui %64 : vector<64x16xi1> to vector<64x16xi32>
    %71 = arith.sitofp %70 : vector<64x16xi32> to vector<64x16xf32>
    %72 = tpu.reciprocal %69 {approx = true} : vector<64x1xf32> -> vector<64x1xf32>
    %73 = vector.broadcast %72 : vector<64x1xf32> to vector<64x16xf32>
    %74 = arith.mulf %71, %73 : vector<64x16xf32>
    %75 = arith.addf %58, %74 : vector<64x16xf32>
    %cst_23 = arith.constant dense<0.000000e+00> : vector<64xf32>
    %76 = vector.multi_reduction <add>, %75, %cst_23 [1] : vector<64x16xf32> to vector<64xf32>
    %77 = vector.shape_cast %76 : vector<64xf32> to vector<64x1xf32>
    %78 = tpu.reciprocal %77 {approx = true} : vector<64x1xf32> -> vector<64x1xf32>
    %79 = vector.broadcast %78 : vector<64x1xf32> to vector<64x16xf32>
    %80 = arith.mulf %75, %79 : vector<64x16xf32>
    %cst_24 = arith.constant dense<0.000000e+00> : vector<32x64xf32>
    %81 = tpu.matmul %5, %80, %cst_24 {dimension_numbers = #tpu.dot_dimension_numbers<[1], [1], [0], [0], [0, 0, 1, 0], [], []>} : vector<32x16xf32>, vector<64x16xf32>, vector<32x64xf32> -> vector<32x64xf32>
    %82 = arith.truncf %81 : vector<32x64xf32> to vector<32x64xbf16>
    %c0_25 = arith.constant 0 : index
    %c0_26 = arith.constant 0 : index
    %c0_27 = arith.constant 0 : index
    %83 = vector.load %arg5[%c0_25, %c0_26, %c0_27] : memref<1x32x64xbf16, #tpu.memory_space<vmem>>, vector<1x32x64xbf16>
    %84 = vector.shape_cast %83 : vector<1x32x64xbf16> to vector<32x64xbf16>
    %85 = vector.shape_cast %82 : vector<32x64xbf16> to vector<1x32x64xbf16>
    tpu.vector_store %arg5[%c0_25, %c0_26, %c0_27], %85 {strides = array<i32>} : memref<1x32x64xbf16, #tpu.memory_space<vmem>>, vector<1x32x64xbf16>,
    return
  }
  func.func @transform_0(%arg0: i32, %arg1: i32) -> (i32, i32, i32) {
    %c0_i32 = arith.constant 0 : i32
    %c0_i32_0 = arith.constant 0 : i32
    return %arg0, %arg1, %c0_i32 : i32, i32, i32
  }
  func.func @transform_1(%arg0: i32, %arg1: i32) -> (i32, i32, i32) {
    %c0_i32 = arith.constant 0 : i32
    %c0_i32_0 = arith.constant 0 : i32
    %c0_i32_1 = arith.constant 0 : i32
    return %arg0, %c0_i32, %c0_i32_0 : i32, i32, i32
  }
  func.func @transform_2(%arg0: i32, %arg1: i32) -> (i32, i32, i32) {
    %c0_i32 = arith.constant 0 : i32
    %c0_i32_0 = arith.constant 0 : i32
    %c0_i32_1 = arith.constant 0 : i32
    return %arg0, %c0_i32, %c0_i32_0 : i32, i32, i32
  }
  func.func @transform_3(%arg0: i32, %arg1: i32) -> (i32, i32, i32) {
    %c0_i32 = arith.constant 0 : i32
    %c0_i32_0 = arith.constant 0 : i32
    return %arg0, %c0_i32, %arg1 : i32, i32, i32
  }
}

module attributes {stable_mosaic.version = 11 : i64} {
  func.func @_mlp_layer_kernel(%arg0: i32, %arg1: i32, %arg2: memref<1x16x64xf32, #tpu.memory_space<vmem>>, %arg3: memref<1x32x64xbf16, #tpu.memory_space<vmem>>, %arg4: memref<128x16xbf16, #tpu.memory_space<vmem>>, %arg5: memref<128x32xbf16, #tpu.memory_space<vmem>>, %arg6: memref<64x16xbf16, #tpu.memory_space<vmem>>, %arg7: memref<64x32xbf16, #tpu.memory_space<vmem>>, %arg8: memref<128x1xf32, #tpu.memory_space<vmem>>, %arg9: memref<64x1xf32, #tpu.memory_space<vmem>>, %arg10: memref<1x64x64xbf16, #tpu.memory_space<vmem>>, %arg11: memref<1x1x2x64xf32, #tpu.memory_space<vmem>>) attributes {dimension_semantics = [#tpu.dimension_semantics<parallel>, #tpu.dimension_semantics<parallel>], iteration_bounds = array<i64: 2, 1>, scalar_prefetch = 0 : i64, scratch_operands = 0 : i64, tpu.core_type = #tpu.core_type<tc>, window_params = [{transform_indices = @transform_0, window_bounds = array<i64: 1, 16, 64>}, {transform_indices = @transform_1, window_bounds = array<i64: 1, 32, 64>}, {pipeline_mode = #tpu.pipeline_mode<synchronous>, transform_indices = @transform_2, window_bounds = array<i64: 128, 16>}, {pipeline_mode = #tpu.pipeline_mode<synchronous>, transform_indices = @transform_3, window_bounds = array<i64: 128, 32>}, {pipeline_mode = #tpu.pipeline_mode<synchronous>, transform_indices = @transform_4, window_bounds = array<i64: 64, 16>}, {pipeline_mode = #tpu.pipeline_mode<synchronous>, transform_indices = @transform_5, window_bounds = array<i64: 64, 32>}, {pipeline_mode = #tpu.pipeline_mode<synchronous>, transform_indices = @transform_6, window_bounds = array<i64: 128, 1>}, {pipeline_mode = #tpu.pipeline_mode<synchronous>, transform_indices = @transform_7, window_bounds = array<i64: 64, 1>}, {transform_indices = @transform_8, window_bounds = array<i64: 1, 64, 64>}, {transform_indices = @transform_9, window_bounds = array<i64: 1, 1, 2, 64>}]} {
    %c0 = arith.constant 0 : index
    %c0_0 = arith.constant 0 : index
    %c0_1 = arith.constant 0 : index
    %0 = vector.load %arg2[%c0, %c0_0, %c0_1] : memref<1x16x64xf32, #tpu.memory_space<vmem>>, vector<1x16x64xf32>
    %1 = vector.shape_cast %0 : vector<1x16x64xf32> to vector<16x64xf32>
    %2 = arith.truncf %1 : vector<16x64xf32> to vector<16x64xbf16>
    %3 = arith.mulf %1, %1 : vector<16x64xf32>
    %4 = arith.truncf %3 : vector<16x64xf32> to vector<16x64xbf16>
    %c0_2 = arith.constant 0 : index
    %c0_3 = arith.constant 0 : index
    %5 = vector.load %arg4[%c0_2, %c0_3] : memref<128x16xbf16, #tpu.memory_space<vmem>>, vector<128x16xbf16>
    %cst = arith.constant dense<0.000000e+00> : vector<128x64xf32>
    %6 = tpu.matmul %5, %2, %cst {dimension_numbers = #tpu.dot_dimension_numbers<[1], [0], [0], [1], [0, 0, 1, 1], [], []>} : vector<128x16xbf16>, vector<16x64xbf16>, vector<128x64xf32> -> vector<128x64xf32>
    %c0_4 = arith.constant 0 : index
    %c0_5 = arith.constant 0 : index
    %7 = vector.load %arg6[%c0_4, %c0_5] : memref<64x16xbf16, #tpu.memory_space<vmem>>, vector<64x16xbf16>
    %cst_6 = arith.constant dense<0.000000e+00> : vector<64x64xf32>
    %8 = tpu.matmul %7, %4, %cst_6 {dimension_numbers = #tpu.dot_dimension_numbers<[1], [0], [0], [1], [0, 0, 1, 1], [], []>} : vector<64x16xbf16>, vector<16x64xbf16>, vector<64x64xf32> -> vector<64x64xf32>
    %c0_7 = arith.constant 0 : index
    %c0_8 = arith.constant 0 : index
    %c0_9 = arith.constant 0 : index
    %9 = vector.load %arg3[%c0_7, %c0_8, %c0_9] : memref<1x32x64xbf16, #tpu.memory_space<vmem>>, vector<1x32x64xbf16>
    %10 = vector.shape_cast %9 : vector<1x32x64xbf16> to vector<32x64xbf16>
    %11 = arith.extf %10 : vector<32x64xbf16> to vector<32x64xf32>
    %12 = arith.truncf %11 : vector<32x64xf32> to vector<32x64xbf16>
    %13 = arith.mulf %11, %11 : vector<32x64xf32>
    %14 = arith.truncf %13 : vector<32x64xf32> to vector<32x64xbf16>
    %c0_10 = arith.constant 0 : index
    %c0_11 = arith.constant 0 : index
    %15 = vector.load %arg5[%c0_10, %c0_11] : memref<128x32xbf16, #tpu.memory_space<vmem>>, vector<128x32xbf16>
    %cst_12 = arith.constant dense<0.000000e+00> : vector<128x64xf32>
    %16 = tpu.matmul %15, %12, %cst_12 {dimension_numbers = #tpu.dot_dimension_numbers<[1], [0], [0], [1], [0, 0, 1, 1], [], []>} : vector<128x32xbf16>, vector<32x64xbf16>, vector<128x64xf32> -> vector<128x64xf32>
    %c0_13 = arith.constant 0 : index
    %c0_14 = arith.constant 0 : index
    %17 = vector.load %arg7[%c0_13, %c0_14] : memref<64x32xbf16, #tpu.memory_space<vmem>>, vector<64x32xbf16>
    %cst_15 = arith.constant dense<0.000000e+00> : vector<64x64xf32>
    %18 = tpu.matmul %17, %14, %cst_15 {dimension_numbers = #tpu.dot_dimension_numbers<[1], [0], [0], [1], [0, 0, 1, 1], [], []>} : vector<64x32xbf16>, vector<32x64xbf16>, vector<64x64xf32> -> vector<64x64xf32>
    %19 = arith.addf %6, %16 : vector<128x64xf32>
    %20 = arith.addf %8, %18 : vector<64x64xf32>
    %c0_16 = arith.constant 0 : index
    %c0_17 = arith.constant 0 : index
    %21 = vector.load %arg8[%c0_16, %c0_17] : memref<128x1xf32, #tpu.memory_space<vmem>>, vector<128x1xf32>
    %22 = vector.broadcast %21 : vector<128x1xf32> to vector<128x64xf32>
    %23 = arith.addf %19, %22 : vector<128x64xf32>
    %c0_18 = arith.constant 0 : index
    %c0_19 = arith.constant 0 : index
    %24 = vector.load %arg9[%c0_18, %c0_19] : memref<64x1xf32, #tpu.memory_space<vmem>>, vector<64x1xf32>
    %25 = vector.broadcast %24 : vector<64x1xf32> to vector<64x64xf32>
    %26 = arith.addf %20, %25 : vector<64x64xf32>
    %27 = vector.extract_strided_slice %23 {offsets = [0, 0], sizes = [64, 64], strides = [1, 1]} : vector<128x64xf32> to vector<64x64xf32>
    %28 = vector.extract_strided_slice %23 {offsets = [64, 0], sizes = [64, 64], strides = [1, 1]} : vector<128x64xf32> to vector<64x64xf32>
    %29 = arith.mulf %27, %28 : vector<64x64xf32>
    %30 = arith.addf %29, %26 : vector<64x64xf32>
    %31 = arith.truncf %30 : vector<64x64xf32> to vector<64x64xbf16>
    %c0_20 = arith.constant 0 : index
    %c0_21 = arith.constant 0 : index
    %c0_22 = arith.constant 0 : index
    %32 = vector.load %arg10[%c0_20, %c0_21, %c0_22] : memref<1x64x64xbf16, #tpu.memory_space<vmem>>, vector<1x64x64xbf16>
    %33 = vector.shape_cast %32 : vector<1x64x64xbf16> to vector<64x64xbf16>
    %34 = vector.shape_cast %31 : vector<64x64xbf16> to vector<1x64x64xbf16>
    tpu.vector_store %arg10[%c0_20, %c0_21, %c0_22], %34 {strides = array<i32>} : memref<1x64x64xbf16, #tpu.memory_space<vmem>>, vector<1x64x64xbf16>,
    %cst_23 = arith.constant 1.000000e+00 : f32
    %35 = vector.broadcast %cst_23 : f32 to vector<1x64xf32>
    %cst_24 = arith.constant dense<0.000000e+00> : vector<1x64xf32>
    %36 = tpu.matmul %35, %30, %cst_24 {dimension_numbers = #tpu.dot_dimension_numbers<[1], [1], [0], [0], [0, 0, 1, 0], [], []>} : vector<1x64xf32>, vector<64x64xf32>, vector<1x64xf32> -> vector<1x64xf32>
    %37 = arith.mulf %30, %30 : vector<64x64xf32>
    %cst_25 = arith.constant dense<0.000000e+00> : vector<1x64xf32>
    %38 = tpu.matmul %35, %37, %cst_25 {dimension_numbers = #tpu.dot_dimension_numbers<[1], [1], [0], [0], [0, 0, 1, 0], [], []>} : vector<1x64xf32>, vector<64x64xf32>, vector<1x64xf32> -> vector<1x64xf32>
    %39 = tpu.concatenate %36, %38 in 0 : vector<1x64xf32>, vector<1x64xf32> -> vector<2x64xf32>
    %c0_26 = arith.constant 0 : index
    %c0_27 = arith.constant 0 : index
    %c0_28 = arith.constant 0 : index
    %c0_29 = arith.constant 0 : index
    %40 = vector.load %arg11[%c0_26, %c0_27, %c0_28, %c0_29] : memref<1x1x2x64xf32, #tpu.memory_space<vmem>>, vector<1x1x2x64xf32>
    %41 = vector.shape_cast %40 : vector<1x1x2x64xf32> to vector<2x64xf32>
    %42 = vector.shape_cast %39 : vector<2x64xf32> to vector<1x1x2x64xf32>
    tpu.vector_store %arg11[%c0_26, %c0_27, %c0_28, %c0_29], %42 {strides = array<i32>} : memref<1x1x2x64xf32, #tpu.memory_space<vmem>>, vector<1x1x2x64xf32>,
    return
  }
  func.func @transform_0(%arg0: i32, %arg1: i32) -> (i32, i32, i32) {
    %c0_i32 = arith.constant 0 : i32
    %c0_i32_0 = arith.constant 0 : i32
    return %arg0, %c0_i32, %arg1 : i32, i32, i32
  }
  func.func @transform_1(%arg0: i32, %arg1: i32) -> (i32, i32, i32) {
    %c0_i32 = arith.constant 0 : i32
    %c0_i32_0 = arith.constant 0 : i32
    return %arg0, %c0_i32, %arg1 : i32, i32, i32
  }
  func.func @transform_2(%arg0: i32, %arg1: i32) -> (i32, i32) {
    %c0_i32 = arith.constant 0 : i32
    %c0_i32_0 = arith.constant 0 : i32
    %c0_i32_1 = arith.constant 0 : i32
    return %c0_i32, %c0_i32_0 : i32, i32
  }
  func.func @transform_3(%arg0: i32, %arg1: i32) -> (i32, i32) {
    %c0_i32 = arith.constant 0 : i32
    %c0_i32_0 = arith.constant 0 : i32
    %c0_i32_1 = arith.constant 0 : i32
    return %c0_i32, %c0_i32_0 : i32, i32
  }
  func.func @transform_4(%arg0: i32, %arg1: i32) -> (i32, i32) {
    %c0_i32 = arith.constant 0 : i32
    %c0_i32_0 = arith.constant 0 : i32
    %c0_i32_1 = arith.constant 0 : i32
    return %c0_i32, %c0_i32_0 : i32, i32
  }
  func.func @transform_5(%arg0: i32, %arg1: i32) -> (i32, i32) {
    %c0_i32 = arith.constant 0 : i32
    %c0_i32_0 = arith.constant 0 : i32
    %c0_i32_1 = arith.constant 0 : i32
    return %c0_i32, %c0_i32_0 : i32, i32
  }
  func.func @transform_6(%arg0: i32, %arg1: i32) -> (i32, i32) {
    %c0_i32 = arith.constant 0 : i32
    %c0_i32_0 = arith.constant 0 : i32
    %c0_i32_1 = arith.constant 0 : i32
    return %c0_i32, %c0_i32_0 : i32, i32
  }
  func.func @transform_7(%arg0: i32, %arg1: i32) -> (i32, i32) {
    %c0_i32 = arith.constant 0 : i32
    %c0_i32_0 = arith.constant 0 : i32
    %c0_i32_1 = arith.constant 0 : i32
    return %c0_i32, %c0_i32_0 : i32, i32
  }
  func.func @transform_8(%arg0: i32, %arg1: i32) -> (i32, i32, i32) {
    %c0_i32 = arith.constant 0 : i32
    %c0_i32_0 = arith.constant 0 : i32
    return %arg0, %c0_i32, %arg1 : i32, i32, i32
  }
  func.func @transform_9(%arg0: i32, %arg1: i32) -> (i32, i32, i32, i32) {
    %c0_i32 = arith.constant 0 : i32
    %c0_i32_0 = arith.constant 0 : i32
    %c0_i32_1 = arith.constant 0 : i32
    return %arg0, %arg1, %c0_i32, %c0_i32_0 : i32, i32, i32, i32
  }
}

module attributes {stable_mosaic.version = 11 : i64} {
  func.func @_mlp_layer_kernel(%arg0: i32, %arg1: i32, %arg2: memref<1x64x64xbf16, #tpu.memory_space<vmem>>, %arg3: memref<64x1xf32, #tpu.memory_space<vmem>>, %arg4: memref<64x1xf32, #tpu.memory_space<vmem>>, %arg5: memref<64x64xbf16, #tpu.memory_space<vmem>>, %arg6: memref<32x64xbf16, #tpu.memory_space<vmem>>, %arg7: memref<64x1xf32, #tpu.memory_space<vmem>>, %arg8: memref<32x1xf32, #tpu.memory_space<vmem>>, %arg9: memref<1x32x64xbf16, #tpu.memory_space<vmem>>, %arg10: memref<1x1x2x32xf32, #tpu.memory_space<vmem>>) attributes {dimension_semantics = [#tpu.dimension_semantics<parallel>, #tpu.dimension_semantics<parallel>], iteration_bounds = array<i64: 2, 1>, scalar_prefetch = 0 : i64, scratch_operands = 0 : i64, tpu.core_type = #tpu.core_type<tc>, window_params = [{transform_indices = @transform_0, window_bounds = array<i64: 1, 64, 64>}, {pipeline_mode = #tpu.pipeline_mode<synchronous>, transform_indices = @transform_1, window_bounds = array<i64: 64, 1>}, {pipeline_mode = #tpu.pipeline_mode<synchronous>, transform_indices = @transform_2, window_bounds = array<i64: 64, 1>}, {pipeline_mode = #tpu.pipeline_mode<synchronous>, transform_indices = @transform_3, window_bounds = array<i64: 64, 64>}, {pipeline_mode = #tpu.pipeline_mode<synchronous>, transform_indices = @transform_4, window_bounds = array<i64: 32, 64>}, {pipeline_mode = #tpu.pipeline_mode<synchronous>, transform_indices = @transform_5, window_bounds = array<i64: 64, 1>}, {pipeline_mode = #tpu.pipeline_mode<synchronous>, transform_indices = @transform_6, window_bounds = array<i64: 32, 1>}, {transform_indices = @transform_7, window_bounds = array<i64: 1, 32, 64>}, {transform_indices = @transform_8, window_bounds = array<i64: 1, 1, 2, 32>}]} {
    %c0 = arith.constant 0 : index
    %c0_0 = arith.constant 0 : index
    %c0_1 = arith.constant 0 : index
    %0 = vector.load %arg2[%c0, %c0_0, %c0_1] : memref<1x64x64xbf16, #tpu.memory_space<vmem>>, vector<1x64x64xbf16>
    %1 = vector.shape_cast %0 : vector<1x64x64xbf16> to vector<64x64xbf16>
    %2 = arith.extf %1 : vector<64x64xbf16> to vector<64x64xf32>
    %c0_2 = arith.constant 0 : index
    %c0_3 = arith.constant 0 : index
    %3 = vector.load %arg3[%c0_2, %c0_3] : memref<64x1xf32, #tpu.memory_space<vmem>>, vector<64x1xf32>
    %4 = vector.broadcast %3 : vector<64x1xf32> to vector<64x64xf32>
    %5 = arith.mulf %2, %4 : vector<64x64xf32>
    %c0_4 = arith.constant 0 : index
    %c0_5 = arith.constant 0 : index
    %6 = vector.load %arg4[%c0_4, %c0_5] : memref<64x1xf32, #tpu.memory_space<vmem>>, vector<64x1xf32>
    %7 = vector.broadcast %6 : vector<64x1xf32> to vector<64x64xf32>
    %8 = arith.addf %5, %7 : vector<64x64xf32>
    %cst = arith.constant 0.000000e+00 : f32
    %9 = vector.broadcast %cst : f32 to vector<64x64xf32>
    %10 = arith.maximumf %8, %9 : vector<64x64xf32>
    %11 = arith.truncf %10 : vector<64x64xf32> to vector<64x64xbf16>
    %12 = arith.mulf %10, %10 : vector<64x64xf32>
    %13 = arith.truncf %12 : vector<64x64xf32> to vector<64x64xbf16>
    %c0_6 = arith.constant 0 : index
    %c0_7 = arith.constant 0 : index
    %14 = vector.load %arg5[%c0_6, %c0_7] : memref<64x64xbf16, #tpu.memory_space<vmem>>, vector<64x64xbf16>
    %cst_8 = arith.constant dense<0.000000e+00> : vector<64x64xf32>
    %15 = tpu.matmul %14, %11, %cst_8 {dimension_numbers = #tpu.dot_dimension_numbers<[1], [0], [0], [1], [0, 0, 1, 1], [], []>} : vector<64x64xbf16>, vector<64x64xbf16>, vector<64x64xf32> -> vector<64x64xf32>
    %c0_9 = arith.constant 0 : index
    %c0_10 = arith.constant 0 : index
    %16 = vector.load %arg6[%c0_9, %c0_10] : memref<32x64xbf16, #tpu.memory_space<vmem>>, vector<32x64xbf16>
    %cst_11 = arith.constant dense<0.000000e+00> : vector<32x64xf32>
    %17 = tpu.matmul %16, %13, %cst_11 {dimension_numbers = #tpu.dot_dimension_numbers<[1], [0], [0], [1], [0, 0, 1, 1], [], []>} : vector<32x64xbf16>, vector<64x64xbf16>, vector<32x64xf32> -> vector<32x64xf32>
    %c0_12 = arith.constant 0 : index
    %c0_13 = arith.constant 0 : index
    %18 = vector.load %arg7[%c0_12, %c0_13] : memref<64x1xf32, #tpu.memory_space<vmem>>, vector<64x1xf32>
    %19 = vector.broadcast %18 : vector<64x1xf32> to vector<64x64xf32>
    %20 = arith.addf %15, %19 : vector<64x64xf32>
    %c0_14 = arith.constant 0 : index
    %c0_15 = arith.constant 0 : index
    %21 = vector.load %arg8[%c0_14, %c0_15] : memref<32x1xf32, #tpu.memory_space<vmem>>, vector<32x1xf32>
    %22 = vector.broadcast %21 : vector<32x1xf32> to vector<32x64xf32>
    %23 = arith.addf %17, %22 : vector<32x64xf32>
    %24 = vector.extract_strided_slice %20 {offsets = [0, 0], sizes = [32, 64], strides = [1, 1]} : vector<64x64xf32> to vector<32x64xf32>
    %25 = vector.extract_strided_slice %20 {offsets = [32, 0], sizes = [32, 64], strides = [1, 1]} : vector<64x64xf32> to vector<32x64xf32>
    %26 = arith.mulf %24, %25 : vector<32x64xf32>
    %27 = arith.addf %26, %23 : vector<32x64xf32>
    %28 = arith.truncf %27 : vector<32x64xf32> to vector<32x64xbf16>
    %c0_16 = arith.constant 0 : index
    %c0_17 = arith.constant 0 : index
    %c0_18 = arith.constant 0 : index
    %29 = vector.load %arg9[%c0_16, %c0_17, %c0_18] : memref<1x32x64xbf16, #tpu.memory_space<vmem>>, vector<1x32x64xbf16>
    %30 = vector.shape_cast %29 : vector<1x32x64xbf16> to vector<32x64xbf16>
    %31 = vector.shape_cast %28 : vector<32x64xbf16> to vector<1x32x64xbf16>
    tpu.vector_store %arg9[%c0_16, %c0_17, %c0_18], %31 {strides = array<i32>} : memref<1x32x64xbf16, #tpu.memory_space<vmem>>, vector<1x32x64xbf16>,
    %cst_19 = arith.constant 1.000000e+00 : f32
    %32 = vector.broadcast %cst_19 : f32 to vector<1x64xf32>
    %cst_20 = arith.constant dense<0.000000e+00> : vector<1x32xf32>
    %33 = tpu.matmul %32, %27, %cst_20 {dimension_numbers = #tpu.dot_dimension_numbers<[1], [1], [0], [0], [0, 0, 1, 0], [], []>} : vector<1x64xf32>, vector<32x64xf32>, vector<1x32xf32> -> vector<1x32xf32>
    %34 = arith.mulf %27, %27 : vector<32x64xf32>
    %cst_21 = arith.constant dense<0.000000e+00> : vector<1x32xf32>
    %35 = tpu.matmul %32, %34, %cst_21 {dimension_numbers = #tpu.dot_dimension_numbers<[1], [1], [0], [0], [0, 0, 1, 0], [], []>} : vector<1x64xf32>, vector<32x64xf32>, vector<1x32xf32> -> vector<1x32xf32>
    %36 = tpu.concatenate %33, %35 in 0 : vector<1x32xf32>, vector<1x32xf32> -> vector<2x32xf32>
    %c0_22 = arith.constant 0 : index
    %c0_23 = arith.constant 0 : index
    %c0_24 = arith.constant 0 : index
    %c0_25 = arith.constant 0 : index
    %37 = vector.load %arg10[%c0_22, %c0_23, %c0_24, %c0_25] : memref<1x1x2x32xf32, #tpu.memory_space<vmem>>, vector<1x1x2x32xf32>
    %38 = vector.shape_cast %37 : vector<1x1x2x32xf32> to vector<2x32xf32>
    %39 = vector.shape_cast %36 : vector<2x32xf32> to vector<1x1x2x32xf32>
    tpu.vector_store %arg10[%c0_22, %c0_23, %c0_24, %c0_25], %39 {strides = array<i32>} : memref<1x1x2x32xf32, #tpu.memory_space<vmem>>, vector<1x1x2x32xf32>,
    return
  }
  func.func @transform_0(%arg0: i32, %arg1: i32) -> (i32, i32, i32) {
    %c0_i32 = arith.constant 0 : i32
    %c0_i32_0 = arith.constant 0 : i32
    return %arg0, %c0_i32, %arg1 : i32, i32, i32
  }
  func.func @transform_1(%arg0: i32, %arg1: i32) -> (i32, i32) {
    %c0_i32 = arith.constant 0 : i32
    %c0_i32_0 = arith.constant 0 : i32
    %c0_i32_1 = arith.constant 0 : i32
    return %c0_i32, %c0_i32_0 : i32, i32
  }
  func.func @transform_2(%arg0: i32, %arg1: i32) -> (i32, i32) {
    %c0_i32 = arith.constant 0 : i32
    %c0_i32_0 = arith.constant 0 : i32
    %c0_i32_1 = arith.constant 0 : i32
    return %c0_i32, %c0_i32_0 : i32, i32
  }
  func.func @transform_3(%arg0: i32, %arg1: i32) -> (i32, i32) {
    %c0_i32 = arith.constant 0 : i32
    %c0_i32_0 = arith.constant 0 : i32
    %c0_i32_1 = arith.constant 0 : i32
    return %c0_i32, %c0_i32_0 : i32, i32
  }
  func.func @transform_4(%arg0: i32, %arg1: i32) -> (i32, i32) {
    %c0_i32 = arith.constant 0 : i32
    %c0_i32_0 = arith.constant 0 : i32
    %c0_i32_1 = arith.constant 0 : i32
    return %c0_i32, %c0_i32_0 : i32, i32
  }
  func.func @transform_5(%arg0: i32, %arg1: i32) -> (i32, i32) {
    %c0_i32 = arith.constant 0 : i32
    %c0_i32_0 = arith.constant 0 : i32
    %c0_i32_1 = arith.constant 0 : i32
    return %c0_i32, %c0_i32_0 : i32, i32
  }
  func.func @transform_6(%arg0: i32, %arg1: i32) -> (i32, i32) {
    %c0_i32 = arith.constant 0 : i32
    %c0_i32_0 = arith.constant 0 : i32
    %c0_i32_1 = arith.constant 0 : i32
    return %c0_i32, %c0_i32_0 : i32, i32
  }
  func.func @transform_7(%arg0: i32, %arg1: i32) -> (i32, i32, i32) {
    %c0_i32 = arith.constant 0 : i32
    %c0_i32_0 = arith.constant 0 : i32
    return %arg0, %c0_i32, %arg1 : i32, i32, i32
  }
  func.func @transform_8(%arg0: i32, %arg1: i32) -> (i32, i32, i32, i32) {
    %c0_i32 = arith.constant 0 : i32
    %c0_i32_0 = arith.constant 0 : i32
    %c0_i32_1 = arith.constant 0 : i32
    return %arg0, %arg1, %c0_i32, %c0_i32_0 : i32, i32, i32, i32
  }
}

module attributes {stable_mosaic.version = 11 : i64} {
  func.func @_bn_relu_kernel(%arg0: i32, %arg1: i32, %arg2: memref<1x32x64xbf16, #tpu.memory_space<vmem>>, %arg3: memref<32x1xf32, #tpu.memory_space<vmem>>, %arg4: memref<32x1xf32, #tpu.memory_space<vmem>>, %arg5: memref<1x32x64xf32, #tpu.memory_space<vmem>>) attributes {dimension_semantics = [#tpu.dimension_semantics<parallel>, #tpu.dimension_semantics<parallel>], iteration_bounds = array<i64: 2, 1>, scalar_prefetch = 0 : i64, scratch_operands = 0 : i64, tpu.core_type = #tpu.core_type<tc>, window_params = [{transform_indices = @transform_0, window_bounds = array<i64: 1, 32, 64>}, {pipeline_mode = #tpu.pipeline_mode<synchronous>, transform_indices = @transform_1, window_bounds = array<i64: 32, 1>}, {pipeline_mode = #tpu.pipeline_mode<synchronous>, transform_indices = @transform_2, window_bounds = array<i64: 32, 1>}, {transform_indices = @transform_3, window_bounds = array<i64: 1, 32, 64>}]} {
    %c0 = arith.constant 0 : index
    %c0_0 = arith.constant 0 : index
    %c0_1 = arith.constant 0 : index
    %0 = vector.load %arg2[%c0, %c0_0, %c0_1] : memref<1x32x64xbf16, #tpu.memory_space<vmem>>, vector<1x32x64xbf16>
    %1 = vector.shape_cast %0 : vector<1x32x64xbf16> to vector<32x64xbf16>
    %2 = arith.extf %1 : vector<32x64xbf16> to vector<32x64xf32>
    %c0_2 = arith.constant 0 : index
    %c0_3 = arith.constant 0 : index
    %3 = vector.load %arg3[%c0_2, %c0_3] : memref<32x1xf32, #tpu.memory_space<vmem>>, vector<32x1xf32>
    %4 = vector.broadcast %3 : vector<32x1xf32> to vector<32x64xf32>
    %5 = arith.mulf %2, %4 : vector<32x64xf32>
    %c0_4 = arith.constant 0 : index
    %c0_5 = arith.constant 0 : index
    %6 = vector.load %arg4[%c0_4, %c0_5] : memref<32x1xf32, #tpu.memory_space<vmem>>, vector<32x1xf32>
    %7 = vector.broadcast %6 : vector<32x1xf32> to vector<32x64xf32>
    %8 = arith.addf %5, %7 : vector<32x64xf32>
    %cst = arith.constant 0.000000e+00 : f32
    %9 = vector.broadcast %cst : f32 to vector<32x64xf32>
    %10 = arith.maximumf %8, %9 : vector<32x64xf32>
    %c0_6 = arith.constant 0 : index
    %c0_7 = arith.constant 0 : index
    %c0_8 = arith.constant 0 : index
    %11 = vector.load %arg5[%c0_6, %c0_7, %c0_8] : memref<1x32x64xf32, #tpu.memory_space<vmem>>, vector<1x32x64xf32>
    %12 = vector.shape_cast %11 : vector<1x32x64xf32> to vector<32x64xf32>
    %13 = vector.shape_cast %10 : vector<32x64xf32> to vector<1x32x64xf32>
    tpu.vector_store %arg5[%c0_6, %c0_7, %c0_8], %13 {strides = array<i32>} : memref<1x32x64xf32, #tpu.memory_space<vmem>>, vector<1x32x64xf32>,
    return
  }
  func.func @transform_0(%arg0: i32, %arg1: i32) -> (i32, i32, i32) {
    %c0_i32 = arith.constant 0 : i32
    %c0_i32_0 = arith.constant 0 : i32
    return %arg0, %c0_i32, %arg1 : i32, i32, i32
  }
  func.func @transform_1(%arg0: i32, %arg1: i32) -> (i32, i32) {
    %c0_i32 = arith.constant 0 : i32
    %c0_i32_0 = arith.constant 0 : i32
    %c0_i32_1 = arith.constant 0 : i32
    return %c0_i32, %c0_i32_0 : i32, i32
  }
  func.func @transform_2(%arg0: i32, %arg1: i32) -> (i32, i32) {
    %c0_i32 = arith.constant 0 : i32
    %c0_i32_0 = arith.constant 0 : i32
    %c0_i32_1 = arith.constant 0 : i32
    return %c0_i32, %c0_i32_0 : i32, i32
  }
  func.func @transform_3(%arg0: i32, %arg1: i32) -> (i32, i32, i32) {
    %c0_i32 = arith.constant 0 : i32
    %c0_i32_0 = arith.constant 0 : i32
    return %arg0, %c0_i32, %arg1 : i32, i32, i32
  }
}

</mosaic_0001>

<bundles_post_ra>
// kernel: qpointnet_feature_propagation.7
= control target key start
LH: loop header
LB: loop body
LE: loop exit
PB: predicated region body
PF: predicated region fallthrough
CT: control target
= control target key end

     0   :  { %8 = vsyncpa [#allocation3], 0  ;;  %s692_s0 = inlined_call_operand.vmem [shape: bf16[2,32,64], index: 0, kind: input, shape index: {}]   ;;  %s693_s1 = inlined_call_operand.vmem [shape: f32[32,1], index: 1, kind: input, shape index: {}]   ;;  %s694_s2 = inlined_call_operand.vmem [shape: f32[32,1], index: 2, kind: input, shape index: {}]   ;;  %s695_s3 = inlined_call_operand.hbm [shape: f32[2,32,64], index: 3, kind: output, shape index: {}]  }
   0x1   :  { %10 = vsyncpa [#allocation3 + $0x1], 0  ;;  %s546_s12 = smov 0   ;;  %s548_s13 = smov 0  }
   0x2   :  { %s550_s14 = smov 0   ;;  %s552_s15 = smov 0  }
   0x3   :  { %s554_s16 = smov 0   ;;  %s556_s17 = smov 0  }
   0x4 LB: > { %s360_s18 = sadd.s32 4294967295, %s520_s17   ;;  %s361_s19 = sadd.s32 4294967294, %s520_s17   ;;  %s520_s17 = sphi %s556_s17, %s16_s17   ;;  %s516_s16 = sphi %s554_s16, %s702_s16   ;;  %s512_s15 = sphi %s552_s15, %s701_s15   ;;  %s508_s14 = sphi %s550_s14, %s700_s14   ;;  %s504_s13 = sphi %s548_s13, %s699_s13   ;;  %s500_s12 = sphi %s546_s12, %s698_s12  }
   0x5   : > { %s28_s20 = sadd.s32 1, %s516_s16  ;;  %s107_s21 = sadd.s32 1, %s508_s14 }
   0x6   : > { %p30_p0 = scmp.ge.s32.totalorder %s28_s20, 2  ;;  %p117_p1 = scmp.ne.s32.totalorder %s508_s14, %s504_s13 }
   0x7   : > { %p118_p2 = scmp.eq.s32.totalorder %s360_s18, 1  ;;  %p123_p3 = scmp.ne.s32.totalorder %s504_s13, %s500_s12 }
   0x8   : > { %s704_s20 = smov (%p30_p0, %s28_s20), 0  ;;  %p124_p5 = scmp.eq.s32.totalorder %s361_s19, 1 }
   0x9   : > { %p586_p4 = por %p118_p2, %p117_p1  ;;  %s102_s23 = ssub.s32 %s516_s16, %s704_s20 }
   0xa   : > { %p364_p6 = scmp.ge.s32.totalorder %s520_s17, 1  ;;  %p105_p7 = scmp.eq.s32.totalorder %s102_s23, 0 }
   0xb   : > { %p593_p8 = por %p124_p5, %p123_p3  ;;  %p159_p9 = scmp.lt.s32.totalorder %s520_s17, 3 }
   0xc   : > { %s599_s25 = scalar_select %p105_p7, %s508_s14, %s107_s21  }
   0xd   : > { %p160_p10 = pnand %p364_p6, %p159_p9 }
   0xe   : > { %p186_p11 = scmp.lt.s32.totalorder (!%p160_p10), %s512_s15, 1  ;;  %s183_s30 = sand.u32 (!%p160_p10), 1, %s504_s13  }
   0xf   : > { %163 = sbr.rel (%p160_p10) target bundleno = 176 (0xb0), region = 32  ;;  %s365_s4 = sshll.u32 (!%p160_p10), %s183_s30, 5 }
  0x10   : > { %s185_s5 = scalar_lea.vmem (!%p160_p10), [#allocation2], %s365_s4  ;;  %s374_s7 = sshll.u32 (!%p160_p10), %s512_s15, 9 }
  0x11   : > { %s282_s6 = sshll.u32 (!%p160_p10), %s185_s5, 4  ;;  %s641_s10 = scalar_lea.hbm (!%p160_p10), %s695_s3, %s374_s7  ;;  %s636_s6 = int_to_ptr.vmem [resolvable:$true] %s282_s6 }
  0x12   : > { %s444_s11 = scalar_lea.vmem (!%p160_p10), %s636_s6, 512  ;;  %s523_s18 = smov (!%p160_p10), [#allocation2]  }
  0x13   : > { %p445_p12 = scmp.ne.s32.totalorder (!%p160_p10), %s636_s6, %s444_s11  ;;  %s448_s19 = sshll.u32 (!%p160_p10), %s523_s18, 4  ;;  %s449_s19 = int_to_ptr.vmem [resolvable:$false] %s448_s19 }
  0x14   : > { %v204_v0 = vld [vmem:[%s693_s1 + $0x10] sm:$0xff]  ;;  %v202_v1 = vld [vmem:[%s693_s1] sm:$0xff]  ;;  %v522_v2 = vmov 0   ;;  %v205_v3 = vld [vmem:[%s693_s1 + $0x18] sm:$0xff]  ;;  %s187_s23 = scalar_select %p186_p11, %s512_s15, 1  ;;  %vm262_vm0 = vcmask 523264  }
  0x15   : > { %443 = vset.pattern.permute.xlu1 %v522_v2  ;;  %442 = vset.pattern.permute.xlu0 %v522_v2  ;;  %v203_v4 = vld [vmem:[%s693_s1 + $0x8] sm:$0xff]  ;;  %v230_v6 = vld [vmem:[%s694_s2] sm:$0xff]  ;;  %v233_v7 = vld [vmem:[%s694_s2 + $0x18] sm:$0xff]  ;;  %s647_s15 = scalar_lea.sflag [#allocation3], %s183_s30  ;;  %p446_p13 = pnand %p445_p12, %p586_p4 }
  0x16   : > { %218 = vperm.xlu1 %443, %v204_v0   ;;  %208 = vperm.xlu0 %442, %v202_v1   ;;  %v231_v5 = vld [vmem:[%s694_s2 + $0x8] sm:$0xff]  ;;  %v232_v8 = vld [vmem:[%s694_s2 + $0x10] sm:$0xff]  ;;  %s373_s26 = sshll.u32 %s187_s23, 4  ;;  %s450_s21 = scalar_lea.vmem %s449_s19, 1024 }
  0x17   : > { %s193_s29 = scalar_lea.vmem %s692_s0, %s373_s26  ;;  %p447_p0 = pneg %p446_p13 }
  0x18   : > { %v376_v11 = vld [vmem:[%s193_s29] sm:$0xff]   ;;  %v383_v14 = vld [vmem:[%s193_s29 + $0x8] sm:$0xff]   ;;  %p451_p1 = scmp.lt.s32.totalorder %s636_s6, %s449_s19  ;;  %p452_p2 = scmp.lt.s32.totalorder %s450_s21, %s444_s11 }
  0x19   : > { %v377_v12 = vunpack.c.l.bf16 %v376_v11  ;;  %v378_v13 = vunpack.c.h.bf16 %v376_v11  ;;  %v381_v17 = vunpack.c.l.bf16 %v383_v14  ;;  %v382_v19 = vunpack.c.h.bf16 %v383_v14 }
  0x1a   : > { %223 = vperm.xlu1 %443, %v205_v3   ;;  %213 = vperm.xlu0 %442, %v203_v4   ;;  %p453_p3 = por %p452_p2, %p451_p1 }
  0x1c   : > { %p454_p5 = pnand %p453_p3, %p447_p0 }
  0x1e   : > { %241 = vperm.xlu1 %443, %v231_v5   ;;  %236 = vperm.xlu0 %442, %v230_v6  }
  0x22   : > { %251 = vperm.xlu1 %443, %v233_v7   ;;  %246 = vperm.xlu0 %442, %v232_v8  }
  0x91   : > { %v219_v9 = vpop.permute.xlu1 %218  ;;  %v209_v10 = vpop.permute.xlu0 %208 }
  0x92   : > { %v226_v18 = vmul.f32 %v377_v12, %v209_v10  ;;  %v228_v25 = vmul.f32 %v381_v17, %v219_v9 }
  0x95   : > { %v224_v15 = vpop.permute.xlu1 %223  ;;  %v214_v16 = vpop.permute.xlu0 %213 }
  0x96   : > { %v227_v20 = vmul.f32 %v378_v13, %v214_v16  ;;  %v229_v26 = vmul.f32 %v382_v19, %v224_v15 }
  0x99   : > { %v242_v21 = vpop.permute.xlu1 %241  ;;  %v237_v22 = vpop.permute.xlu0 %236 }
  0x9a   : > { %v255_v23 = vadd.f32 %v242_v21, %v227_v20  ;;  %v254_v24 = vadd.f32 %v237_v22, %v226_v18 }
  0x9c   : > { %v259_v27 = vmax.f32 %v255_v23, 0.0  ;;  %v258_v28 = vmax.f32 %v254_v24, 0.0 }
  0x9d   : > { %v252_v29 = vpop.permute.xlu1 %251  ;;  %v247_v30 = vpop.permute.xlu0 %246 }
  0x9e   : > { %264 = vst.msk [vmem:[%s185_s5 + $0x8] sm:$0xff] %vm262_vm0, %v259_v27  ;;  %263 = vst.msk [vmem:[%s185_s5] sm:$0xff] %vm262_vm0, %v258_v28  ;;  %v257_v31 = vadd.f32 %v252_v29, %v229_v26  ;;  %v256_v32 = vadd.f32 %v247_v30, %v228_v25 }
  0xa0   : > { %v261_v33 = vmax.f32 %v257_v31, 0.0  ;;  %v260_v34 = vmax.f32 %v256_v32, 0.0 }
  0xa2   : > { %266 = vst.msk [vmem:[%s185_s5 + $0x18] sm:$0xff] %vm262_vm0, %v261_v33  ;;  %265 = vst.msk [vmem:[%s185_s5 + $0x10] sm:$0xff] %vm262_vm0, %v260_v34 }
  0xa3   : > { %457 = shalt.err (!%p454_p5)
}
  0xa4   : > { %s458_s23 = scalar_lea.hbm %s641_s10, 512  ;;  %s462_s28 = scalar_lea.hbm %s695_s3, 1024 }
  0xa5   : > { %p459_p6 = scmp.ne.s32.totalorder %s641_s10, %s458_s23  ;;  %p463_p10 = scmp.lt.s32.totalorder %s641_s10, %s695_s3 }
  0xa6   : > { %p464_p11 = scmp.lt.s32.totalorder %s462_s28, %s458_s23 }
  0xa7   : > { %p460_p7 = pnand %p459_p6, %p586_p4 }
  0xa8   : > { %p465_p12 = por %p464_p11, %p463_p10 }
  0xa9   : > { %p461_p9 = pneg %p460_p7 }
  0xab   : > { %p466_p13 = pnand %p465_p12, %p461_p9 }
  0xad   : > { %469 = shalt.err (!%p466_p13)
}
  0xae   : > { %s524_s4 = smov 128   ;;  %s525_s5 = smov 8  }
  0xaf   : > { %384 = dma.vmem_to_hbm [thread:$0]  (%p586_p4), %s636_s6, 512, %s641_s10, %s647_s15, %s524_s4, %s524_s4, %s525_s5  }
  0xb0 PF: > { %p390_p0 = scmp.ge.s32.totalorder %s520_s17, 2  ;;  %s297_s7 = sand.u32 1, %s500_s12  }
  0xb1   : > { %s298_s8 = scalar_lea.sflag [#allocation3], %s297_s7 }
  0xb2   : > { %p387_p1 = pnand %p390_p0, %p593_p8 }
  0xb4   : > { %p388_p2 = pneg %p387_p1 }
  0xb6   : > { %495 = dma.done.wait (%p388_p2), %s298_s8, 512  }
  0xb7   : > { %497 = vsyncadd (%p388_p2), %s298_s8, 4294966784  ;;  %s16_s17 = sadd.s32 1, %s520_s17   ;;  %s698_s12 = smov %s504_s13 }
  0xb8   : > { %p13_p3 = scmp.ge.s32.totalorder %s16_s17, 4   ;;  %s699_s13 = smov %s508_s14 }
  0xb9   : > { %s700_s14 = smov %s599_s25  ;;  %s701_s15 = smov %s516_s16 }
  0xba   : > { %s702_s16 = smov %s704_s20  ;;  %15 = sbr.rel (!%p13_p3) target bundleno = 4 (0x4), region = 67 }
  0xbf   :  { %303 = vsyncpa [#allocation3], 1 }
  0xc0   :  { %305 = vsyncpa [#allocation3 + $0x1], 1 }

// kernel: qpointnet_feature_propagation.4
= control target key start
LH: loop header
LB: loop body
LE: loop exit
PB: predicated region body
PF: predicated region fallthrough
CT: control target
= control target key end

     0   :  { %s1643_s12 = smov 0   ;;  %s1645_s13 = smov 0   ;;  %s2289_s0 = inlined_call_operand.vmem [shape: f32[2,64,8], index: 0, kind: input, shape index: {}]   ;;  %s2290_s1 = inlined_call_operand.vmem [shape: f32[2,8,16], index: 1, kind: input, shape index: {}]   ;;  %s2291_s2 = inlined_call_operand.vmem [shape: f32[2,32,16], index: 2, kind: input, shape index: {}]   ;;  %s2292_s3 = inlined_call_operand.vmem [shape: bf16[2,32,64], index: 3, kind: output, shape index: {}]  }
   0x1   :  { %s1647_s14 = smov 0  }
   0x2 LB: > { %s25_s15 = sadd.s32 1, %s1616_s13  ;;  %p1371_p0 = scmp.ge.s32.totalorder %s1620_s14, 1  ;;  %s1620_s14 = sphi %s1647_s14, %s13_s14   ;;  %s1616_s13 = sphi %s1645_s13, %s2294_s13   ;;  %s1612_s12 = sphi %s1643_s12, %s2293_s12  }
   0x3   : > { %p27_p1 = scmp.ge.s32.totalorder %s25_s15, 2  ;;  %p177_p2 = scmp.lt.s32.totalorder %s1620_s14, 3 }
   0x5   : > { %s2296_s15 = smov (%p27_p1, %s25_s15), 0  ;;  %p178_p3 = pnand %p1371_p0, %p177_p2 }
   0x6   : > { %p218_p4 = scmp.lt.s32.totalorder (!%p178_p3), %s1612_s12, 1 }
   0x7   : > { %181 = sbr.rel (%p178_p3) target bundleno = 1508 (0x5e4), region = 32 }
   0xc   : > { %s2298_s12 = smov (!%p218_p4, %s1612_s12), 1  ;;  %vm265_vm0 = vcmask 64512   ;;  %vm291_vm1 = vcmask 130048   ;;  %v460_v59 = vlaneseq }
   0xd   : > { %s1374_s16 = sshll.u32 %s2298_s12, 3  ;;  %s1429_s17 = sshll.u32 %s2298_s12, 6 }
   0xe   : > { %s230_s20 = scalar_lea.vmem %s2290_s1, %s1374_s16  ;;  %s225_s23 = scalar_lea.vmem %s2289_s0, %s1429_s17 }
   0xf   : > { %v252_v0 = vld [vmem:[%s230_s20] sm:$0xff]  ;;  %v245_v2 = vld [vmem:[%s225_s23 + $0x8] sm:$0xff]  ;;  %v246_v3 = vld [vmem:[%s225_s23 + $0x10] sm:$0xff]  ;;  %s1430_s24 = sshll.u32 %s2298_s12, 5  ;;  %s1431_s28 = sshll.u32 %s2298_s12, 4 }
  0x10   : > { %v244_v1 = vld [vmem:[%s225_s23] sm:$0xff]  ;;  %1457 = vmatprep.subr.mxu0 %v252_v0  ;;  %v249_v5 = vld [vmem:[%s225_s23 + $0x28] sm:$0xff]  ;;  %v250_v6 = vld [vmem:[%s225_s23 + $0x30] sm:$0xff]  ;;  %v259_v18 = vmul.f32 %v246_v3, %v246_v3  ;;  %v258_v22 = vmul.f32 %v245_v2, %v245_v2  ;;  %v290_v25 = vmul.f32 %v252_v0, %v252_v0  ;;  %s2226_s27 = scalar_lea.vmem %s2291_s2, %s1430_s24  ;;  %s243_s4 = scalar_lea.vmem %s2292_s3, %s1431_s28 }
  0x11   : > { %1459 = vmatprep.mubr.msk.f32.mxu0 %vm265_vm0, %v244_v1  ;;  %v248_v4 = vld [vmem:[%s225_s23 + $0x20] sm:$0xff]  ;;  %1458 = vmatpush3.msra.mxu0 %v252_v0  ;;  %v251_v7 = vld [vmem:[%s225_s23 + $0x38] sm:$0xff]  ;;  %v262_v9 = vmul.f32 %v249_v5, %v249_v5  ;;  %v263_v10 = vmul.f32 %v250_v6, %v250_v6  ;;  %v257_v19 = vmul.f32 %v244_v1, %v244_v1 }
  0x12   : > { %1460 = vmatmul.mubr.msk.f32.vlgmr.msra.gmra.mxu0 %vm265_vm0, %v245_v2  ;;  %v264_v8 = vmul.f32 %v251_v7, %v251_v7  ;;  %v261_v11 = vmul.f32 %v248_v4, %v248_v4  ;;  %v247_v12 = vld [vmem:[%s225_s23 + $0x18] sm:$0xff]  ;;  %v272_v21 = vsel %vm265_vm0, %v259_v18, 0.0  ;;  %v269_v23 = vsel %vm265_vm0, %v258_v22, 0.0 }
  0x13   : > { %1462 = vmatprep.mubr.msk.f32.mxu0 %vm265_vm0, %v246_v3  ;;  %v281_v14 = vsel %vm265_vm0, %v262_v9, 0.0  ;;  %v284_v15 = vsel %vm265_vm0, %v263_v10, 0.0  ;;  %v260_v17 = vmul.f32 %v247_v12, %v247_v12  ;;  %v266_v24 = vsel %vm265_vm0, %v257_v19, 0.0 }
  0x14   : > { %v287_v13 = vsel %vm265_vm0, %v264_v8, 0.0  ;;  %282 = vadd.xlane.f32.xlu1 %v281_v14  ;;  %v278_v16 = vsel %vm265_vm0, %v261_v11, 0.0  ;;  %v292_v26 = vsel %vm291_vm1, %v290_v25, 0.0  ;;  %v461_v11 = vand.u32 127, %v460_v59 }
  0x15   : > { %288 = vadd.xlane.f32.xlu0 %v287_v13  ;;  %v275_v20 = vsel %vm265_vm0, %v260_v17, 0.0  ;;  %v293_v27 = vrot.slane %v292_v26, 4 }
  0x16   : > { %1463 = vmatmul.mubr.msk.f32.gmra.mxu0 %vm265_vm0, %v247_v12 }
  0x17   : > { %1465 = vmatprep.mubr.msk.f32.mxu0 %vm265_vm0, %v248_v4  ;;  %v294_v28 = vadd.f32 %v293_v27, %v292_v26 }
  0x18   : > { %279 = vadd.xlane.f32.xlu1 %v278_v16 }
  0x19   : > { %285 = vadd.xlane.f32.xlu0 %v284_v15  ;;  %v295_v31 = vrot.slane %v294_v28, 2 }
  0x1a   : > { %1466 = vmatmul.mubr.msk.f32.gmra.mxu0 %vm265_vm0, %v249_v5 }
  0x1b   : > { %1468 = vmatprep.mubr.msk.f32.mxu0 %vm265_vm0, %v250_v6  ;;  %v296_v33 = vadd.f32 %v295_v31, %v294_v28 }
  0x1c   : > { %273 = vadd.xlane.f32.xlu1 %v272_v21 }
  0x1d   : > { %276 = vadd.xlane.f32.xlu0 %v275_v20  ;;  %v297_v36 = vrot.slane %v296_v33, 1 }
  0x1e   : > { %1469 = vmatmul.mubr.msk.f32.gmra.mxu0 %vm265_vm0, %v251_v7 }
  0x1f   : > { %v298_v41 = vadd.f32 %v297_v36, %v296_v33 }
  0x20   : > { %267 = vadd.xlane.f32.xlu1 %v266_v24 }
  0x21   : > { %270 = vadd.xlane.f32.xlu0 %v269_v23 }
  0x9d   : > { %v283_v30 = vpop.xlane.xlu1 %282 }
  0x9e   : > { %v289_v29 = vpop.xlane.xlu0 %288  ;;  %v433_v46 = vadd.f32 %v298_v41, %v283_v30 }
  0x9f   : > { %v435_v56 = vadd.f32 %v298_v41, %v289_v29 }
  0xa1   : > { %v280_v34 = vpop.xlane.xlu1 %279 }
  0xa2   : > { %v286_v32 = vpop.xlane.xlu0 %285  ;;  %v432_v48 = vadd.f32 %v298_v41, %v280_v34 }
  0xa3   : > { %v434_v0 = vadd.f32 %v298_v41, %v286_v32 }
  0xa5   : > { %v274_v39 = vpop.xlane.xlu1 %273 }
  0xa6   : > { %v277_v37 = vpop.xlane.xlu0 %276  ;;  %v430_v49 = vadd.f32 %v298_v41, %v274_v39 }
  0xa7   : > { %v431_v43 = vadd.f32 %v298_v41, %v277_v37 }
  0xa9   : > { %v268_v50 = vpop.xlane.xlu1 %267 }
  0xaa   : > { %v271_v44 = vpop.xlane.xlu0 %270  ;;  %v428_v61 = vadd.f32 %v298_v41, %v268_v50 }
  0xab   : > { %v429_v52 = vadd.f32 %v298_v41, %v271_v44 }
  0xd2   : > { %v1461_v35 = vpop.f32.mrf.mxu0 }
  0xd3   : > { %v437_v53 = vmul.f32 2.0, %v1461_v35 }
  0xd4   : > { %v389_v38 = vpop.f32.mrf.mxu0 }
  0xd5   : > { %v436_v60 = vmul.f32 2.0, %v389_v38  ;;  %v445_v4 = vsub.f32 %v429_v52, %v437_v53 }
  0xd6   : > { %v1464_v40 = vpop.f32.mrf.mxu0 }
  0xd7   : > { %v439_v45 = vmul.f32 2.0, %v1464_v40  ;;  %v444_v12 = vsub.f32 %v428_v61, %v436_v60  ;;  %v453_v18 = vmax.f32 %v445_v4, 0.0 }
  0xd8   : > { %v399_v42 = vpop.f32.mrf.mxu0 }
  0xd9   : > { %v438_v51 = vmul.f32 2.0, %v399_v42  ;;  %v447_v57 = vsub.f32 %v431_v43, %v439_v45  ;;  %v452_v23 = vmax.f32 %v444_v12, 0.0  ;;  %v471_v28 = vand.u32 4294967280, %v453_v18 }
  0xda   : > { %v1467_v47 = vpop.f32.mrf.mxu0 }
  0xdb   : > { %v441_v54 = vmul.f32 2.0, %v1467_v47  ;;  %v446_v1 = vsub.f32 %v430_v49, %v438_v51  ;;  %v455_v7 = vmax.f32 %v447_v57, 0.0  ;;  %v470_v34 = vand.u32 4294967280, %v452_v23 }
  0xdc   : > { %v409_v55 = vpop.f32.mrf.mxu0  ;;  %v1708_v41 = vor.u32 %v471_v28, %v461_v11 }
  0xdd   : > { %v440_v58 = vmul.f32 2.0, %v409_v55  ;;  %v449_v62 = vsub.f32 %v433_v46, %v441_v54  ;;  %v454_v14 = vmax.f32 %v446_v1, 0.0  ;;  %v473_v19 = vand.u32 4294967280, %v455_v7 }
  0xde   : > { %v1470_v63 = vpop.f32.mrf.mxu0  ;;  %v1712_v45 = vor.u32 %v470_v34, %v461_v11  ;;  %v501_v49 = vsel %vm291_vm1, %v1708_v41, 2147483647 }
  0xdf   : > { %v448_v2 = vsub.f32 %v432_v48, %v440_v58  ;;  %v443_v3 = vmul.f32 2.0, %v1470_v63  ;;  %v457_v5 = vmax.f32 %v449_v62, 0.0  ;;  %v472_v24 = vand.u32 4294967280, %v454_v14 }
  0xe0   : > { %v419_v6 = vpop.f32.mrf.mxu0  ;;  %v1694_v29 = vor.u32 %v473_v19, %v461_v11  ;;  %v486_v52 = vsel %vm291_vm1, %v1712_v45, 2147483647  ;;  %v503_v54 = vshra.s32 %v501_v49, 16 }
  0xe1   : > { %v456_v8 = vmax.f32 %v448_v2, 0.0  ;;  %v451_v9 = vsub.f32 %v435_v56, %v443_v3  ;;  %v442_v10 = vmul.f32 2.0, %v419_v6  ;;  %v475_v13 = vand.u32 4294967280, %v457_v5 }
  0xe2   : > { %v1702_v35 = vor.u32 %v472_v24, %v461_v11  ;;  %v531_v42 = vsel %vm291_vm1, %v1694_v29, 2147483647  ;;  %v488_v56 = vshra.s32 %v486_v52, 16  ;;  %v505_v57 = vcvt.s32.f32 %v503_v54 }
  0xe3   : > { %v474_v15 = vand.u32 4294967280, %v456_v8  ;;  %v459_v16 = vmax.f32 %v451_v9, 0.0  ;;  %v450_v17 = vsub.f32 %v434_v0, %v442_v10  ;;  %v1688_v20 = vor.u32 %v475_v13, %v461_v11 }
  0xe4   : > { %v516_v46 = vsel %vm291_vm1, %v1702_v35, 2147483647  ;;  %v533_v48 = vshra.s32 %v531_v42, 16  ;;  %v490_v58 = vcvt.s32.f32 %v488_v56  ;;  %v532_v7 = vand.u32 65535, %v531_v42 }
  0xe5   : > { %v477_v21 = vand.u32 4294967280, %v459_v16  ;;  %v458_v22 = vmax.f32 %v450_v17, 0.0  ;;  %v1690_v25 = vor.u32 %v474_v15, %v461_v11  ;;  %v561_v32 = vsel %vm291_vm1, %v1688_v20, 2147483647 }
  0xe6   : > { %v563_v40 = vshra.s32 %v561_v32, 16  ;;  %v518_v51 = vshra.s32 %v516_v46, 16  ;;  %v535_v53 = vcvt.s32.f32 %v533_v48  ;;  %v562_v63 = vand.u32 65535, %v561_v32 }
  0xe7   : > { %v1692_v26 = vor.u32 %v477_v21, %v461_v11  ;;  %v476_v27 = vand.u32 4294967280, %v458_v22  ;;  %v546_v37 = vsel %vm291_vm1, %v1690_v25, 2147483647  ;;  %v534_v14 = vcvt.s32.f32 %v532_v7 }
  0xe8   : > { %v548_v44 = vshra.s32 %v546_v37, 16  ;;  %v565_v47 = vcvt.s32.f32 %v563_v40  ;;  %v520_v55 = vcvt.s32.f32 %v518_v51  ;;  %v547_v3 = vand.u32 65535, %v546_v37 }
  0xe9   : > { %v1696_v30 = vor.u32 %v476_v27, %v461_v11  ;;  %v591_v31 = vsel %vm291_vm1, %v1692_v26, 2147483647  ;;  %v564_v6 = vcvt.s32.f32 %v562_v63  ;;  %v517_v11 = vand.u32 65535, %v516_v46 }
  0xea   : > { %v593_v33 = vshra.s32 %v591_v31, 16  ;;  %v550_v50 = vcvt.s32.f32 %v548_v44  ;;  %v592_v59 = vand.u32 65535, %v591_v31  ;;  %v549_v10 = vcvt.s32.f32 %v547_v3 }
  0xeb   : > { %v576_v36 = vsel %vm291_vm1, %v1696_v30, 2147483647  ;;  %v502_v15 = vand.u32 65535, %v501_v49  ;;  %v519_v18 = vcvt.s32.f32 %v517_v11  ;;  %v487_v19 = vand.u32 65535, %v486_v52 }
  0xec   : > { %v595_v38 = vcvt.s32.f32 %v593_v33  ;;  %v578_v39 = vshra.s32 %v576_v36, 16  ;;  %v577_v60 = vand.u32 65535, %v576_v36  ;;  %v594_v62 = vcvt.s32.f32 %v592_v59 }
  0xed   : > { %v504_v23 = vcvt.s32.f32 %v502_v15  ;;  %v489_v28 = vcvt.s32.f32 %v487_v19 }
  0xee   : > { %596 = vmin.xlane.f32.xlu0 %v595_v38  ;;  %v580_v43 = vcvt.s32.f32 %v578_v39  ;;  %v579_v2 = vcvt.s32.f32 %v577_v60 }
  0xf0   : > { %581 = vmin.xlane.f32.xlu1 %v580_v43 }
  0xf2   : > { %566 = vmin.xlane.f32.xlu0 %v565_v47 }
  0xf4   : > { %551 = vmin.xlane.f32.xlu1 %v550_v50 }
  0xf6   : > { %536 = vmin.xlane.f32.xlu0 %v535_v53 }
  0xf8   : > { %521 = vmin.xlane.f32.xlu1 %v520_v55 }
  0xfa   : > { %506 = vmin.xlane.f32.xlu0 %v505_v57 }
  0xfc   : > { %491 = vmin.xlane.f32.xlu1 %v490_v58 }
 0x177   : > { %v597_v61 = vpop.xlane.xlu0 %596 }
 0x178   : > { %vm598_vm2 = vcmp.eq.f32.partialorder %v595_v38, %v597_v61  ;;  %v603_v32 = vcvt.f32.s32 %v597_v61 }
 0x179   : > { %v582_v0 = vpop.xlane.xlu1 %581  ;;  %v599_v1 = vsel %vm598_vm2, %v594_v62, inf }
 0x17a   : > { %600 = vmin.xlane.f32.xlu0 %v599_v1  ;;  %vm583_vm3 = vcmp.eq.f32.partialorder %v580_v43, %v582_v0  ;;  %v588_v33 = vcvt.f32.s32 %v582_v0  ;;  %v604_v37 = vshll.u32 %v603_v32, 16 }
 0x17b   : > { %v567_v4 = vpop.xlane.xlu0 %566  ;;  %v584_v5 = vsel %vm583_vm3, %v579_v2, inf }
 0x17c   : > { %585 = vmin.xlane.f32.xlu1 %v584_v5  ;;  %vm568_vm4 = vcmp.eq.f32.partialorder %v565_v47, %v567_v4  ;;  %v573_v34 = vcvt.f32.s32 %v567_v4  ;;  %v589_v40 = vshll.u32 %v588_v33, 16 }
 0x17d   : > { %v552_v8 = vpop.xlane.xlu1 %551  ;;  %v569_v9 = vsel %vm568_vm4, %v564_v6, inf }
 0x17e   : > { %570 = vmin.xlane.f32.xlu0 %v569_v9  ;;  %vm553_vm5 = vcmp.eq.f32.partialorder %v550_v50, %v552_v8  ;;  %v574_v44 = vshll.u32 %v573_v34, 16  ;;  %v558_v46 = vcvt.f32.s32 %v552_v8 }
 0x17f   : > { %v537_v12 = vpop.xlane.xlu0 %536  ;;  %v554_v13 = vsel %vm553_vm5, %v549_v10, inf }
 0x180   : > { %555 = vmin.xlane.f32.xlu1 %v554_v13  ;;  %vm538_vm6 = vcmp.eq.f32.partialorder %v535_v53, %v537_v12  ;;  %v543_v47 = vcvt.f32.s32 %v537_v12 }
 0x181   : > { %v522_v16 = vpop.xlane.xlu1 %521  ;;  %v539_v17 = vsel %vm538_vm6, %v534_v14, inf }
 0x182   : > { %540 = vmin.xlane.f32.xlu0 %v539_v17  ;;  %vm523_vm7 = vcmp.eq.f32.partialorder %v520_v55, %v522_v16  ;;  %v528_v48 = vcvt.f32.s32 %v522_v16  ;;  %v544_v63 = vshll.u32 %v543_v47, 16 }
 0x183   : > { %v507_v21 = vpop.xlane.xlu0 %506  ;;  %v524_v22 = vsel %vm523_vm7, %v519_v18, inf }
 0x184   : > { %525 = vmin.xlane.f32.xlu1 %v524_v22  ;;  %vm508_vm8 = vcmp.eq.f32.partialorder %v505_v57, %v507_v21  ;;  %v513_v55 = vcvt.f32.s32 %v507_v21  ;;  %v529_v0 = vshll.u32 %v528_v48, 16 }
 0x185   : > { %v1720_v24 = vpop.xlane.xlu1 %491  ;;  %v509_v27 = vsel %vm508_vm8, %v504_v23, inf }
 0x186   : > { %510 = vmin.xlane.f32.xlu0 %v509_v27  ;;  %vm493_vm9 = vcmp.eq.f32.partialorder %v490_v58, %v1720_v24  ;;  %v559_v58 = vshll.u32 %v558_v46, 16  ;;  %v514_v8 = vshll.u32 %v513_v55, 16  ;;  %v498_v12 = vcvt.f32.s32 %v1720_v24 }
 0x187   : > { %v494_v31 = vsel %vm493_vm9, %v489_v28, inf }
 0x188   : > { %495 = vmin.xlane.f32.xlu1 %v494_v31  ;;  %v499_v28 = vshll.u32 %v498_v12, 16 }
 0x203   : > { %v601_v36 = vpop.xlane.xlu0 %600 }
 0x204   : > { %v602_v38 = vcvt.f32.s32 %v601_v36 }
 0x205   : > { %v586_v39 = vpop.xlane.xlu1 %585 }
 0x206   : > { %v1723_v42 = vadd.s32 %v604_v37, %v602_v38  ;;  %v587_v43 = vcvt.f32.s32 %v586_v39 }
 0x207   : > { %v571_v49 = vpop.xlane.xlu0 %570 }
 0x208   : > { %vm613_vm10 = vcmp.eq.s32.totalorder %v1692_v26, %v1723_v42  ;;  %v621_v50 = vand.u32 4294967280, %v1723_v42  ;;  %v1728_v51 = vadd.s32 %v589_v40, %v587_v43  ;;  %v572_v52 = vcvt.f32.s32 %v571_v49 }
 0x209   : > { %v556_v53 = vpop.xlane.xlu1 %555  ;;  %v1734_v54 = vsel %vm613_vm10, 2147483647, %v1692_v26 }
 0x20a   : > { %vm612_vm11 = vcmp.eq.s32.totalorder %v1696_v30, %v1728_v51  ;;  %v620_v56 = vand.u32 4294967280, %v1728_v51  ;;  %v1739_v57 = vadd.s32 %v574_v44, %v572_v52  ;;  %v557_v59 = vcvt.f32.s32 %v556_v53 }
 0x20b   : > { %v541_v60 = vpop.xlane.xlu0 %540  ;;  %v1743_v61 = vsel %vm291_vm1, %v1734_v54, 2147483647  ;;  %v1749_v62 = vsel %vm612_vm11, 2147483647, %v1696_v30  ;;  %v637_v1 = vmax.f32 %v621_v50, 1e-10 }
 0x20c   : > { %v619_v2 = vand.u32 4294967280, %v1739_v57  ;;  %v636_v3 = vmax.f32 %v620_v56, 1e-10  ;;  %v1752_v4 = vadd.s32 %v559_v58, %v557_v59  ;;  %v542_v5 = vcvt.f32.s32 %v541_v60 }
 0x20d   : > { %v526_v6 = vpop.xlane.xlu1 %525  ;;  %v793_v7 = vshra.s32 %v1743_v61, 16  ;;  %v1757_v11 = vsel %vm291_vm1, %v1749_v62, 2147483647  ;;  %1534 = vrcp.f32 %v637_v1  ;;  %vm611_vm12 = vcmp.eq.s32.totalorder %v1688_v20, %v1739_v57 }
 0x20e   : > { %v635_v9 = vmax.f32 %v619_v2, 1e-10  ;;  %v527_v10 = vcvt.f32.s32 %v526_v6  ;;  %v618_v13 = vand.u32 4294967280, %v1752_v4  ;;  %v1761_v14 = vadd.s32 %v544_v63, %v542_v5 }
 0x20f   : > { %v1763_v15 = vcvt.s32.f32 %v793_v7  ;;  %v511_v16 = vpop.xlane.xlu0 %510  ;;  %1536 = vrcp.f32 %v636_v3  ;;  %v778_v22 = vshra.s32 %v1757_v11, 16  ;;  %vm610_vm13 = vcmp.eq.s32.totalorder %v1690_v25, %v1752_v4 }
 0x210   : > { %v1767_v17 = vadd.s32 %v529_v0, %v527_v10  ;;  %v512_v18 = vcvt.f32.s32 %v511_v16  ;;  %v634_v19 = vmax.f32 %v618_v13, 1e-10  ;;  %v617_v21 = vand.u32 4294967280, %v1761_v14 }
 0x211   : > { %796 = vmin.xlane.f32.xlu0 %v1763_v15  ;;  %v496_v23 = vpop.xlane.xlu1 %495  ;;  %1538 = vrcp.f32 %v635_v9  ;;  %v1777_v32 = vcvt.s32.f32 %v778_v22  ;;  %vm609_vm14 = vcmp.eq.s32.totalorder %v1694_v29, %v1761_v14  ;;  %v1789_v37 = vsel %vm611_vm12, 2147483647, %v1688_v20 }
 0x212   : > { %v616_v24 = vand.u32 4294967280, %v1767_v17  ;;  %v1775_v27 = vadd.s32 %v514_v8, %v512_v18  ;;  %1540 = vrcp.f32 %v634_v19  ;;  %v633_v31 = vmax.f32 %v617_v21, 1e-10 }
 0x213   : > { %v497_v36 = vcvt.f32.s32 %v496_v23  ;;  %vm608_vm15 = vcmp.eq.s32.totalorder %v1702_v35, %v1767_v17  ;;  %781 = vmin.xlane.f32.xlu1 %v1777_v32  ;;  %v1795_v38 = vsel %vm610_vm13, 2147483647, %v1690_v25  ;;  %v1799_v43 = vsel %vm291_vm1, %v1789_v37, 2147483647 }
 0x214   : > { %v632_v33 = vmax.f32 %v616_v24, 1e-10  ;;  %v615_v34 = vand.u32 4294967280, %v1775_v27  ;;  %1542 = vrcp.f32 %v633_v31  ;;  %vm607_vm0 = vcmp.eq.s32.totalorder %v1708_v41, %v1775_v27 }
 0x215   : > { %v500_v40 = vadd.s32 %v499_v28, %v497_v36  ;;  %v763_v44 = vshra.s32 %v1799_v43, 16  ;;  %v1806_v46 = vsel %vm291_vm1, %v1795_v38, 2147483647  ;;  %v1812_v47 = vsel %vm609_vm14, 2147483647, %v1694_v29 }
 0x216   : > { %1544 = vrcp.f32 %v632_v33  ;;  %v631_v39 = vmax.f32 %v615_v34, 1e-10  ;;  %v748_v49 = vshra.s32 %v1806_v46, 16  ;;  %v1820_v52 = vsel %vm291_vm1, %v1812_v47, 2147483647 }
 0x217   : > { %vm606_vm2 = vcmp.eq.s32.totalorder %v1712_v45, %v500_v40  ;;  %v614_v48 = vand.u32 4294967280, %v500_v40  ;;  %v1816_v50 = vcvt.s32.f32 %v763_v44  ;;  %v1826_v53 = vsel %vm608_vm15, 2147483647, %v1702_v35 }
 0x218   : > { %1546 = vrcp.f32 %v631_v39  ;;  %v1828_v56 = vcvt.s32.f32 %v748_v49  ;;  %v733_v58 = vshra.s32 %v1820_v52, 16  ;;  %v1833_v59 = vsel %vm291_vm1, %v1826_v53, 2147483647 }
 0x219   : > { %v630_v55 = vmax.f32 %v614_v48, 1e-10  ;;  %766 = vmin.xlane.f32.xlu0 %v1816_v50  ;;  %v718_v60 = vshra.s32 %v1833_v59, 16  ;;  %v1841_v63 = vsel %vm607_vm0, 2147483647, %v1708_v41  ;;  %v1622_v16 = vmov 0.0  }
 0x21a   : > { %v1846_v0 = vsel %vm606_vm2, 2147483647, %v1712_v45  ;;  %751 = vmin.xlane.f32.xlu1 %v1828_v56  ;;  %v1849_v1 = vcvt.s32.f32 %v733_v58  ;;  %v1853_v2 = vsel %vm291_vm1, %v1841_v63, 2147483647  ;;  %v1535_v5 = vpop.eup %1534  ;;  %v1394_v18 = vsel %vm613_vm10, 1.0, %v1622_v16 }
 0x21b   : > { %1548 = vrcp.f32 %v630_v55  ;;  %v1857_v3 = vsel %vm291_vm1, %v1846_v0, 2147483647  ;;  %v1859_v6 = vcvt.s32.f32 %v718_v60  ;;  %v703_v7 = vshra.s32 %v1853_v2, 16 }
 0x21c   : > { %v688_v8 = vshra.s32 %v1857_v3, 16  ;;  %v1537_v9 = vpop.eup %1536  ;;  %v1393_v19 = vsel %vm612_vm11, 1.0, %v1622_v16  ;;  %v1392_v22 = vsel %vm611_vm12, 1.0, %v1622_v16  ;;  %v1391_v26 = vsel %vm610_vm13, 1.0, %v1622_v16 }
 0x21d   : > { %736 = vmin.xlane.f32.xlu0 %v1849_v1  ;;  %v1864_v12 = vcvt.s32.f32 %v703_v7  ;;  %v1885_v42 = vmul.f32 %v1535_v5, %v1394_v18  ;;  %v1887_v23 = vmul.f32 %v1537_v9, %v1393_v19  ;;  %v1390_v51 = vsel %vm609_vm14, 1.0, %v1622_v16 }
 0x21e   : > { %v1539_v10 = vpop.eup %1538  ;;  %721 = vmin.xlane.f32.xlu1 %v1859_v6  ;;  %v1875_v21 = vcvt.s32.f32 %v688_v8  ;;  %v1389_v25 = vsel %vm608_vm15, 1.0, %v1622_v16  ;;  %v1388_v14 = vsel %vm607_vm0, 1.0, %v1622_v16  ;;  %v1387_v35 = vsel %vm606_vm2, 1.0, %v1622_v16 }
 0x21f   : > { %v1541_v13 = vpop.eup %1540  ;;  %v1893_v24 = vmul.f32 %v1539_v10, %v1392_v22  ;;  %v792_v34 = vand.u32 65535, %v1743_v61  ;;  %v777_v44 = vand.u32 65535, %v1757_v11  ;;  %v762_v45 = vand.u32 65535, %v1799_v43 }
 0x220   : > { %v1895_v28 = vmul.f32 %v1541_v13, %v1391_v26  ;;  %v747_v40 = vand.u32 65535, %v1806_v46  ;;  %v732_v58 = vand.u32 65535, %v1820_v52  ;;  %v702_v46 = vand.u32 65535, %v1853_v2 }
 0x221   : > { %v1543_v30 = vpop.eup %1542  ;;  %706 = vmin.xlane.f32.xlu0 %v1864_v12  ;;  %v794_v39 = vcvt.s32.f32 %v792_v34  ;;  %v779_v27 = vcvt.s32.f32 %v777_v44  ;;  %v764_v61 = vcvt.s32.f32 %v762_v45  ;;  %v687_v9 = vand.u32 65535, %v1857_v3 }
 0x222   : > { %v1902_v57 = vmul.f32 %v1543_v30, %v1390_v51  ;;  %691 = vmin.xlane.f32.xlu1 %v1875_v21  ;;  %v749_v11 = vcvt.s32.f32 %v747_v40  ;;  %v734_v43 = vcvt.s32.f32 %v732_v58 }
 0x223   : > { %v1545_v20 = vpop.eup %1544  ;;  %v689_v18 = vcvt.s32.f32 %v687_v9 }
 0x224   : > { %v1905_v4 = vmul.f32 %v1545_v20, %v1389_v25 }
 0x225   : > { %v1547_v29 = vpop.eup %1546 }
 0x226   : > { %v1911_v31 = vmul.f32 %v1547_v29, %v1388_v14 }
 0x228   : > { %v1549_v33 = vpop.eup %1548 }
 0x229   : > { %v1916_v17 = vmul.f32 %v1549_v33, %v1387_v35 }
 0x29a   : > { %v797_v36 = vpop.xlane.xlu0 %796 }
 0x29b   : > { %vm798_vm3 = vcmp.eq.f32.partialorder %v1763_v15, %v797_v36  ;;  %v717_v15 = vand.u32 65535, %v1833_v59  ;;  %v803_v3 = vcvt.f32.s32 %v797_v36 }
 0x29c   : > { %v799_v48 = vsel %vm798_vm3, %v794_v39, inf  ;;  %v782_v41 = vpop.xlane.xlu1 %781 }
 0x29d   : > { %800 = vmin.xlane.f32.xlu0 %v799_v48  ;;  %vm783_vm4 = vcmp.eq.f32.partialorder %v1777_v32, %v782_v41  ;;  %v719_v52 = vcvt.s32.f32 %v717_v15  ;;  %v788_v22 = vcvt.f32.s32 %v782_v41 }
 0x29e   : > { %v784_v49 = vsel %vm783_vm4, %v779_v27, inf }
 0x29f   : > { %785 = vmin.xlane.f32.xlu1 %v784_v49  ;;  %v789_v20 = vshll.u32 %v788_v22, 16 }
 0x2a2   : > { %v767_v55 = vpop.xlane.xlu0 %766 }
 0x2a3   : > { %v752_v60 = vpop.xlane.xlu1 %751  ;;  %vm768_vm5 = vcmp.eq.f32.partialorder %v1816_v50, %v767_v55  ;;  %v773_v25 = vcvt.f32.s32 %v767_v55 }
 0x2a4   : > { %v769_v5 = vsel %vm768_vm5, %v764_v61, inf  ;;  %vm753_vm6 = vcmp.eq.f32.partialorder %v1828_v56, %v752_v60  ;;  %v704_v56 = vcvt.s32.f32 %v702_v46  ;;  %v758_v33 = vcvt.f32.s32 %v752_v60 }
 0x2a5   : > { %770 = vmin.xlane.f32.xlu0 %v769_v5  ;;  %v754_v32 = vsel %vm753_vm6, %v749_v11, inf  ;;  %v774_v49 = vshll.u32 %v773_v25, 16 }
 0x2a6   : > { %v737_v7 = vpop.xlane.xlu0 %736  ;;  %755 = vmin.xlane.f32.xlu1 %v754_v32  ;;  %v759_v61 = vshll.u32 %v758_v33, 16 }
 0x2a7   : > { %v722_v8 = vpop.xlane.xlu1 %721  ;;  %vm738_vm7 = vcmp.eq.f32.partialorder %v1849_v1, %v737_v7  ;;  %v743_v36 = vcvt.f32.s32 %v737_v7 }
 0x2a8   : > { %v739_v50 = vsel %vm738_vm7, %v734_v43, inf  ;;  %vm723_vm8 = vcmp.eq.f32.partialorder %v1859_v6, %v722_v8  ;;  %v804_v6 = vshll.u32 %v803_v3, 16  ;;  %v728_v39 = vcvt.f32.s32 %v722_v8 }
 0x2a9   : > { %740 = vmin.xlane.f32.xlu0 %v739_v50  ;;  %v724_v59 = vsel %vm723_vm8, %v719_v52, inf  ;;  %v744_v15 = vshll.u32 %v743_v36, 16 }
 0x2aa   : > { %v707_v10 = vpop.xlane.xlu0 %706  ;;  %725 = vmin.xlane.f32.xlu1 %v724_v59  ;;  %v729_v7 = vshll.u32 %v728_v39, 16 }
 0x2ab   : > { %v1932_v13 = vpop.xlane.xlu1 %691  ;;  %vm708_vm9 = vcmp.eq.f32.partialorder %v1864_v12, %v707_v10  ;;  %v713_v5 = vcvt.f32.s32 %v707_v10 }
 0x2ac   : > { %v709_v2 = vsel %vm708_vm9, %v704_v56, inf  ;;  %vm693_vm10 = vcmp.eq.f32.partialorder %v1875_v21, %v1932_v13  ;;  %v698_v9 = vcvt.f32.s32 %v1932_v13 }
 0x2ad   : > { %710 = vmin.xlane.f32.xlu0 %v709_v2  ;;  %v694_v1 = vsel %vm693_vm10, %v689_v18, inf  ;;  %v714_v2 = vshll.u32 %v713_v5, 16 }
 0x2ae   : > { %695 = vmin.xlane.f32.xlu1 %v694_v1 }
 0x326   : > { %v801_v19 = vpop.xlane.xlu0 %800 }
 0x327   : > { %v802_v26 = vcvt.f32.s32 %v801_v19 }
 0x328   : > { %v786_v51 = vpop.xlane.xlu1 %785 }
 0x329   : > { %v1937_v30 = vadd.s32 %v804_v6, %v802_v26  ;;  %v787_v12 = vcvt.f32.s32 %v786_v51 }
 0x32b   : > { %vm813_vm11 = vcmp.eq.s32.totalorder %v1734_v54, %v1937_v30  ;;  %v1947_v29 = vadd.s32 %v789_v20, %v787_v12  ;;  %v821_v35 = vand.u32 4294967280, %v1937_v30 }
 0x32c   : > { %v1945_v21 = vsel %vm813_vm11, 2147483647, %v1734_v54 }
 0x32d   : > { %v1951_v14 = vsel %vm291_vm1, %v1945_v21, 2147483647  ;;  %vm812_vm12 = vcmp.eq.s32.totalorder %v1749_v62, %v1947_v29  ;;  %v820_v44 = vand.u32 4294967280, %v1947_v29  ;;  %v837_v58 = vmax.f32 %v821_v35, 1e-10 }
 0x32e   : > { %v993_v34 = vshra.s32 %v1951_v14, 16  ;;  %v771_v48 = vpop.xlane.xlu0 %770  ;;  %v1964_v27 = vsel %vm812_vm12, 2147483647, %v1749_v62  ;;  %v699_v35 = vshll.u32 %v698_v9, 16 }
 0x32f   : > { %v772_v45 = vcvt.f32.s32 %v771_v48  ;;  %v756_v40 = vpop.xlane.xlu1 %755  ;;  %v1968_v55 = vsel %vm291_vm1, %v1964_v27, 2147483647  ;;  %v836_v43 = vmax.f32 %v820_v44, 1e-10  ;;  %1550 = vrcp.f32 %v837_v58 }
 0x330   : > { %v1958_v41 = vcvt.s32.f32 %v993_v34  ;;  %v757_v60 = vcvt.f32.s32 %v756_v40  ;;  %v978_v11 = vshra.s32 %v1968_v55, 16 }
 0x331   : > { %v1972_v32 = vadd.s32 %v774_v49, %v772_v45  ;;  %1552 = vrcp.f32 %v836_v43 }
 0x332   : > { %996 = vmin.xlane.f32.xlu0 %v1958_v41  ;;  %v1974_v46 = vadd.s32 %v759_v61, %v757_v60  ;;  %v741_v8 = vpop.xlane.xlu0 %740  ;;  %v1976_v52 = vcvt.s32.f32 %v978_v11 }
 0x333   : > { %vm811_vm13 = vcmp.eq.s32.totalorder %v1789_v37, %v1972_v32  ;;  %v819_v50 = vand.u32 4294967280, %v1972_v32  ;;  %v742_v59 = vcvt.f32.s32 %v741_v8  ;;  %v726_v56 = vpop.xlane.xlu1 %725 }
 0x334   : > { %vm810_vm14 = vcmp.eq.s32.totalorder %v1795_v38, %v1974_v46  ;;  %v818_v10 = vand.u32 4294967280, %v1974_v46  ;;  %v727_v18 = vcvt.f32.s32 %v726_v56  ;;  %981 = vmin.xlane.f32.xlu1 %v1976_v52  ;;  %v1992_v13 = vsel %vm811_vm13, 2147483647, %v1789_v37 }
 0x335   : > { %v835_v1 = vmax.f32 %v819_v50, 1e-10  ;;  %v1986_v3 = vadd.s32 %v744_v15, %v742_v59  ;;  %v1998_v26 = vsel %vm291_vm1, %v1992_v13, 2147483647  ;;  %v2005_v25 = vsel %vm810_vm14, 2147483647, %v1795_v38 }
 0x336   : > { %v834_v19 = vmax.f32 %v818_v10, 1e-10  ;;  %v1994_v6 = vadd.s32 %v729_v7, %v727_v18  ;;  %v711_v22 = vpop.xlane.xlu0 %710  ;;  %v963_v48 = vshra.s32 %v1998_v26, 16  ;;  %v2015_v49 = vsel %vm291_vm1, %v2005_v25, 2147483647 }
 0x337   : > { %1554 = vrcp.f32 %v835_v1  ;;  %v817_v51 = vand.u32 4294967280, %v1986_v3  ;;  %v712_v20 = vcvt.f32.s32 %v711_v22  ;;  %v696_v12 = vpop.xlane.xlu1 %695  ;;  %vm809_vm15 = vcmp.eq.s32.totalorder %v1812_v47, %v1986_v3 }
 0x338   : > { %1556 = vrcp.f32 %v834_v19  ;;  %v816_v33 = vand.u32 4294967280, %v1994_v6  ;;  %v697_v39 = vcvt.f32.s32 %v696_v12  ;;  %vm808_vm0 = vcmp.eq.s32.totalorder %v1826_v53, %v1994_v6 }
 0x339   : > { %v833_v34 = vmax.f32 %v817_v51, 1e-10  ;;  %v2008_v36 = vadd.s32 %v714_v2, %v712_v20  ;;  %v2024_v61 = vcvt.s32.f32 %v963_v48  ;;  %v948_v58 = vshra.s32 %v2015_v49, 16 }
 0x33a   : > { %v832_v44 = vmax.f32 %v816_v33, 1e-10  ;;  %v2020_v40 = vadd.s32 %v699_v35, %v697_v39  ;;  %v2034_v15 = vsel %vm809_vm15, 2147483647, %v1812_v47  ;;  %v2047_v43 = vsel %vm808_vm0, 2147483647, %v1826_v53 }
 0x33b   : > { %1558 = vrcp.f32 %v833_v34  ;;  %v815_v45 = vand.u32 4294967280, %v2008_v36  ;;  %vm807_vm2 = vcmp.eq.s32.totalorder %v1841_v63, %v2008_v36  ;;  %966 = vmin.xlane.f32.xlu0 %v2024_v61  ;;  %v2037_v5 = vcvt.s32.f32 %v948_v58 }
 0x33c   : > { %1560 = vrcp.f32 %v832_v44  ;;  %vm806_vm3 = vcmp.eq.s32.totalorder %v1846_v0, %v2020_v40  ;;  %v814_v11 = vand.u32 4294967280, %v2020_v40  ;;  %v2041_v7 = vsel %vm291_vm1, %v2034_v15, 2147483647  ;;  %v1551_v18 = vpop.eup %1550 }
 0x33d   : > { %v831_v60 = vmax.f32 %v815_v45, 1e-10  ;;  %v933_v9 = vshra.s32 %v2041_v7, 16  ;;  %v2052_v50 = vsel %vm291_vm1, %v2047_v43, 2147483647  ;;  %951 = vmin.xlane.f32.xlu1 %v2037_v5  ;;  %v1402_v33 = vsel %vm813_vm11, 1.0, %v1622_v16 }
 0x33e   : > { %v830_v8 = vmax.f32 %v814_v11, 1e-10  ;;  %v918_v59 = vshra.s32 %v2052_v50, 16  ;;  %v2060_v56 = vsel %vm807_vm2, 2147483647, %v1841_v63  ;;  %v1553_v12 = vpop.eup %1552  ;;  %v869_v44 = vmul.f32 %v1551_v18, %v1402_v33 }
 0x33f   : > { %1562 = vrcp.f32 %v831_v60  ;;  %v2066_v10 = vsel %vm806_vm3, 2147483647, %v1846_v0  ;;  %v2068_v2 = vcvt.s32.f32 %v933_v9  ;;  %v2072_v1 = vsel %vm291_vm1, %v2060_v56, 2147483647 }
 0x340   : > { %1564 = vrcp.f32 %v830_v8  ;;  %v2076_v19 = vsel %vm291_vm1, %v2066_v10, 2147483647  ;;  %v2078_v22 = vcvt.s32.f32 %v918_v59  ;;  %v903_v51 = vshra.s32 %v2072_v1, 16 }
 0x341   : > { %v888_v20 = vshra.s32 %v2076_v19, 16  ;;  %936 = vmin.xlane.f32.xlu0 %v2068_v2  ;;  %v1401_v45 = vsel %vm812_vm12, 1.0, %v1622_v16  ;;  %v1400_v54 = vsel %vm811_vm13, 1.0, %v1622_v16  ;;  %v1399_v30 = vsel %vm810_vm14, 1.0, %v1622_v16 }
 0x342   : > { %921 = vmin.xlane.f32.xlu1 %v2078_v22  ;;  %v2088_v34 = vcvt.s32.f32 %v903_v51  ;;  %v2105_v58 = vadd.f32 %v869_v44, %v1885_v42  ;;  %v868_v60 = vmul.f32 %v1553_v12, %v1401_v45  ;;  %v1398_v37 = vsel %vm809_vm15, 1.0, %v1622_v16 }
 0x343   : > { %v2090_v39 = vcvt.s32.f32 %v888_v20  ;;  %v1397_v46 = vsel %vm808_vm0, 1.0, %v1622_v16  ;;  %v1395_v53 = vsel %vm806_vm3, 1.0, %v1622_v16  ;;  %v992_v63 = vand.u32 65535, %v1951_v14 }
 0x344   : > { %v1555_v35 = vpop.eup %1554  ;;  %v2114_v29 = vadd.f32 %v868_v60, %v1887_v23  ;;  %v1396_v23 = vsel %vm807_vm2, 1.0, %v1622_v16  ;;  %v962_v40 = vand.u32 65535, %v1998_v26  ;;  %v917_v45 = vand.u32 65535, %v2052_v50 }
 0x345   : > { %v1557_v48 = vpop.eup %1556  ;;  %v867_v11 = vmul.f32 %v1555_v35, %v1400_v54  ;;  %906 = vmin.xlane.f32.xlu0 %v2088_v34  ;;  %v994_v20 = vcvt.s32.f32 %v992_v63 }
 0x346   : > { %v866_v8 = vmul.f32 %v1557_v48, %v1399_v30  ;;  %891 = vmin.xlane.f32.xlu1 %v2090_v39  ;;  %v964_v14 = vcvt.s32.f32 %v962_v40 }
 0x347   : > { %v2117_v38 = vadd.f32 %v867_v11, %v1893_v24 }
 0x348   : > { %v1559_v62 = vpop.eup %1558  ;;  %v2120_v42 = vadd.f32 %v866_v8, %v1895_v28 }
 0x349   : > { %v1561_v32 = vpop.eup %1560  ;;  %v865_v9 = vmul.f32 %v1559_v62, %v1398_v37 }
 0x34a   : > { %v864_v47 = vmul.f32 %v1561_v32, %v1397_v46 }
 0x34b   : > { %v2127_v3 = vadd.f32 %v865_v9, %v1902_v57 }
 0x34c   : > { %v1563_v59 = vpop.eup %1562  ;;  %v2134_v24 = vadd.f32 %v864_v47, %v1905_v4  ;;  %v977_v4 = vand.u32 65535, %v1968_v55  ;;  %v932_v55 = vand.u32 65535, %v2041_v7  ;;  %v887_v7 = vand.u32 65535, %v2076_v19 }
 0x34d   : > { %v863_v28 = vmul.f32 %v1563_v59, %v1396_v23  ;;  %v1565_v18 = vpop.eup %1564 }
 0x34e   : > { %v862_v57 = vmul.f32 %v1565_v18, %v1395_v53  ;;  %v979_v0 = vcvt.s32.f32 %v977_v4  ;;  %v934_v26 = vcvt.s32.f32 %v932_v55  ;;  %v889_v62 = vcvt.s32.f32 %v887_v7 }
 0x34f   : > { %v2141_v6 = vadd.f32 %v863_v28, %v1911_v31 }
 0x350   : > { %v2144_v51 = vadd.f32 %v862_v57, %v1916_v17  ;;  %v947_v17 = vand.u32 65535, %v2015_v49  ;;  %v902_v49 = vand.u32 65535, %v2072_v1 }
 0x352   : > { %v949_v48 = vcvt.s32.f32 %v947_v17 }
 0x3bb   : > { %v997_v36 = vpop.xlane.xlu0 %996 }
 0x3bc   : > { %vm998_vm4 = vcmp.eq.f32.partialorder %v1958_v41, %v997_v36  ;;  %v1003_v1 = vcvt.f32.s32 %v997_v36 }
 0x3bd   : > { %v999_v12 = vsel %vm998_vm4, %v994_v20, inf  ;;  %v982_v33 = vpop.xlane.xlu1 %981 }
 0x3be   : > { %1000 = vmin.xlane.f32.xlu0 %v999_v12  ;;  %vm983_vm5 = vcmp.eq.f32.partialorder %v1976_v52, %v982_v33  ;;  %v1004_v32 = vshll.u32 %v1003_v1, 16  ;;  %v988_v46 = vcvt.f32.s32 %v982_v33 }
 0x3bf   : > { %v984_v31 = vsel %vm983_vm5, %v979_v0, inf  ;;  %vm1255_vm5 = vcmask 519168  }
 0x3c0   : > { %985 = vmin.xlane.f32.xlu1 %v984_v31  ;;  %v989_v59 = vshll.u32 %v988_v46, 16 }
 0x3c4   : > { %v967_v35 = vpop.xlane.xlu0 %966 }
 0x3c5   : > { %vm968_vm6 = vcmp.eq.f32.partialorder %v2024_v61, %v967_v35  ;;  %v919_v61 = vcvt.s32.f32 %v917_v45  ;;  %v973_v57 = vcvt.f32.s32 %v967_v35 }
 0x3c6   : > { %v952_v44 = vpop.xlane.xlu1 %951  ;;  %v969_v41 = vsel %vm968_vm6, %v964_v14, inf }
 0x3c7   : > { %970 = vmin.xlane.f32.xlu0 %v969_v41  ;;  %vm953_vm7 = vcmp.eq.f32.partialorder %v2037_v5, %v952_v44  ;;  %v904_v5 = vcvt.s32.f32 %v902_v49  ;;  %v974_v4 = vshll.u32 %v973_v57, 16 }
 0x3c8   : > { %v954_v52 = vsel %vm953_vm7, %v949_v48, inf }
 0x3c9   : > { %955 = vmin.xlane.f32.xlu1 %v954_v52 }
 0x3ca   : > { %v937_v54 = vpop.xlane.xlu0 %936 }
 0x3cb   : > { %v922_v30 = vpop.xlane.xlu1 %921  ;;  %vm938_vm8 = vcmp.eq.f32.partialorder %v2068_v2, %v937_v54  ;;  %v943_v12 = vcvt.f32.s32 %v937_v54 }
 0x3cc   : > { %v939_v60 = vsel %vm938_vm8, %v934_v26, inf  ;;  %vm923_vm9 = vcmp.eq.f32.partialorder %v2078_v22, %v922_v30  ;;  %v928_v0 = vcvt.f32.s32 %v922_v30 }
 0x3cd   : > { %940 = vmin.xlane.f32.xlu0 %v939_v60  ;;  %v924_v50 = vsel %vm923_vm9, %v919_v61, inf  ;;  %v944_v48 = vshll.u32 %v943_v12, 16 }
 0x3ce   : > { %v907_v11 = vpop.xlane.xlu0 %906  ;;  %925 = vmin.xlane.f32.xlu1 %v924_v50  ;;  %v929_v45 = vshll.u32 %v928_v0, 16 }
 0x3cf   : > { %v892_v8 = vpop.xlane.xlu1 %891  ;;  %vm908_vm10 = vcmp.eq.f32.partialorder %v2088_v34, %v907_v11  ;;  %v913_v35 = vcvt.f32.s32 %v907_v11 }
 0x3d0   : > { %v909_v37 = vsel %vm908_vm10, %v904_v5, inf  ;;  %vm893_vm11 = vcmp.eq.f32.partialorder %v2090_v39, %v892_v8  ;;  %v958_v39 = vcvt.f32.s32 %v952_v44  ;;  %v898_v26 = vcvt.f32.s32 %v892_v8 }
 0x3d1   : > { %910 = vmin.xlane.f32.xlu0 %v909_v37  ;;  %v894_v2 = vsel %vm893_vm11, %v889_v62, inf  ;;  %v914_v11 = vshll.u32 %v913_v35, 16 }
 0x3d2   : > { %895 = vmin.xlane.f32.xlu1 %v894_v2  ;;  %v959_v31 = vshll.u32 %v958_v39, 16 }
 0x447   : > { %v1001_v19 = vpop.xlane.xlu0 %1000 }
 0x448   : > { %v1002_v22 = vcvt.f32.s32 %v1001_v19  ;;  %v899_v19 = vshll.u32 %v898_v26, 16 }
 0x449   : > { %v986_v47 = vpop.xlane.xlu1 %985 }
 0x44a   : > { %v1005_v9 = vadd.s32 %v1004_v32, %v1002_v22  ;;  %v987_v28 = vcvt.f32.s32 %v986_v47 }
 0x44c   : > { %v1021_v23 = vand.u32 4294967280, %v1005_v9  ;;  %v990_v53 = vadd.s32 %v989_v59, %v987_v28  ;;  %vm1013_vm12 = vcmp.eq.s32.totalorder %v1945_v21, %v1005_v9 }
 0x44d   : > { %v1410_v60 = vsel %vm1013_vm12, 1.0, %v1622_v16 }
 0x44e   : > { %v1037_v18 = vmax.f32 %v1021_v23, 1e-10  ;;  %v1020_v34 = vand.u32 4294967280, %v990_v53  ;;  %vm1012_vm13 = vcmp.eq.s32.totalorder %v1964_v27, %v990_v53 }
 0x44f   : > { %v1409_v21 = vsel %vm1012_vm13, 1.0, %v1622_v16 }
 0x450   : > { %1566 = vrcp.f32 %v1037_v18  ;;  %v1036_v63 = vmax.f32 %v1020_v34, 1e-10  ;;  %v971_v20 = vpop.xlane.xlu0 %970 }
 0x451   : > { %v972_v36 = vcvt.f32.s32 %v971_v20 }
 0x452   : > { %1568 = vrcp.f32 %v1036_v63  ;;  %v956_v33 = vpop.xlane.xlu1 %955 }
 0x453   : > { %v975_v40 = vadd.s32 %v974_v4, %v972_v36  ;;  %v957_v17 = vcvt.f32.s32 %v956_v33 }
 0x455   : > { %v1019_v14 = vand.u32 4294967280, %v975_v40  ;;  %v960_v55 = vadd.s32 %v959_v31, %v957_v17  ;;  %vm1011_vm14 = vcmp.eq.s32.totalorder %v1992_v13, %v975_v40 }
 0x456   : > { %v941_v41 = vpop.xlane.xlu0 %940  ;;  %v1408_v4 = vsel %vm1011_vm14, 1.0, %v1622_v16 }
 0x457   : > { %v942_v52 = vcvt.f32.s32 %v941_v41  ;;  %v926_v44 = vpop.xlane.xlu1 %925  ;;  %v1035_v49 = vmax.f32 %v1019_v14, 1e-10  ;;  %v1018_v61 = vand.u32 4294967280, %v960_v55  ;;  %vm1010_vm15 = vcmp.eq.s32.totalorder %v2005_v25, %v960_v55 }
 0x458   : > { %v927_v7 = vcvt.f32.s32 %v926_v44 }
 0x459   : > { %v945_v30 = vadd.s32 %v944_v48, %v942_v52  ;;  %1570 = vrcp.f32 %v1035_v49  ;;  %v1034_v50 = vmax.f32 %v1018_v61, 1e-10 }
 0x45a   : > { %v930_v5 = vadd.s32 %v929_v45, %v927_v7  ;;  %v911_v62 = vpop.xlane.xlu0 %910 }
 0x45b   : > { %v1017_v2 = vand.u32 4294967280, %v945_v30  ;;  %v912_v1 = vcvt.f32.s32 %v911_v62  ;;  %v896_v8 = vpop.xlane.xlu1 %895  ;;  %1572 = vrcp.f32 %v1034_v50  ;;  %vm1009_vm0 = vcmp.eq.s32.totalorder %v2034_v15, %v945_v30 }
 0x45c   : > { %v1016_v32 = vand.u32 4294967280, %v930_v5  ;;  %v897_v46 = vcvt.f32.s32 %v896_v8  ;;  %vm1008_vm2 = vcmp.eq.s32.totalorder %v2047_v43, %v930_v5  ;;  %v1406_v40 = vsel %vm1009_vm0, 1.0, %v1622_v16 }
 0x45d   : > { %v1567_v54 = vpop.eup %1566  ;;  %v1033_v47 = vmax.f32 %v1017_v2, 1e-10  ;;  %v915_v59 = vadd.s32 %v914_v11, %v912_v1  ;;  %v1405_v43 = vsel %vm1008_vm2, 1.0, %v1622_v16 }
 0x45e   : > { %v1069_v37 = vmul.f32 %v1567_v54, %v1410_v60  ;;  %v1032_v9 = vmax.f32 %v1016_v32, 1e-10  ;;  %v900_v28 = vadd.s32 %v899_v19, %v897_v46 }
 0x45f   : > { %v1569_v22 = vpop.eup %1568  ;;  %1574 = vrcp.f32 %v1033_v47  ;;  %v1015_v34 = vand.u32 4294967280, %v915_v59  ;;  %vm1007_vm3 = vcmp.eq.s32.totalorder %v2060_v56, %v915_v59 }
 0x460   : > { %v2168_v23 = vadd.f32 %v1069_v37, %v2105_v58  ;;  %v1068_v18 = vmul.f32 %v1569_v22, %v1409_v21  ;;  %1576 = vrcp.f32 %v1032_v9  ;;  %v1014_v63 = vand.u32 4294967280, %v900_v28 }
 0x461   : > { %v1031_v58 = vmax.f32 %v1015_v34, 1e-10  ;;  %vm1006_vm4 = vcmp.eq.s32.totalorder %v2066_v10, %v900_v28  ;;  %v1404_v56 = vsel %vm1007_vm3, 1.0, %v1622_v16  ;;  %v256_v34 = vld [vmem:[%s2226_s27 + $0x18] sm:$0xff] }
 0x462   : > { %v1099_v57 = vsel %vm291_vm1, %v2168_v23, 0.0  ;;  %v2176_v39 = vadd.f32 %v1068_v18, %v2114_v29  ;;  %v1030_v20 = vmax.f32 %v1014_v63, 1e-10  ;;  %v1407_v29 = vsel %vm1010_vm15, 1.0, %v1622_v16  ;;  %v254_v18 = vld [vmem:[%s2226_s27 + $0x8] sm:$0xff] }
 0x463   : > { %1100 = vadd.xlane.f32.xlu0 %v1099_v57  ;;  %1578 = vrcp.f32 %v1031_v58  ;;  %v1403_v35 = vsel %vm1006_vm4, 1.0, %v1622_v16  ;;  %v253_v16 = vld [vmem:[%s2226_s27] sm:$0xff] }
 0x464   : > { %v1096_v27 = vsel %vm291_vm1, %v2176_v39, 0.0  ;;  %1580 = vrcp.f32 %v1030_v20  ;;  %1487 = vmatprep.mubr.msk.f32.mxu0 %vm291_vm1, %v253_v16 }
 0x465   : > { %1097 = vadd.xlane.f32.xlu1 %v1096_v27 }
 0x466   : > { %v1571_v53 = vpop.eup %1570 }
 0x467   : > { %v1067_v36 = vmul.f32 %v1571_v53, %v1408_v4 }
 0x468   : > { %v1573_v12 = vpop.eup %1572 }
 0x469   : > { %v2187_v0 = vadd.f32 %v1067_v36, %v2117_v38  ;;  %v1066_v33 = vmul.f32 %v1573_v12, %v1407_v29 }
 0x46b   : > { %v1093_v13 = vsel %vm291_vm1, %v2187_v0, 0.0  ;;  %v2192_v25 = vadd.f32 %v1066_v33, %v2120_v42 }
 0x46c   : > { %v1575_v31 = vpop.eup %1574  ;;  %1094 = vadd.xlane.f32.xlu0 %v1093_v13 }
 0x46d   : > { %v1577_v17 = vpop.eup %1576  ;;  %v1065_v15 = vmul.f32 %v1575_v31, %v1406_v40  ;;  %v1090_v38 = vsel %vm291_vm1, %v2192_v25, 0.0 }
 0x46e   : > { %v1064_v14 = vmul.f32 %v1577_v17, %v1405_v43  ;;  %1091 = vadd.xlane.f32.xlu1 %v1090_v38 }
 0x46f   : > { %v2201_v55 = vadd.f32 %v1065_v15, %v2127_v3 }
 0x470   : > { %v1579_v42 = vpop.eup %1578  ;;  %v2204_v41 = vadd.f32 %v1064_v14, %v2134_v24 }
 0x471   : > { %v1581_v48 = vpop.eup %1580  ;;  %v1087_v45 = vsel %vm291_vm1, %v2201_v55, 0.0  ;;  %v1063_v10 = vmul.f32 %v1579_v42, %v1404_v56 }
 0x472   : > { %1088 = vadd.xlane.f32.xlu0 %v1087_v45  ;;  %v1084_v52 = vsel %vm291_vm1, %v2204_v41, 0.0  ;;  %v1062_v3 = vmul.f32 %v1581_v48, %v1403_v35 }
 0x473   : > { %1085 = vadd.xlane.f32.xlu1 %v1084_v52  ;;  %v2213_v44 = vadd.f32 %v1063_v10, %v2141_v6  ;;  %v255_v6 = vld [vmem:[%s2226_s27 + $0x10] sm:$0xff] }
 0x474   : > { %v2216_v24 = vadd.f32 %v1062_v3, %v2144_v51  ;;  %1490 = vmatprep.mubr.msk.f32.mxu1 %vm291_vm1, %v255_v6 }
 0x475   : > { %v1081_v26 = vsel %vm291_vm1, %v2213_v44, 0.0 }
 0x476   : > { %1082 = vadd.xlane.f32.xlu0 %v1081_v26  ;;  %v1078_v49 = vsel %vm291_vm1, %v2216_v24, 0.0 }
 0x477   : > { %1079 = vadd.xlane.f32.xlu1 %v1078_v49 }
 0x4ec   : > { %v1101_v51 = vpop.xlane.xlu0 %1100 }
 0x4ed   : > { %1582 = vrcp.f32 %v1101_v51 }
 0x4ee   : > { %v1098_v61 = vpop.xlane.xlu1 %1097 }
 0x4ef   : > { %1584 = vrcp.f32 %v1098_v61 }
 0x4f5   : > { %v1095_v7 = vpop.xlane.xlu0 %1094 }
 0x4f6   : > { %1586 = vrcp.f32 %v1095_v7 }
 0x4f7   : > { %v1092_v30 = vpop.xlane.xlu1 %1091 }
 0x4f8   : > { %1588 = vrcp.f32 %v1092_v30 }
 0x4fa   : > { %v1583_v54 = vpop.eup %1582 }
 0x4fb   : > { %v1117_v60 = vmul.f32 %v1583_v54, %v2168_v23  ;;  %v1089_v5 = vpop.xlane.xlu0 %1088 }
 0x4fc   : > { %v1585_v50 = vpop.eup %1584  ;;  %1590 = vrcp.f32 %v1089_v5  ;;  %v1086_v37 = vpop.xlane.xlu1 %1085 }
 0x4fd   : > { %1471 = vmatprep.subr.msk.mxu0 %vm291_vm1, %v1117_v60  ;;  %1493 = vmatprep.subr.msk.mxu1 %vm291_vm1, %v1117_v60  ;;  %v1116_v62 = vmul.f32 %v1585_v50, %v2176_v39  ;;  %1592 = vrcp.f32 %v1086_v37 }
 0x4fe   : > { %1472 = vmatpush3.xpose.msk.msra.mxu0 %vm291_vm1, %v1117_v60  ;;  %1501 = vmatpush3.xpose.msk.msra.mxu1 %vm291_vm1, %v1117_v60 }
 0x4ff   : > { %1473 = vmatprep.subr.msk.mxu0 %vm291_vm1, %v1116_v62  ;;  %1494 = vmatprep.subr.msk.mxu1 %vm291_vm1, %v1116_v62  ;;  %v1083_v11 = vpop.xlane.xlu0 %1082 }
 0x500   : > { %1594 = vrcp.f32 %v1083_v11  ;;  %v1080_v1 = vpop.xlane.xlu1 %1079 }
 0x501   : > { %1596 = vrcp.f32 %v1080_v1 }
 0x502   : > { %1474 = vmatpush3.xpose.msk.msra.mxu0 %vm291_vm1, %v1116_v62  ;;  %1502 = vmatpush3.xpose.msk.msra.mxu1 %vm291_vm1, %v1116_v62 }
 0x503   : > { %v1587_v2 = vpop.eup %1586 }
 0x504   : > { %v1115_v8 = vmul.f32 %v1587_v2, %v2187_v0 }
 0x505   : > { %v1589_v19 = vpop.eup %1588 }
 0x506   : > { %1475 = vmatprep.subr.msk.mxu0 %vm291_vm1, %v1115_v8  ;;  %1495 = vmatprep.subr.msk.mxu1 %vm291_vm1, %v1115_v8  ;;  %v1114_v32 = vmul.f32 %v1589_v19, %v2192_v25 }
 0x507   : > { %1476 = vmatpush3.xpose.msk.msra.mxu0 %vm291_vm1, %v1115_v8  ;;  %1503 = vmatpush3.xpose.msk.msra.mxu1 %vm291_vm1, %v1115_v8 }
 0x508   : > { %1477 = vmatprep.subr.msk.mxu0 %vm291_vm1, %v1114_v32  ;;  %1496 = vmatprep.subr.msk.mxu1 %vm291_vm1, %v1114_v32 }
 0x509   : > { %v1591_v46 = vpop.eup %1590 }
 0x50a   : > { %v1113_v22 = vmul.f32 %v1591_v46, %v2201_v55  ;;  %v1593_v47 = vpop.eup %1592 }
 0x50b   : > { %1478 = vmatpush3.xpose.msk.msra.mxu0 %vm291_vm1, %v1114_v32  ;;  %1504 = vmatpush3.xpose.msk.msra.mxu1 %vm291_vm1, %v1114_v32  ;;  %v1112_v59 = vmul.f32 %v1593_v47, %v2204_v41 }
 0x50c   : > { %1479 = vmatprep.subr.msk.mxu0 %vm291_vm1, %v1113_v22  ;;  %1497 = vmatprep.subr.msk.mxu1 %vm291_vm1, %v1113_v22 }
 0x50d   : > { %v1595_v23 = vpop.eup %1594 }
 0x50e   : > { %v1111_v21 = vmul.f32 %v1595_v23, %v2213_v44  ;;  %v1597_v9 = vpop.eup %1596 }
 0x50f   : > { %1480 = vmatpush3.xpose.msk.msra.mxu0 %vm291_vm1, %v1113_v22  ;;  %1505 = vmatpush3.xpose.msk.msra.mxu1 %vm291_vm1, %v1113_v22  ;;  %v1110_v28 = vmul.f32 %v1597_v9, %v2216_v24 }
 0x510   : > { %1481 = vmatprep.subr.msk.mxu0 %vm291_vm1, %v1112_v59  ;;  %1498 = vmatprep.subr.msk.mxu1 %vm291_vm1, %v1112_v59 }
 0x513   : > { %1482 = vmatpush3.xpose.msk.msra.mxu0 %vm291_vm1, %v1112_v59  ;;  %1506 = vmatpush3.xpose.msk.msra.mxu1 %vm291_vm1, %v1112_v59 }
 0x514   : > { %1483 = vmatprep.subr.msk.mxu0 %vm291_vm1, %v1111_v21  ;;  %1499 = vmatprep.subr.msk.mxu1 %vm291_vm1, %v1111_v21 }
 0x517   : > { %1484 = vmatpush3.xpose.msk.msra.mxu0 %vm291_vm1, %v1111_v21  ;;  %1507 = vmatpush3.xpose.msk.msra.mxu1 %vm291_vm1, %v1111_v21 }
 0x518   : > { %1485 = vmatprep.subr.msk.mxu0 %vm291_vm1, %v1110_v28  ;;  %1500 = vmatprep.subr.msk.mxu1 %vm291_vm1, %v1110_v28 }
 0x51b   : > { %1486 = vmatpush3.xpose.msk.msra.mxu0 %vm291_vm1, %v1110_v28  ;;  %1508 = vmatpush3.xpose.msk.msra.mxu1 %vm291_vm1, %v1110_v28 }
 0x51e   : > { %1488 = vmatmul.mubr.msk.f32.vlgmr.msra.gmra.mxu0 %vm291_vm1, %v254_v18  ;;  %1491 = vmatmul.mubr.msk.f32.vlgmr.msra.gmra.mxu1 %vm291_vm1, %v256_v34 }
 0x5de   : > { %v1489_v57 = vpop.f32.mrf.mxu0  ;;  %v1492_v63 = vpop.f32.mrf.mxu1 }
 0x5df   : > { %v1433_v39 = vpack.c.bf16 %v1489_v57, %v1489_v57  ;;  %v1435_v58 = vpack.c.bf16 %v1492_v63, %v1492_v63 }
 0x5e0   : > { %v1220_v20 = vpop.f32.mrf.mxu0  ;;  %v1230_v27 = vpop.f32.mrf.mxu1 }
 0x5e1   : > { %1257 = vst.msk [vmem:[%s243_s4 + $0x4] sm:$0xf] %vm1255_vm5, %v1433_v39  ;;  %1259 = vst.msk [vmem:[%s243_s4 + $0xc] sm:$0xf] %vm1255_vm5, %v1435_v58  ;;  %v1432_v53 = vpack.c.bf16 %v1220_v20, %v1220_v20  ;;  %v1434_v4 = vpack.c.bf16 %v1230_v27, %v1230_v27 }
 0x5e3   : > { %1256 = vst.msk [vmem:[%s243_s4] sm:$0xf] %vm1255_vm5, %v1432_v53  ;;  %1258 = vst.msk [vmem:[%s243_s4 + $0x8] sm:$0xf] %vm1255_vm5, %v1434_v4 }
 0x5e4 PF: > { %s13_s14 = sadd.s32 1, %s1620_s14   ;;  %s2293_s12 = smov %s1616_s13 }
 0x5e5   : > { %p10_p5 = scmp.ge.s32.totalorder %s13_s14, 4   ;;  %s2294_s13 = smov %s2296_s15 }
 0x5e7   :  { %12 = sbr.rel (!%p10_p5) target bundleno = 2 (0x2), region = 68 }

// kernel: qpointnet_feature_propagation.6
= control target key start
LH: loop header
LB: loop body
LE: loop exit
PB: predicated region body
PF: predicated region fallthrough
CT: control target
= control target key end

     0   :  { %s1333_s27 = smov 0   ;;  %s1335_s28 = smov 0   ;;  %s1516_s0 = inlined_call_operand.vmem [shape: bf16[2,64,64], index: 0, kind: input, shape index: {}]   ;;  %s1517_s1 = inlined_call_operand.vmem [shape: f32[64,1], index: 1, kind: input, shape index: {}]   ;;  %s1518_s2 = inlined_call_operand.vmem [shape: f32[64,1], index: 2, kind: input, shape index: {}]   ;;  %s1519_s3 = inlined_call_operand.vmem [shape: bf16[64,64], index: 3, kind: input, shape index: {}]   ;;  %s1520_s4 = inlined_call_operand.vmem [shape: bf16[32,64], index: 4, kind: input, shape index: {}]   ;;  %s1521_s5 = inlined_call_operand.vmem [shape: f32[64,1], index: 5, kind: input, shape index: {}]   ;;  %s1522_s6 = inlined_call_operand.vmem [shape: f32[32,1], index: 6, kind: input, shape index: {}]   ;;  %s1523_s7 = inlined_call_operand.vmem [shape: bf16[2,32,64], index: 7, kind: output, shape index: {0}]   ;;  %s1524_s8 = inlined_call_operand.vmem [shape: f32[2,1,2,32], index: 8, kind: output, shape index: {1}]  }
   0x1   :  { %s1337_s29 = smov 0  }
   0x2 LB: > { %s31_s30 = sadd.s32 1, %s1278_s28  ;;  %p1091_p0 = scmp.ge.s32.totalorder %s1282_s29, 1  ;;  %s1282_s29 = sphi %s1337_s29, %s19_s29   ;;  %s1278_s28 = sphi %s1335_s28, %s1526_s28   ;;  %s1274_s27 = sphi %s1333_s27, %s1525_s27  }
   0x3   : > { %p33_p1 = scmp.ge.s32.totalorder %s31_s30, 2  ;;  %p286_p2 = scmp.lt.s32.totalorder %s1282_s29, 3 }
   0x5   : > { %s1528_s30 = smov (%p33_p1, %s31_s30), 0  ;;  %p287_p3 = pnand %p1091_p0, %p286_p2 }
   0x6   : > { %p333_p4 = scmp.lt.s32.totalorder (!%p287_p3), %s1274_s27, 1 }
   0x7   : > { %290 = sbr.rel (%p287_p3) target bundleno = 601 (0x259), region = 48 }
   0xc   : > { %v435_v0 = vld [vmem:[%s1518_s2 + $0x30] sm:$0xff]  ;;  %v1284_v2 = vmov 0   ;;  %v436_v3 = vld [vmem:[%s1518_s2 + $0x38] sm:$0xff]  ;;  %v378_v5 = vld [vmem:[%s1517_s1 + $0x28] sm:$0xff]  ;;  %vm589_vm0 = vcmask 523264   ;;  %s1530_s27 = smov (!%p333_p4, %s1274_s27), 1 }
   0xd   : > { %v379_v1 = vld [vmem:[%s1517_s1 + $0x30] sm:$0xff]  ;;  %1253 = vset.pattern.permute.xlu1 %v1284_v2  ;;  %1252 = vset.pattern.permute.xlu0 %v1284_v2  ;;  %v380_v4 = vld [vmem:[%s1517_s1 + $0x38] sm:$0xff]  ;;  %v377_v6 = vld [vmem:[%s1517_s1 + $0x20] sm:$0xff]  ;;  %s1125_s15 = sshll.u32 %s1530_s27, 5  ;;  %vm1286_vm1 = vmmov 0   ;;  %s1126_s9 = sshll.u32 %s1530_s27, 4 }
   0xe   : > { %469 = vperm.xlu1 %1253, %v435_v0   ;;  %413 = vperm.xlu0 %1252, %v379_v1   ;;  %v434_v7 = vld [vmem:[%s1518_s2 + $0x28] sm:$0xff]  ;;  %v433_v8 = vld [vmem:[%s1518_s2 + $0x20] sm:$0xff]  ;;  %v376_v9 = vld [vmem:[%s1517_s1 + $0x18] sm:$0xff]  ;;  %s1453_s18 = scalar_lea.vmem %s1516_s0, %s1125_s15  ;;  %s348_s12 = scalar_lea.vmem %s1523_s7, %s1126_s9  ;;  %vm780_vm2 = vcmask 519168   ;;  %vm959_vm3 = vcmask 1040384   ;;  %vm961_vm4 = vcmask 254976  }
   0xf   : > { %v375_v10 = vld [vmem:[%s1517_s1 + $0x10] sm:$0xff]  ;;  %v432_v11 = vld [vmem:[%s1518_s2 + $0x18] sm:$0xff]  ;;  %v374_v13 = vld [vmem:[%s1517_s1 + $0x8] sm:$0xff]  ;;  %s1096_s13 = sshll.u32 %s1530_s27, 1 }
  0x10   : > { %v431_v12 = vld [vmem:[%s1518_s2 + $0x10] sm:$0xff]  ;;  %v373_v14 = vld [vmem:[%s1517_s1] sm:$0xff]  ;;  %v430_v15 = vld [vmem:[%s1518_s2 + $0x8] sm:$0xff]  ;;  %s355_s16 = scalar_lea.vmem %s1524_s8, %s1096_s13 }
  0x11   : > { %v429_v16 = vld [vmem:[%s1518_s2] sm:$0xff]  ;;  %v528_v17 = vld [vmem:[%s1521_s5 + $0x38] sm:$0xff]  ;;  %v523_v20 = vld [vmem:[%s1521_s5 + $0x10] sm:$0xff] }
  0x12   : > { %474 = vperm.xlu1 %1253, %v436_v3   ;;  %418 = vperm.xlu0 %1252, %v380_v4   ;;  %v524_v18 = vld [vmem:[%s1521_s5 + $0x18] sm:$0xff]  ;;  %v1254_v19 = vld [vmem:[%s1519_s3] sm:$0xff]   ;;  %v669_v23 = vld [vmem:[%s1522_s6 + $0x10] sm:$0xff] }
  0x13   : > { %v670_v21 = vld [vmem:[%s1522_s6 + $0x18] sm:$0xff]  ;;  %1182 = vmatprep.mubr.msk.bf16.mxu0 %vm589_vm0, %v1254_v19  ;;  %v1256_v22 = vld [vmem:[%s1520_s4] sm:$0xff]   ;;  %v527_v24 = vld [vmem:[%s1521_s5 + $0x30] sm:$0xff] }
  0x14   : > { %1198 = vmatprep.mubr.msk.bf16.mxu1 %vm589_vm0, %v1256_v22  ;;  %v526_v25 = vld [vmem:[%s1521_s5 + $0x28] sm:$0xff]  ;;  %v521_v27 = vld [vmem:[%s1521_s5] sm:$0xff]  ;;  %v1149_v31 = vld [vmem:[%s1453_s18 + $0x18] sm:$0xff]  }
  0x15   : > { %v522_v26 = vld [vmem:[%s1521_s5 + $0x8] sm:$0xff]  ;;  %v667_v29 = vld [vmem:[%s1522_s6] sm:$0xff]  ;;  %v1145_v32 = vunpack.c.l.bf16 %v1149_v31  ;;  %v1146_v36 = vunpack.c.h.bf16 %v1149_v31  ;;  %v1148_v40 = vld [vmem:[%s1453_s18 + $0x10] sm:$0xff]  }
  0x16   : > { %408 = vperm.xlu1 %1253, %v378_v5   ;;  %403 = vperm.xlu0 %1252, %v377_v6   ;;  %v668_v28 = vld [vmem:[%s1522_s6 + $0x8] sm:$0xff]  ;;  %v525_v30 = vld [vmem:[%s1521_s5 + $0x20] sm:$0xff]  ;;  %v1142_v44 = vunpack.c.h.bf16 %v1148_v40  ;;  %v1141_v45 = vunpack.c.l.bf16 %v1148_v40 }
  0x17   : > { %v1147_v56 = vld [vmem:[%s1453_s18 + $0x8] sm:$0xff]  }
  0x18   : > { %v1138_v62 = vunpack.c.h.bf16 %v1147_v56  ;;  %v1137_v63 = vunpack.c.l.bf16 %v1147_v56 }
  0x1a   : > { %464 = vperm.xlu1 %1253, %v434_v7   ;;  %459 = vperm.xlu0 %1252, %v433_v8  }
  0x1e   : > { %398 = vperm.xlu1 %1253, %v376_v9   ;;  %393 = vperm.xlu0 %1252, %v375_v10   ;;  %v1132_v10 = vld [vmem:[%s1453_s18] sm:$0xff]  }
  0x22   : > { %454 = vperm.xlu1 %1253, %v432_v11   ;;  %449 = vperm.xlu0 %1252, %v431_v12  }
  0x26   : > { %388 = vperm.xlu1 %1253, %v374_v13   ;;  %383 = vperm.xlu0 %1252, %v373_v14  }
  0x2a   : > { %444 = vperm.xlu1 %1253, %v430_v15   ;;  %439 = vperm.xlu0 %1252, %v429_v16   ;;  %v1134_v15 = vunpack.c.h.bf16 %v1132_v10  ;;  %v1133_v16 = vunpack.c.l.bf16 %v1132_v10 }
  0x2e   : > { %566 = vperm.xlu1 %1253, %v528_v17   ;;  %546 = vperm.xlu0 %1252, %v524_v18  }
  0x32   : > { %541 = vperm.xlu1 %1253, %v523_v20   ;;  %688 = vperm.xlu0 %1252, %v670_v21  }
  0x36   : > { %683 = vperm.xlu1 %1253, %v669_v23   ;;  %561 = vperm.xlu0 %1252, %v527_v24  }
  0x3a   : > { %556 = vperm.xlu1 %1253, %v526_v25   ;;  %536 = vperm.xlu0 %1252, %v522_v26  }
  0x3e   : > { %531 = vperm.xlu1 %1253, %v521_v27   ;;  %678 = vperm.xlu0 %1252, %v668_v28  }
  0x42   : > { %673 = vperm.xlu1 %1253, %v667_v29   ;;  %551 = vperm.xlu0 %1252, %v525_v30  }
  0x89   : > { %v470_v33 = vpop.permute.xlu1 %469  ;;  %v414_v34 = vpop.permute.xlu0 %413 }
  0x8a   : > { %v427_v35 = vmul.f32 %v1145_v32, %v414_v34 }
  0x8c   : > { %v483_v37 = vadd.f32 %v470_v33, %v427_v35  ;;  %v1255_v35 = vld [vmem:[%s1519_s3 + $0x8] sm:$0xff]  }
  0x8d   : > { %v475_v38 = vpop.permute.xlu1 %474  ;;  %v419_v39 = vpop.permute.xlu0 %418 }
  0x8e   : > { %v428_v41 = vmul.f32 %v1146_v36, %v419_v39  ;;  %v491_v42 = vmax.f32 %v483_v37, 0.0  ;;  %v1258_v36 = vld [vmem:[%s1519_s3 + $0x10] sm:$0xff]   ;;  %v1257_v37 = vld [vmem:[%s1520_s4 + $0x8] sm:$0xff]   ;;  %v1285_v39 = vmov 0.0  }
  0x90   : > { %v484_v43 = vadd.f32 %v475_v38, %v428_v41  ;;  %v503_v49 = vmul.f32 %v491_v42, %v491_v42  ;;  %v1259_v38 = vld [vmem:[%s1519_s3 + $0x18] sm:$0xff]  }
  0x91   : > { %v409_v46 = vpop.permute.xlu1 %408  ;;  %v404_v47 = vpop.permute.xlu0 %403 }
  0x92   : > { %v492_v48 = vmax.f32 %v484_v43, 0.0  ;;  %v426_v50 = vmul.f32 %v1142_v44, %v409_v46  ;;  %v425_v51 = vmul.f32 %v1141_v45, %v404_v47 }
  0x94   : > { %v496_v52 = vpack.c.bf16 %v492_v48, %v491_v42  ;;  %v504_v53 = vmul.f32 %v492_v48, %v492_v48 }
  0x95   : > { %v465_v54 = vpop.permute.xlu1 %464  ;;  %v460_v55 = vpop.permute.xlu0 %459 }
  0x96   : > { %v482_v57 = vadd.f32 %v465_v54, %v426_v50  ;;  %v481_v58 = vadd.f32 %v460_v55, %v425_v51  ;;  %1174 = vmatprep.subr.bf16.mxu0 %v496_v52  ;;  %v508_v59 = vpack.c.bf16 %v504_v53, %v503_v49 }
  0x97   : > { %1175 = vmatpush3.bf16.msra.mxu0 %v496_v52 }
  0x98   : > { %v490_v60 = vmax.f32 %v482_v57, 0.0  ;;  %v489_v61 = vmax.f32 %v481_v58, 0.0  ;;  %1190 = vmatprep.subr.bf16.mxu1 %v508_v59 }
  0x99   : > { %v399_v0 = vpop.permute.xlu1 %398  ;;  %v394_v1 = vpop.permute.xlu0 %393  ;;  %1191 = vmatpush3.bf16.msra.mxu1 %v508_v59 }
  0x9a   : > { %v502_v2 = vmul.f32 %v490_v60, %v490_v60  ;;  %v495_v3 = vpack.c.bf16 %v490_v60, %v489_v61  ;;  %v501_v4 = vmul.f32 %v489_v61, %v489_v61  ;;  %v424_v5 = vmul.f32 %v1138_v62, %v399_v0 }
  0x9b   : > { %v423_v6 = vmul.f32 %v1137_v63, %v394_v1 }
  0x9c   : > { %1176 = vmatprep.subr.bf16.mxu0 %v495_v3  ;;  %v507_v7 = vpack.c.bf16 %v502_v2, %v501_v4 }
  0x9d   : > { %v455_v8 = vpop.permute.xlu1 %454  ;;  %v450_v9 = vpop.permute.xlu0 %449  ;;  %1177 = vmatpush3.bf16.msra.mxu0 %v495_v3 }
  0x9e   : > { %v480_v11 = vadd.f32 %v455_v8, %v424_v5  ;;  %v479_v12 = vadd.f32 %v450_v9, %v423_v6  ;;  %1192 = vmatprep.subr.bf16.mxu1 %v507_v7 }
  0x9f   : > { %1193 = vmatpush3.bf16.msra.mxu1 %v507_v7 }
  0xa0   : > { %v488_v13 = vmax.f32 %v480_v11, 0.0  ;;  %v487_v14 = vmax.f32 %v479_v12, 0.0 }
  0xa1   : > { %v389_v17 = vpop.permute.xlu1 %388  ;;  %v384_v18 = vpop.permute.xlu0 %383 }
  0xa2   : > { %v500_v19 = vmul.f32 %v488_v13, %v488_v13  ;;  %v494_v20 = vpack.c.bf16 %v488_v13, %v487_v14  ;;  %v499_v21 = vmul.f32 %v487_v14, %v487_v14  ;;  %v422_v22 = vmul.f32 %v1134_v15, %v389_v17 }
  0xa3   : > { %v421_v23 = vmul.f32 %v1133_v16, %v384_v18 }
  0xa4   : > { %1178 = vmatprep.subr.bf16.mxu0 %v494_v20  ;;  %v506_v24 = vpack.c.bf16 %v500_v19, %v499_v21 }
  0xa5   : > { %v445_v25 = vpop.permute.xlu1 %444  ;;  %v440_v26 = vpop.permute.xlu0 %439  ;;  %1179 = vmatpush3.bf16.msra.mxu0 %v494_v20 }
  0xa6   : > { %v478_v27 = vadd.f32 %v445_v25, %v422_v22  ;;  %v477_v28 = vadd.f32 %v440_v26, %v421_v23  ;;  %1194 = vmatprep.subr.bf16.mxu1 %v506_v24 }
  0xa7   : > { %1195 = vmatpush3.bf16.msra.mxu1 %v506_v24 }
  0xa8   : > { %v486_v29 = vmax.f32 %v478_v27, 0.0  ;;  %v485_v30 = vmax.f32 %v477_v28, 0.0  ;;  %v1287_v28 = vmov 1.0  }
  0xa9   : > { %v547_v40 = vpop.permute.xlu0 %546  ;;  %v567_v41 = vpop.permute.xlu1 %566 }
  0xaa   : > { %v498_v31 = vmul.f32 %v486_v29, %v486_v29  ;;  %v493_v32 = vpack.c.bf16 %v486_v29, %v485_v30  ;;  %v497_v33 = vmul.f32 %v485_v30, %v485_v30 }
  0xac   : > { %1180 = vmatprep.subr.bf16.mxu0 %v493_v32  ;;  %v505_v34 = vpack.c.bf16 %v498_v31, %v497_v33 }
  0xad   : > { %1181 = vmatpush3.bf16.msra.mxu0 %v493_v32  ;;  %v689_v42 = vpop.permute.xlu0 %688  ;;  %v542_v43 = vpop.permute.xlu1 %541 }
  0xae   : > { %1196 = vmatprep.subr.bf16.mxu1 %v505_v34  ;;  %1202 = vmatprep.subr.mxu0 %v1285_v39 }
  0xaf   : > { %1197 = vmatpush3.bf16.msra.mxu1 %v505_v34 }
  0xb0   : > { %1183 = vmatmul.mubr.msk.bf16.vlgmr.msra.gmra.mxu0 %vm589_vm0, %v1255_v35  ;;  %1213 = vmatprep.subr.mxu1 %v1285_v39 }
  0xb1   : > { %1186 = vmatprep.mubr.msk.bf16.mxu0 %vm589_vm0, %v1258_v36  ;;  %v562_v44 = vpop.permute.xlu0 %561  ;;  %v684_v45 = vpop.permute.xlu1 %683 }
  0xb2   : > { %1199 = vmatmul.mubr.msk.bf16.vlgmr.msra.gmra.mxu1 %vm589_vm0, %v1257_v37 }
  0xb3   : > { %1221 = vmatprep.mubr.msk.f32.mxu1 %vm1286_vm1, %v1285_v39 }
  0xb5   : > { %v537_v46 = vpop.permute.xlu0 %536  ;;  %v557_v47 = vpop.permute.xlu1 %556 }
  0xb8   : > { %1187 = vmatmul.mubr.msk.bf16.gmra.mxu0 %vm589_vm0, %v1259_v38 }
  0xb9   : > { %1210 = vmatprep.mubr.msk.f32.mxu0 %vm1286_vm1, %v1285_v39  ;;  %v679_v51 = vpop.permute.xlu0 %678  ;;  %v532_v53 = vpop.permute.xlu1 %531 }
  0xbd   : > { %v552_v59 = vpop.permute.xlu0 %551  ;;  %v674_v2 = vpop.permute.xlu1 %673 }
 0x170   : > { %v1184_v48 = vpop.f32.mrf.mxu0 }
 0x171   : > { %v645_v57 = vadd.f32 %v1184_v48, %v542_v43 }
 0x172   : > { %v636_v49 = vpop.f32.mrf.mxu0  ;;  %v1200_v50 = vpop.f32.mrf.mxu1 }
 0x173   : > { %v637_v61 = vadd.f32 %v636_v49, %v532_v53  ;;  %v750_v62 = vadd.f32 %v1200_v50, %v684_v45 }
 0x174   : > { %v1185_v52 = vpop.f32.mrf.mxu0  ;;  %v741_v55 = vpop.f32.mrf.mxu1 }
 0x175   : > { %v648_v3 = vadd.f32 %v1185_v52, %v547_v40  ;;  %v742_v5 = vadd.f32 %v741_v55, %v674_v2 }
 0x176   : > { %v639_v54 = vpop.f32.mrf.mxu0  ;;  %v1201_v63 = vpop.f32.mrf.mxu1 }
 0x177   : > { %v753_v10 = vadd.f32 %v1201_v63, %v689_v42  ;;  %v640_v15 = vadd.f32 %v639_v54, %v537_v46 }
 0x178   : > { %v1188_v56 = vpop.f32.mrf.mxu0  ;;  %v744_v12 = vpop.f32.mrf.mxu1 }
 0x179   : > { %v661_v58 = vadd.f32 %v1188_v56, %v562_v44  ;;  %v745_v19 = vadd.f32 %v744_v12, %v679_v51 }
 0x17a   : > { %v652_v60 = vpop.f32.mrf.mxu0 }
 0x17b   : > { %v758_v0 = vmul.f32 %v661_v58, %v645_v57  ;;  %v653_v1 = vadd.f32 %v652_v60, %v552_v59 }
 0x17c   : > { %v1189_v4 = vpop.f32.mrf.mxu0 }
 0x17d   : > { %v762_v6 = vadd.f32 %v758_v0, %v750_v62  ;;  %v756_v7 = vmul.f32 %v653_v1, %v637_v61  ;;  %v664_v8 = vadd.f32 %v1189_v4, %v567_v41 }
 0x17e   : > { %v655_v9 = vpop.f32.mrf.mxu0 }
 0x17f   : > { %v1129_v11 = vpack.c.bf16 %v762_v6, %v762_v6  ;;  %v760_v13 = vadd.f32 %v756_v7, %v742_v5  ;;  %v759_v14 = vmul.f32 %v664_v8, %v648_v3  ;;  %v656_v16 = vadd.f32 %v655_v9, %v557_v47 }
 0x180   : > { %v872_v25 = vmul.f32 %v762_v6, %v762_v6 }
 0x181   : > { %783 = vst.msk [vmem:[%s348_s12 + $0x8] sm:$0xf] %vm780_vm2, %v1129_v11  ;;  %v1127_v17 = vpack.c.bf16 %v760_v13, %v760_v13  ;;  %v763_v18 = vadd.f32 %v759_v14, %v753_v10  ;;  %v757_v20 = vmul.f32 %v656_v16, %v640_v15  ;;  %v870_v27 = vmul.f32 %v760_v13, %v760_v13 }
 0x183   : > { %781 = vst.msk [vmem:[%s348_s12] sm:$0xf] %vm780_vm2, %v1127_v17  ;;  %v1130_v21 = vpack.c.bf16 %v763_v18, %v763_v18  ;;  %v873_v22 = vmul.f32 %v763_v18, %v763_v18  ;;  %1203 = vmatpush3.xpose.msk.msra.mxu0 %vm589_vm0, %v763_v18  ;;  %v761_v23 = vadd.f32 %v757_v20, %v745_v19 }
 0x184   : > { %1204 = vmatprep.subr.mxu0 %v1285_v39 }
 0x185   : > { %784 = vst.msk [vmem:[%s348_s12 + $0xc] sm:$0xf] %vm780_vm2, %v1130_v21  ;;  %1214 = vmatpush3.xpose.msk.msra.mxu1 %vm589_vm0, %v873_v22  ;;  %v1128_v24 = vpack.c.bf16 %v761_v23, %v761_v23  ;;  %v871_v26 = vmul.f32 %v761_v23, %v761_v23 }
 0x186   : > { %1215 = vmatprep.subr.mxu1 %v1285_v39 }
 0x187   : > { %1205 = vmatpush3.xpose.msk.msra.mxu0 %vm589_vm0, %v762_v6  ;;  %782 = vst.msk [vmem:[%s348_s12 + $0x4] sm:$0xf] %vm780_vm2, %v1128_v24 }
 0x188   : > { %1206 = vmatprep.subr.mxu0 %v1285_v39 }
 0x189   : > { %1216 = vmatpush3.xpose.msk.msra.mxu1 %vm589_vm0, %v872_v25 }
 0x18a   : > { %1217 = vmatprep.subr.mxu1 %v1285_v39 }
 0x18b   : > { %1207 = vmatpush3.xpose.msk.msra.mxu0 %vm589_vm0, %v761_v23 }
 0x18c   : > { %1208 = vmatprep.subr.mxu0 %v1285_v39 }
 0x18d   : > { %1218 = vmatpush3.xpose.msk.msra.mxu1 %vm589_vm0, %v871_v26 }
 0x18e   : > { %1219 = vmatprep.subr.mxu1 %v1285_v39 }
 0x18f   : > { %1209 = vmatpush3.xpose.msk.msra.mxu0 %vm589_vm0, %v760_v13 }
 0x191   : > { %1220 = vmatpush3.xpose.msk.msra.mxu1 %vm589_vm0, %v870_v27 }
 0x192   : > { %1211 = vmatmul.mubr.msk.f32.vlgmr.msra.gmra.mxu0 %vm589_vm0, %v1287_v28 }
 0x194   : > { %1222 = vmatmul.mubr.msk.f32.vlgmr.msra.gmra.mxu1 %vm589_vm0, %v1287_v28 }
 0x252   : > { %v866_v29 = vpop.f32.mrf.mxu0 }
 0x254   : > { %v952_v30 = vpop.f32.mrf.mxu1  ;;  %v1212_v31 = vpop.f32.mrf.mxu0 }
 0x255   : > { %v957_v32 = vrot.slane %v952_v30, 7 }
 0x256   : > { %v1223_v33 = vpop.f32.mrf.mxu1 }
 0x257   : > { %v960_v34 = vsel %vm959_vm3, %v866_v29, %v957_v32 }
 0x258   : > { %962 = vst.msk [vmem:[%s355_s16] sm:$0x3] %vm961_vm4, %v960_v34 }
 0x259 PF: > { %s19_s29 = sadd.s32 1, %s1282_s29   ;;  %s1525_s27 = smov %s1278_s28 }
 0x25a   : > { %p16_p5 = scmp.ge.s32.totalorder %s19_s29, 4   ;;  %s1526_s28 = smov %s1528_s30 }
 0x25c   :  { %18 = sbr.rel (!%p16_p5) target bundleno = 2 (0x2), region = 90 }

// kernel: qpointnet_feature_propagation.5
= control target key start
LH: loop header
LB: loop body
LE: loop exit
PB: predicated region body
PF: predicated region fallthrough
CT: control target
= control target key end

     0   :  { %s1974_s30 = smov 0   ;;  %s1976_s10 = smov 0   ;;  %s2333_s0 = inlined_call_operand.vmem [shape: f32[2,16,64], index: 0, kind: input, shape index: {}]   ;;  %s2334_s1 = inlined_call_operand.vmem [shape: bf16[2,32,64], index: 1, kind: input, shape index: {}]   ;;  %s2335_s2 = inlined_call_operand.vmem [shape: bf16[128,16], index: 2, kind: input, shape index: {}]   ;;  %s2336_s3 = inlined_call_operand.vmem [shape: bf16[128,32], index: 3, kind: input, shape index: {}]   ;;  %s2337_s4 = inlined_call_operand.vmem [shape: bf16[64,16], index: 4, kind: input, shape index: {}]   ;;  %s2338_s5 = inlined_call_operand.vmem [shape: bf16[64,32], index: 5, kind: input, shape index: {}]   ;;  %s2339_s6 = inlined_call_operand.vmem [shape: f32[128,1], index: 6, kind: input, shape index: {}]   ;;  %s2340_s7 = inlined_call_operand.vmem [shape: f32[64,1], index: 7, kind: input, shape index: {}]   ;;  %s2341_s8 = inlined_call_operand.vmem [shape: bf16[2,64,64], index: 8, kind: output, shape index: {0}]   ;;  %s2342_s9 = inlined_call_operand.vmem [shape: f32[2,1,2,64], index: 9, kind: output, shape index: {1}]  }
   0x1   :  { %s1978_s11 = smov 0  }
   0x2 LB: > { %s32_s12 = sadd.s32 1, %s1914_s10  ;;  %p1591_p0 = scmp.ge.s32.totalorder %s1918_s11, 1  ;;  %s1918_s11 = sphi %s1978_s11, %s20_s11   ;;  %s1914_s10 = sphi %s1976_s10, %s2371_s10   ;;  %s1910_s30 = sphi %s1974_s30, %s2370_s30  }
   0x3   : > { %p34_p1 = scmp.ge.s32.totalorder %s32_s12, 2  ;;  %p326_p2 = scmp.lt.s32.totalorder %s1918_s11, 3 }
   0x5   : > { %s2373_s12 = smov (%p34_p1, %s32_s12), 0  ;;  %p327_p3 = pnand %p1591_p0, %p326_p2 }
   0x7   : > { %330 = sbr.rel (%p327_p3) target bundleno = 509 (0x1fd), region = 52 }
   0xc   : > { %p383_p4 = scmp.lt.s32.totalorder %s1910_s30, 1  ;;  %v1870_v0 = vld [vmem:[%s2336_s3] sm:$0xff]   ;;  %vm527_vm0 = vcmask 261120   ;;  %v1871_v1 = vld [vmem:[%s2336_s3 + $0x30] sm:$0xff]   ;;  %v1920_v4 = vmov 0   ;;  %v1872_v18 = vld [vmem:[%s2336_s3 + $0x8] sm:$0xff]  }
   0xd   : > { %1740 = vmatprep.mubr.msk.bf16.mxu0 %vm527_vm0, %v1870_v0  ;;  %1752 = vmatprep.mubr.msk.bf16.mxu1 %vm527_vm0, %v1871_v1  ;;  %v1873_v19 = vld [vmem:[%s2336_s3 + $0x38] sm:$0xff]   ;;  %v1874_v21 = vld [vmem:[%s2336_s3 + $0x10] sm:$0xff]   ;;  %v1875_v23 = vld [vmem:[%s2338_s5] sm:$0xff]   ;;  %vm794_vm1 = vcmask 130048   ;;  %vm1922_vm2 = vmmov 0   ;;  %vm1229_vm3 = vcmask 519168  }
   0xe   : > { %s2375_s30 = smov (!%p383_p4, %s1910_s30), 1  ;;  %1867 = vset.pattern.permute.xlu1 %v1920_v4  ;;  %1866 = vset.pattern.permute.xlu0 %v1920_v4  ;;  %v1876_v25 = vld [vmem:[%s2336_s3 + $0x18] sm:$0xff]   ;;  %v1877_v26 = vld [vmem:[%s2338_s5 + $0x8] sm:$0xff]   ;;  %v1878_v27 = vld [vmem:[%s2336_s3 + $0x20] sm:$0xff]   ;;  %vm1238_vm4 = vcmask 523264   ;;  %vm1441_vm5 = vcmask 1040384  }
   0xf   : > { %s1677_s17 = sshll.u32 %s2375_s30, 4  ;;  %v1879_v28 = vld [vmem:[%s2338_s5 + $0x10] sm:$0xff]   ;;  %v1132_v29 = vld [vmem:[%s2340_s7 + $0x38] sm:$0xff]  ;;  %v1880_v32 = vld [vmem:[%s2336_s3 + $0x28] sm:$0xff]   ;;  %s1679_s14 = sshll.u32 %s2375_s30, 5  ;;  %vm1443_vm6 = vcmask 517120  }
  0x10   : > { %s398_s20 = scalar_lea.vmem %s2334_s1, %s1677_s17  ;;  %s390_s23 = scalar_lea.vmem %s2333_s0, %s1677_s17  ;;  %v1020_v30 = vld [vmem:[%s2339_s6 + $0x38] sm:$0xff]  ;;  %1170 = vperm.xlu1 %1867, %v1132_v29   ;;  %v1019_v31 = vld [vmem:[%s2339_s6 + $0x30] sm:$0xff]  ;;  %v1882_v35 = vld [vmem:[%s2335_s2] sm:$0xff]  }
  0x11   : > { %v447_v2 = vld [vmem:[%s398_s20 + $0x8] sm:$0xff]   ;;  %v445_v3 = vld [vmem:[%s398_s20] sm:$0xff]   ;;  %1066 = vperm.xlu0 %1866, %v1020_v30   ;;  %v1881_v33 = vld [vmem:[%s2338_s5 + $0x18] sm:$0xff]   ;;  %s2228_s17 = scalar_lea.vmem %s2341_s8, %s1679_s14  ;;  %s1598_s18 = sshll.u32 %s2375_s30, 1 }
  0x12   : > { %v451_v5 = vunpack.c.l.bf16 %v447_v2  ;;  %v452_v6 = vunpack.c.h.bf16 %v447_v2  ;;  %v449_v7 = vunpack.c.l.bf16 %v445_v3  ;;  %v450_v8 = vunpack.c.h.bf16 %v445_v3  ;;  %1736 = vmatprep.subr.bf16.mxu0 %v447_v2  ;;  %1834 = vmatprep.subr.bf16.mxu1 %v447_v2  ;;  %v415_v11 = vld [vmem:[%s390_s23] sm:$0xff]  ;;  %v416_v12 = vld [vmem:[%s390_s23 + $0x8] sm:$0xff]  ;;  %v1028_v34 = vld [vmem:[%s2339_s6 + $0x78] sm:$0xff]  ;;  %s413_s21 = scalar_lea.vmem %s2342_s9, %s1598_s18 }
  0x13   : > { %1737 = vmatpush3.bf16.msra.mxu0 %v447_v2  ;;  %1836 = vmatpush3.bf16.msra.mxu1 %v447_v2  ;;  %v418_v16 = vmul.f32 %v415_v11, %v415_v11  ;;  %v419_v17 = vmul.f32 %v416_v12, %v416_v12  ;;  %v417_v24 = vpack.c.bf16 %v416_v12, %v415_v11  ;;  %v1883_v36 = vld [vmem:[%s2337_s4] sm:$0xff]   ;;  %v1131_v37 = vld [vmem:[%s2340_s7 + $0x30] sm:$0xff]  ;;  %v1026_v39 = vld [vmem:[%s2339_s6 + $0x68] sm:$0xff] }
  0x14   : > { %v455_v9 = vmul.f32 %v451_v5, %v451_v5  ;;  %v456_v10 = vmul.f32 %v452_v6, %v452_v6  ;;  %v453_v13 = vmul.f32 %v449_v7, %v449_v7  ;;  %v454_v14 = vmul.f32 %v450_v8, %v450_v8  ;;  %1738 = vmatprep.subr.bf16.mxu0 %v445_v3  ;;  %v1027_v38 = vld [vmem:[%s2339_s6 + $0x70] sm:$0xff]  ;;  %v1884_v40 = vld [vmem:[%s2335_s2 + $0x8] sm:$0xff]   ;;  %v1017_v45 = vld [vmem:[%s2339_s6 + $0x20] sm:$0xff] }
  0x15   : > { %1835 = vmatprep.subr.bf16.mxu1 %v445_v3  ;;  %v420_v20 = vpack.c.bf16 %v419_v17, %v418_v16  ;;  %1061 = vperm.xlu1 %1867, %v1019_v31   ;;  %v1885_v41 = vld [vmem:[%s2337_s4 + $0x8] sm:$0xff]   ;;  %v1886_v43 = vld [vmem:[%s2335_s2 + $0x10] sm:$0xff]   ;;  %v1129_v47 = vld [vmem:[%s2340_s7 + $0x20] sm:$0xff] }
  0x16   : > { %v458_v15 = vpack.c.bf16 %v456_v10, %v455_v9  ;;  %v457_v22 = vpack.c.bf16 %v454_v14, %v453_v13  ;;  %1106 = vperm.xlu0 %1866, %v1028_v34   ;;  %v1018_v42 = vld [vmem:[%s2339_s6 + $0x28] sm:$0xff]  ;;  %v1887_v44 = vld [vmem:[%s2337_s4 + $0x10] sm:$0xff]   ;;  %v1888_v48 = vld [vmem:[%s2335_s2 + $0x18] sm:$0xff]  }
  0x17   : > { %1739 = vmatpush3.bf16.msra.mxu0 %v445_v3  ;;  %1837 = vmatpush3.bf16.msra.mxu1 %v445_v3  ;;  %v1130_v46 = vld [vmem:[%s2340_s7 + $0x28] sm:$0xff]  ;;  %v1889_v49 = vld [vmem:[%s2337_s4 + $0x18] sm:$0xff]   ;;  %v1025_v50 = vld [vmem:[%s2339_s6 + $0x60] sm:$0xff]  ;;  %v2343_v3 = vmov 0.0  }
  0x18   : > { %1756 = vmatprep.subr.bf16.mxu1 %v458_v15  ;;  %1786 = vmatprep.subr.bf16.mxu0 %v420_v20  ;;  %v1890_v51 = vld [vmem:[%s2335_s2 + $0x20] sm:$0xff]   ;;  %v1024_v52 = vld [vmem:[%s2339_s6 + $0x58] sm:$0xff]  ;;  %v1015_v54 = vld [vmem:[%s2339_s6 + $0x10] sm:$0xff] }
  0x19   : > { %1165 = vperm.xlu1 %1867, %v1131_v37   ;;  %v1016_v53 = vld [vmem:[%s2339_s6 + $0x18] sm:$0xff]  ;;  %v1891_v55 = vld [vmem:[%s2335_s2 + $0x28] sm:$0xff]   ;;  %v1892_v57 = vld [vmem:[%s2335_s2 + $0x30] sm:$0xff]  }
  0x1a   : > { %1741 = vmatmul.mubr.msk.bf16.vlgmr.msra.gmra.mxu0 %vm527_vm0, %v1872_v18  ;;  %1753 = vmatmul.mubr.msk.bf16.vlgmr.msra.gmra.mxu1 %vm527_vm0, %v1873_v19  ;;  %v1128_v56 = vld [vmem:[%s2340_s7 + $0x18] sm:$0xff]  ;;  %v1127_v58 = vld [vmem:[%s2340_s7 + $0x10] sm:$0xff]  ;;  %v1022_v60 = vld [vmem:[%s2339_s6 + $0x48] sm:$0xff] }
  0x1b   : > { %1757 = vmatpush3.bf16.msra.mxu1 %v458_v15  ;;  %1744 = vmatprep.mubr.msk.bf16.mxu0 %vm527_vm0, %v1874_v21  ;;  %v1023_v59 = vld [vmem:[%s2339_s6 + $0x50] sm:$0xff]  ;;  %v1893_v61 = vld [vmem:[%s2335_s2 + $0x38] sm:$0xff]   ;;  %v1014_v62 = vld [vmem:[%s2339_s6 + $0x8] sm:$0xff] }
  0x1c   : > { %1758 = vmatprep.subr.bf16.mxu1 %v457_v22  ;;  %1760 = vmatprep.mubr.msk.bf16.mxu1 %vm527_vm0, %v1875_v23  ;;  %v1013_v63 = vld [vmem:[%s2339_s6] sm:$0xff]  ;;  %v1126_v0 = vld [vmem:[%s2340_s7 + $0x8] sm:$0xff] }
  0x1d   : > { %1787 = vmatpush3.bf16.msra.mxu0 %v420_v20  ;;  %1101 = vperm.xlu0 %1866, %v1027_v38   ;;  %v1125_v1 = vld [vmem:[%s2340_s7] sm:$0xff] }
  0x1e   : > { %1096 = vperm.xlu1 %1867, %v1026_v39   ;;  %v1021_v2 = vld [vmem:[%s2339_s6 + $0x40] sm:$0xff]  ;;  %1815 = vmatprep.subr.mxu0 %v2343_v3 }
  0x1f   : > { %1759 = vmatpush3.bf16.msra.mxu1 %v457_v22 }
  0x20   : > { %1768 = vmatprep.subr.bf16.mxu1 %v417_v24 }
  0x21   : > { %1056 = vperm.xlu0 %1866, %v1018_v42  }
  0x22   : > { %1745 = vmatmul.mubr.msk.bf16.gmra.mxu0 %vm527_vm0, %v1876_v25  ;;  %1761 = vmatmul.mubr.msk.bf16.vlgmr.msra.gmra.mxu1 %vm527_vm0, %v1877_v26 }
  0x23   : > { %1769 = vmatpush3.bf16.msra.mxu1 %v417_v24  ;;  %1748 = vmatprep.mubr.msk.bf16.mxu0 %vm527_vm0, %v1878_v27 }
  0x24   : > { %1764 = vmatprep.mubr.msk.bf16.mxu1 %vm527_vm0, %v1879_v28  ;;  %1051 = vperm.xlu1 %1867, %v1017_v45  }
  0x25   : > { %1160 = vperm.xlu0 %1866, %v1130_v46   ;;  %1796 = vmatprep.subr.mxu1 %v2343_v3 }
  0x28   : > { %1155 = vperm.xlu1 %1867, %v1129_v47  }
  0x29   : > { %1091 = vperm.xlu0 %1866, %v1025_v50  }
  0x2a   : > { %1749 = vmatmul.mubr.msk.bf16.gmra.mxu0 %vm527_vm0, %v1880_v32  ;;  %1765 = vmatmul.mubr.msk.bf16.gmra.mxu1 %vm527_vm0, %v1881_v33 }
  0x2b   : > { %1770 = vmatprep.mubr.msk.bf16.mxu1 %vm794_vm1, %v1882_v35  ;;  %1788 = vmatprep.mubr.msk.bf16.mxu0 %vm794_vm1, %v1883_v36 }
  0x2c   : > { %1086 = vperm.xlu1 %1867, %v1024_v52  }
  0x2d   : > { %1046 = vperm.xlu0 %1866, %v1016_v53  }
  0x30   : > { %1041 = vperm.xlu1 %1867, %v1015_v54  }
  0x31   : > { %1150 = vperm.xlu0 %1866, %v1128_v56  }
  0x32   : > { %1771 = vmatmul.mubr.msk.bf16.vlgmr.msra.gmra.mxu1 %vm794_vm1, %v1884_v40  ;;  %1789 = vmatmul.mubr.msk.bf16.vlgmr.msra.gmra.mxu0 %vm794_vm1, %v1885_v41 }
  0x33   : > { %1774 = vmatprep.mubr.msk.bf16.mxu1 %vm794_vm1, %v1886_v43  ;;  %1792 = vmatprep.mubr.msk.bf16.mxu0 %vm794_vm1, %v1887_v44 }
  0x34   : > { %1145 = vperm.xlu1 %1867, %v1127_v58  }
  0x35   : > { %1081 = vperm.xlu0 %1866, %v1023_v59  }
  0x38   : > { %1076 = vperm.xlu1 %1867, %v1022_v60  }
  0x39   : > { %1036 = vperm.xlu0 %1866, %v1014_v62  }
  0x3a   : > { %1775 = vmatmul.mubr.msk.bf16.gmra.mxu1 %vm794_vm1, %v1888_v48  ;;  %1793 = vmatmul.mubr.msk.bf16.gmra.mxu0 %vm794_vm1, %v1889_v49 }
  0x3b   : > { %1778 = vmatprep.mubr.msk.bf16.mxu1 %vm794_vm1, %v1890_v51  ;;  %1831 = vmatprep.mubr.msk.f32.mxu0 %vm1922_vm2, %v2343_v3 }
  0x3c   : > { %1031 = vperm.xlu1 %1867, %v1013_v63  }
  0x3d   : > { %1140 = vperm.xlu0 %1866, %v1126_v0  }
  0x40   : > { %1135 = vperm.xlu1 %1867, %v1125_v1  }
  0x41   : > { %1071 = vperm.xlu0 %1866, %v1021_v2  }
  0x42   : > { %1779 = vmatmul.mubr.msk.bf16.gmra.mxu1 %vm794_vm1, %v1891_v55 }
  0x43   : > { %1782 = vmatprep.mubr.msk.bf16.mxu1 %vm794_vm1, %v1892_v57 }
  0x4a   : > { %1783 = vmatmul.mubr.msk.bf16.gmra.mxu1 %vm794_vm1, %v1893_v61 }
  0x4b   : > { %1812 = vmatprep.mubr.msk.f32.mxu1 %vm1922_vm2, %v2343_v3 }
  0x8b   : > { %v2173_v4 = vpop.permute.xlu1 %1170 }
  0x8c   : > { %2345 = vst [vmem:[#allocation2_spill] sm:$0xff] %v2173_v4  ;;  %v2175_v5 = vpop.permute.xlu0 %1066 }
  0x8d   : > { %2346 = vst [vmem:[#allocation3_spill] sm:$0xff] %v2175_v5 }
  0x90   : > { %v2177_v6 = vpop.permute.xlu1 %1061 }
  0x91   : > { %v2179_v7 = vpop.permute.xlu0 %1106 }
  0x92   : > { %2347 = vst [vmem:[#allocation4_spill] sm:$0xff] %v2179_v7 }
  0x94   : > { %v2181_v8 = vpop.permute.xlu1 %1165 }
  0x98   : > { %v2183_v9 = vpop.permute.xlu0 %1101 }
  0x99   : > { %v2185_v10 = vpop.permute.xlu1 %1096 }
  0x9a   : > { %2348 = vst [vmem:[#allocation5_spill] sm:$0xff] %v2185_v10 }
  0x9c   : > { %v2187_v11 = vpop.permute.xlu0 %1056 }
  0x9d   : > { %2349 = vst [vmem:[#allocation6_spill] sm:$0xff] %v2187_v11 }
  0x9f   : > { %v2191_v14 = vpop.permute.xlu1 %1051 }
  0xa0   : > { %v2195_v17 = vpop.permute.xlu0 %1160 }
  0xa1   : > { %2350 = vst [vmem:[#allocation7_spill] sm:$0xff] %v2195_v17 }
  0xa3   : > { %v2201_v22 = vpop.permute.xlu1 %1155 }
  0xa4   : > { %2353 = vst [vmem:[#allocation10_spill] sm:$0xff] %v2201_v22  ;;  %v2203_v25 = vpop.permute.xlu0 %1091 }
  0xa5   : > { %2354 = vst [vmem:[#allocation11_spill] sm:$0xff] %v2203_v25 }
  0xa7   : > { %v2209_v30 = vpop.permute.xlu1 %1086 }
  0xa8   : > { %v1047_v33 = vpop.permute.xlu0 %1046 }
  0xab   : > { %v1042_v38 = vpop.permute.xlu1 %1041 }
  0xac   : > { %v1151_v41 = vpop.permute.xlu0 %1150 }
  0xaf   : > { %v1146_v46 = vpop.permute.xlu1 %1145 }
  0xb0   : > { %v1082_v48 = vpop.permute.xlu0 %1081 }
  0xb3   : > { %v1077_v52 = vpop.permute.xlu1 %1076 }
  0xb4   : > { %v1037_v55 = vpop.permute.xlu0 %1036 }
  0xb7   : > { %v1032_v59 = vpop.permute.xlu1 %1031 }
  0xb8   : > { %v1141_v63 = vpop.permute.xlu0 %1140 }
  0xbb   : > { %v1136_v7 = vpop.permute.xlu1 %1135 }
  0xda   : > { %v1742_v12 = vpop.f32.mrf.mxu0  ;;  %v2189_v13 = vpop.f32.mrf.mxu1 }
  0xdc   : > { %v586_v15 = vpop.f32.mrf.mxu0  ;;  %v2193_v16 = vpop.f32.mrf.mxu1 }
  0xde   : > { %v1743_v18 = vpop.f32.mrf.mxu0  ;;  %v2197_v19 = vpop.f32.mrf.mxu1 }
  0xdf   : > { %2351 = vst [vmem:[#allocation8_spill] sm:$0xff] %v2197_v19 }
  0xe0   : > { %v589_v20 = vpop.f32.mrf.mxu0  ;;  %v2199_v21 = vpop.f32.mrf.mxu1 }
  0xe1   : > { %2352 = vst [vmem:[#allocation9_spill] sm:$0xff] %v2199_v21 }
  0xe2   : > { %v1746_v23 = vpop.f32.mrf.mxu0  ;;  %v1762_v24 = vpop.f32.mrf.mxu1 }
  0xe4   : > { %v2205_v26 = vpop.f32.mrf.mxu0  ;;  %v723_v27 = vpop.f32.mrf.mxu1 }
  0xe6   : > { %v2207_v28 = vpop.f32.mrf.mxu0  ;;  %v1763_v29 = vpop.f32.mrf.mxu1 }
  0xe8   : > { %v2211_v31 = vpop.f32.mrf.mxu0  ;;  %v726_v32 = vpop.f32.mrf.mxu1 }
  0xea   : > { %v1750_v34 = vpop.f32.mrf.mxu0  ;;  %v1766_v35 = vpop.f32.mrf.mxu1 }
  0xec   : > { %v618_v36 = vpop.f32.mrf.mxu0  ;;  %v2213_v37 = vpop.f32.mrf.mxu1 }
  0xee   : > { %v1751_v39 = vpop.f32.mrf.mxu0  ;;  %v2215_v40 = vpop.f32.mrf.mxu1 }
  0xf0   : > { %v621_v42 = vpop.f32.mrf.mxu0  ;;  %v2217_v43 = vpop.f32.mrf.mxu1 }
  0xf1   : > { %2355 = vst [vmem:[#allocation12_spill] sm:$0xff] %v2217_v43  ;;  %v1072_v43 = vpop.permute.xlu0 %1071 }
  0xf2   : > { %v1772_v44 = vpop.f32.mrf.mxu1  ;;  %v1790_v45 = vpop.f32.mrf.mxu0 }
  0xf3   : > { %v862_v61 = vadd.f32 %v1772_v44, %v1742_v12  ;;  %v991_v62 = vadd.f32 %v1790_v45, %v1762_v24 }
  0xf4   : > { %v853_v47 = vpop.f32.mrf.mxu1  ;;  %v982_v49 = vpop.f32.mrf.mxu0 }
  0xf5   : > { %v854_v0 = vadd.f32 %v853_v47, %v586_v15  ;;  %v983_v17 = vadd.f32 %v982_v49, %v723_v27  ;;  %v1111_v4 = vadd.f32 %v1042_v38, %v862_v61  ;;  %v1175_v21 = vadd.f32 %v1146_v46, %v991_v62  ;;  %v2364_v62 = vld [vmem:[#allocation9_spill] sm:$0xff] }
  0xf6   : > { %v1773_v50 = vpop.f32.mrf.mxu1  ;;  %v1791_v53 = vpop.f32.mrf.mxu0 }
  0xf7   : > { %v865_v10 = vadd.f32 %v1773_v50, %v1743_v18  ;;  %v1109_v19 = vadd.f32 %v1032_v59, %v854_v0  ;;  %v994_v25 = vadd.f32 %v1791_v53, %v1763_v29  ;;  %v1173_v27 = vadd.f32 %v1136_v7, %v983_v17  ;;  %v2360_v53 = vld [vmem:[#allocation10_spill] sm:$0xff] }
  0xf8   : > { %v856_v51 = vpop.f32.mrf.mxu1  ;;  %v985_v57 = vpop.f32.mrf.mxu0  ;;  %v2365_v0 = vld [vmem:[#allocation2_spill] sm:$0xff] }
  0xf9   : > { %v986_v12 = vadd.f32 %v985_v57, %v726_v32  ;;  %v1112_v18 = vadd.f32 %v1047_v33, %v865_v10 }
  0xfa   : > { %v1776_v54 = vpop.f32.mrf.mxu1  ;;  %v1794_v1 = vpop.f32.mrf.mxu0 }
  0xfb   : > { %v878_v15 = vadd.f32 %v1776_v54, %v1746_v23  ;;  %v1007_v49 = vadd.f32 %v1794_v1, %v1766_v35  ;;  %v2361_v54 = vld [vmem:[#allocation3_spill] sm:$0xff] }
  0xfc   : > { %v869_v56 = vpop.f32.mrf.mxu1  ;;  %v998_v24 = vpop.f32.mrf.mxu0 }
  0xfd   : > { %v870_v7 = vadd.f32 %v869_v56, %v2205_v26  ;;  %v1179_v26 = vadd.f32 %v2181_v8, %v1007_v49 }
  0xfe   : > { %v1777_v58 = vpop.f32.mrf.mxu1  ;;  %v1795_v10 = vpop.f32.mrf.mxu0 }
  0xff   : > { %v881_v32 = vadd.f32 %v1777_v58, %v2207_v28  ;;  %v1010_v28 = vadd.f32 %v1795_v10, %v2215_v40  ;;  %v2362_v58 = vld [vmem:[#allocation12_spill] sm:$0xff] }
 0x100   : > { %v2219_v60 = vpop.f32.mrf.mxu1 }
 0x101   : > { %2356 = vst [vmem:[#allocation13_spill] sm:$0xff] %v2219_v60  ;;  %v857_v60 = vadd.f32 %v856_v51, %v589_v20  ;;  %v1176_v20 = vadd.f32 %v1151_v41, %v994_v25  ;;  %v1001_v41 = vpop.f32.mrf.mxu0  ;;  %v2358_v51 = vld [vmem:[#allocation11_spill] sm:$0xff]  ;;  %v1180_v1 = vadd.f32 %v2365_v0, %v1010_v28 }
 0x102   : > { %v1780_v2 = vpop.f32.mrf.mxu1  ;;  %v1002_v59 = vadd.f32 %v1001_v41, %v2362_v58 }
 0x103   : > { %v894_v3 = vadd.f32 %v1780_v2, %v1750_v34 }
 0x104   : > { %v885_v11 = vpop.f32.mrf.mxu1 }
 0x105   : > { %v1119_v5 = vadd.f32 %v1082_v48, %v894_v3  ;;  %v886_v22 = vadd.f32 %v885_v11, %v618_v36 }
 0x106   : > { %v1781_v44 = vpop.f32.mrf.mxu1 }
 0x107   : > { %v1183_v45 = vmul.f32 %v1119_v5, %v1111_v4  ;;  %v1117_v34 = vadd.f32 %v1072_v43, %v886_v22  ;;  %v897_v47 = vadd.f32 %v1781_v44, %v1751_v39  ;;  %v1110_v4 = vadd.f32 %v1037_v55, %v857_v60  ;;  %v2363_v60 = vld [vmem:[#allocation4_spill] sm:$0xff] }
 0x108   : > { %v888_v38 = vpop.f32.mrf.mxu1  ;;  %v1174_v5 = vadd.f32 %v1141_v63, %v986_v12  ;;  %v2357_v8 = vld [vmem:[#allocation13_spill] sm:$0xff]  ;;  %v1116_v55 = vadd.f32 %v2361_v54, %v881_v32 }
 0x109   : > { %v2222_v46 = vadd.f32 %v1183_v45, %v1175_v21  ;;  %v1181_v3 = vmul.f32 %v1117_v34, %v1109_v19  ;;  %v1120_v11 = vadd.f32 %v2209_v30, %v897_v47  ;;  %v889_v29 = vadd.f32 %v888_v38, %v621_v42  ;;  %v2367_v34 = vld [vmem:[#allocation5_spill] sm:$0xff] }
 0x10a   : > { %v1784_v17 = vpop.f32.mrf.mxu1  ;;  %v1115_v21 = vadd.f32 %v2177_v6, %v878_v15  ;;  %v999_v30 = vadd.f32 %v998_v24, %v2213_v37  ;;  %v1113_v37 = vadd.f32 %v2191_v14, %v870_v7  ;;  %v873_v48 = vadd.f32 %v2357_v8, %v2211_v31  ;;  %v2366_v24 = vld [vmem:[#allocation6_spill] sm:$0xff] }
 0x10b   : > { %v1682_v19 = vpack.c.bf16 %v2222_v46, %v2222_v46  ;;  %v2234_v22 = vadd.f32 %v1181_v3, %v1173_v27  ;;  %v1184_v23 = vmul.f32 %v1120_v11, %v1112_v18  ;;  %v1118_v25 = vadd.f32 %v1077_v52, %v889_v29  ;;  %v2359_v52 = vld [vmem:[#allocation8_spill] sm:$0xff]  ;;  %v2368_v18 = vld [vmem:[#allocation7_spill] sm:$0xff] }
 0x10c   : > { %v910_v33 = vadd.f32 %v1784_v17, %v2189_v13  ;;  %v901_v35 = vpop.f32.mrf.mxu1  ;;  %v1177_v40 = vadd.f32 %v2360_v53, %v999_v30  ;;  %v1114_v44 = vadd.f32 %v2366_v24, %v873_v48  ;;  %v1178_v49 = vadd.f32 %v2368_v18, %v1002_v59 }
 0x10d   : > { %1232 = vst.msk [vmem:[%s2228_s17 + $0x8] sm:$0xf] %vm1229_vm3, %v1682_v19  ;;  %v1680_v6 = vpack.c.bf16 %v2234_v22, %v2234_v22  ;;  %v2244_v36 = vadd.f32 %v1184_v23, %v1176_v20  ;;  %v902_v39 = vadd.f32 %v901_v35, %v2193_v16  ;;  %v1182_v42 = vmul.f32 %v1118_v25, %v1110_v4 }
 0x10e   : > { %v1123_v13 = vadd.f32 %v2183_v9, %v910_v33  ;;  %v1785_v43 = vpop.f32.mrf.mxu1  ;;  %v1338_v23 = vmul.f32 %v2222_v46, %v2222_v46  ;;  %v1336_v32 = vmul.f32 %v2234_v22, %v2234_v22 }
 0x10f   : > { %1230 = vst.msk [vmem:[%s2228_s17] sm:$0xf] %vm1229_vm3, %v1680_v6  ;;  %v1683_v50 = vpack.c.bf16 %v2244_v36, %v2244_v36  ;;  %v1121_v16 = vadd.f32 %v2358_v51, %v902_v39  ;;  %v913_v14 = vadd.f32 %v1785_v43, %v2359_v52  ;;  %v1190_v56 = vadd.f32 %v1182_v42, %v1174_v5 }
 0x110   : > { %v1187_v9 = vmul.f32 %v1123_v13, %v1115_v21  ;;  %v904_v57 = vpop.f32.mrf.mxu1  ;;  %v2369_v5 = vmov 0.0   ;;  %v1339_v19 = vmul.f32 %v2244_v36, %v2244_v36 }
 0x111   : > { %1233 = vst.msk [vmem:[%s2228_s17 + $0xc] sm:$0xf] %vm1229_vm3, %v1683_v50  ;;  %v1185_v31 = vmul.f32 %v1121_v16, %v1113_v37  ;;  %v1124_v61 = vadd.f32 %v2363_v60, %v913_v14  ;;  %v905_v63 = vadd.f32 %v904_v57, %v2364_v62  ;;  %v1681_v2 = vpack.c.bf16 %v1190_v56, %v1190_v56 }
 0x112   : > { %v1195_v12 = vadd.f32 %v1187_v9, %v1179_v26  ;;  %v1337_v30 = vmul.f32 %v1190_v56, %v1190_v56 }
 0x113   : > { %v1193_v15 = vadd.f32 %v1185_v31, %v1177_v40  ;;  %v1188_v45 = vmul.f32 %v1124_v61, %v1116_v55  ;;  %v1122_v47 = vadd.f32 %v2367_v34, %v905_v63  ;;  %1231 = vst.msk [vmem:[%s2228_s17 + $0x4] sm:$0xf] %vm1229_vm3, %v1681_v2 }
 0x114   : > { %v1686_v27 = vpack.c.bf16 %v1195_v12, %v1195_v12  ;;  %v1342_v10 = vmul.f32 %v1195_v12, %v1195_v12 }
 0x115   : > { %v1684_v38 = vpack.c.bf16 %v1193_v15, %v1193_v15  ;;  %v1196_v3 = vadd.f32 %v1188_v45, %v1180_v1  ;;  %v1186_v11 = vmul.f32 %v1122_v47, %v1114_v44  ;;  %v1340_v21 = vmul.f32 %v1193_v15, %v1193_v15 }
 0x116   : > { %1236 = vst.msk [vmem:[%s2228_s17 + $0x18] sm:$0xf] %vm1229_vm3, %v1686_v27 }
 0x117   : > { %1234 = vst.msk [vmem:[%s2228_s17 + $0x10] sm:$0xf] %vm1229_vm3, %v1684_v38  ;;  %v1687_v29 = vpack.c.bf16 %v1196_v3, %v1196_v3  ;;  %v1343_v20 = vmul.f32 %v1196_v3, %v1196_v3  ;;  %v1194_v4 = vadd.f32 %v1186_v11, %v1178_v49  ;;  %1797 = vmatpush3.xpose.msk.msra.mxu1 %vm1238_vm4, %v1196_v3 }
 0x118   : > { %1798 = vmatprep.subr.mxu1 %v2369_v5 }
 0x119   : > { %1237 = vst.msk [vmem:[%s2228_s17 + $0x1c] sm:$0xf] %vm1229_vm3, %v1687_v29  ;;  %v1685_v7 = vpack.c.bf16 %v1194_v4, %v1194_v4  ;;  %1816 = vmatpush3.xpose.msk.msra.mxu0 %vm1238_vm4, %v1343_v20  ;;  %v1341_v17 = vmul.f32 %v1194_v4, %v1194_v4 }
 0x11a   : > { %1817 = vmatprep.subr.mxu0 %v2369_v5 }
 0x11b   : > { %1235 = vst.msk [vmem:[%s2228_s17 + $0x14] sm:$0xf] %vm1229_vm3, %v1685_v7  ;;  %1799 = vmatpush3.xpose.msk.msra.mxu1 %vm1238_vm4, %v1195_v12 }
 0x11c   : > { %1800 = vmatprep.subr.mxu1 %v2369_v5 }
 0x11d   : > { %1818 = vmatpush3.xpose.msk.msra.mxu0 %vm1238_vm4, %v1342_v10 }
 0x11e   : > { %1819 = vmatprep.subr.mxu0 %v2369_v5 }
 0x11f   : > { %1801 = vmatpush3.xpose.msk.msra.mxu1 %vm1238_vm4, %v1194_v4 }
 0x120   : > { %1802 = vmatprep.subr.mxu1 %v2369_v5 }
 0x121   : > { %1820 = vmatpush3.xpose.msk.msra.mxu0 %vm1238_vm4, %v1341_v17 }
 0x122   : > { %1821 = vmatprep.subr.mxu0 %v2369_v5 }
 0x123   : > { %1803 = vmatpush3.xpose.msk.msra.mxu1 %vm1238_vm4, %v1193_v15 }
 0x124   : > { %1804 = vmatprep.subr.mxu1 %v2369_v5 }
 0x125   : > { %1822 = vmatpush3.xpose.msk.msra.mxu0 %vm1238_vm4, %v1340_v21 }
 0x126   : > { %1823 = vmatprep.subr.mxu0 %v2369_v5 }
 0x127   : > { %1805 = vmatpush3.xpose.msk.msra.mxu1 %vm1238_vm4, %v2244_v36 }
 0x128   : > { %1806 = vmatprep.subr.mxu1 %v2369_v5 }
 0x129   : > { %1824 = vmatpush3.xpose.msk.msra.mxu0 %vm1238_vm4, %v1339_v19 }
 0x12a   : > { %1825 = vmatprep.subr.mxu0 %v2369_v5 }
 0x12b   : > { %1807 = vmatpush3.xpose.msk.msra.mxu1 %vm1238_vm4, %v2222_v46  ;;  %v1923_v46 = vmov 1.0  }
 0x12c   : > { %1808 = vmatprep.subr.mxu1 %v2369_v5 }
 0x12d   : > { %1826 = vmatpush3.xpose.msk.msra.mxu0 %vm1238_vm4, %v1338_v23 }
 0x12e   : > { %1827 = vmatprep.subr.mxu0 %v2369_v5 }
 0x12f   : > { %1809 = vmatpush3.xpose.msk.msra.mxu1 %vm1238_vm4, %v1190_v56 }
 0x130   : > { %1810 = vmatprep.subr.mxu1 %v2369_v5 }
 0x131   : > { %1828 = vmatpush3.xpose.msk.msra.mxu0 %vm1238_vm4, %v1337_v30 }
 0x132   : > { %1829 = vmatprep.subr.mxu0 %v2369_v5 }
 0x133   : > { %1811 = vmatpush3.xpose.msk.msra.mxu1 %vm1238_vm4, %v2234_v22 }
 0x135   : > { %1830 = vmatpush3.xpose.msk.msra.mxu0 %vm1238_vm4, %v1336_v32 }
 0x136   : > { %1813 = vmatmul.mubr.msk.f32.vlgmr.msra.gmra.mxu1 %vm1238_vm4, %v1923_v46 }
 0x138   : > { %1832 = vmatmul.mubr.msk.f32.vlgmr.msra.gmra.mxu0 %vm1238_vm4, %v1923_v46 }
 0x1f6   : > { %v1332_v25 = vpop.f32.mrf.mxu1 }
 0x1f8   : > { %v1434_v33 = vpop.f32.mrf.mxu0  ;;  %v1814_v35 = vpop.f32.mrf.mxu1 }
 0x1f9   : > { %v1439_v26 = vrot.slane %v1434_v33, 7 }
 0x1fa   : > { %v1833_v6 = vpop.f32.mrf.mxu0 }
 0x1fb   : > { %v1442_v22 = vsel %vm1441_vm5, %v1332_v25, %v1439_v26 }
 0x1fc   : > { %1444 = vst.msk [vmem:[%s413_s21] sm:$0x3] %vm1443_vm6, %v1442_v22 }
 0x1fd PF: > { %s20_s11 = sadd.s32 1, %s1918_s11   ;;  %s2370_s30 = smov %s1914_s10 }
 0x1fe   : > { %p17_p5 = scmp.ge.s32.totalorder %s20_s11, 4   ;;  %s2371_s10 = smov %s2373_s12 }
 0x200   :  { %19 = sbr.rel (!%p17_p5) target bundleno = 2 (0x2), region = 97 }

</bundles_post_ra>
